<compile_context>
chip_gen: v5e
topology: v5e:2x2
jax: 0.10.0
libtpu: 0.0.40
codegen_flags: <defaults>
</compile_context>

<pallas_src>
import functools

import jax
import jax.numpy as jnp
from jax import lax
from jax.experimental import pallas as pl
from jax.experimental.pallas import tpu as pltpu

_MAX_BB = 128  # max images per grid step (batch sits in sublanes -> only needs %8 == 0)


# ----------------------------- fused Pallas kernel -----------------------------

def _fused_mnist_kernel(x_ref, t1_ref, b1_ref, w2_ref, b2_ref,
                        wf1_ref, bf1_ref, wf2_ref, bf2_ref, out_ref):
    # x_ref  : (28, BB, 28) bf16   raw images, [h ; batch(sublane) ; w(lane)]
    # t1_ref : (140, 240) bf16     conv1 Toeplitz (rows = kh*28+w', cols = dj*120 + j*10 + c)
    # b1_ref : (1, 120) f32        conv1 bias tiled over j (cols = j*10 + c)
    # w2_ref : (250, 20) f32       conv2 weight, rows = kh*50 + kw*10 + c1
    # b2_ref : (1, 20) f32
    # wf1_ref: (320, 50) f32       fc1 weight, rows = s*20 + c2 (flatten order pre-folded)
    # bf1_ref: (1, 50) f32
    # wf2_ref: (50, 128) f32       fc2 weight zero-padded to 128 lanes
    # bf2_ref: (1, 128) f32
    # out_ref: (BB, 128) f32
    BB = x_ref.shape[1]
    x = x_ref[...]                                                     # bf16 (28, BB, 28)

    # ---- conv1 + bias + 2x2 max-pool + ReLU : ONE Toeplitz matmul over (kh, w') ----
    # LHS lanes = kh*28 + w'  (5 leading-dim shifted copies of x, lane-concatenated)
    lhs1 = jnp.concatenate([x[kh:kh + 24] for kh in range(5)], axis=-1)    # (24, BB, 140)
    u = jnp.dot(lhs1.reshape(24 * BB, 140), t1_ref[...],
                preferred_element_type=jnp.float32)                        # (24*BB, 240)
    # rows = (h, b); cols = dj*120 + j*10 + c  ->  pool over h-pairs (rows) and dj (lane halves)
    u = jnp.max(u.reshape(12, 2, BB, 240), axis=1)                         # (12, BB, 240)
    u = jnp.maximum(u[:, :, :120], u[:, :, 120:])                          # (12, BB, 120)
    h1 = jnp.maximum(u + b1_ref[...], 0.0)                                 # (12, BB, 120)
    # h1[i, b, j*10 + c] = relu(maxpool(conv1))[c, i, j]

    # ---- conv2 : ONE K=250 im2col matmul (slab built from lane-contiguous slices) ----
    # TODO(synk): nn.Dropout2d is identity in eval mode; training-mode dropout not implemented.
    cols = []
    for q in range(8):
        cols.append(jnp.concatenate(
            [h1[kh:kh + 8, :, 10 * q:10 * q + 50] for kh in range(5)], axis=-1))
    slab = jnp.stack(cols, axis=1)                                         # (8, 8, BB, 250)
    a2 = jnp.dot(slab.reshape(8 * 8 * BB, 250), w2_ref[...],
                 preferred_element_type=jnp.float32) + b2_ref[...]         # (8*8*BB, 20)

    # ---- 2x2 max-pool + ReLU : leading-axis reductions only ----
    a2 = a2.reshape(4, 2, 4, 2, BB, 20)                                    # (P, dp, Q, dq, b, c)
    a2 = jnp.max(a2, axis=3)
    a2 = jnp.max(a2, axis=1)                                               # (4, 4, BB, 20)
    h2 = jnp.maximum(a2, 0.0).reshape(16, BB, 20)                          # s = P*4 + Q

    # ---- fc1 + ReLU : ONE K=320 matmul (flatten order folded into wf1_ref) ----
    flat = jnp.concatenate([h2[s] for s in range(16)], axis=-1)            # (BB, 320)
    z = jnp.maximum(jnp.dot(flat, wf1_ref[...],
                            preferred_element_type=jnp.float32) + bf1_ref[...], 0.0)
    # TODO(synk): F.dropout is identity in eval mode; training-mode RNG dropout not implemented.

    # ---- fc2 (lane-dense, padded to 128 output lanes) ----
    out = jnp.dot(z, wf2_ref[...], preferred_element_type=jnp.float32) + bf2_ref[...]
    out_ref[...] = out.astype(out_ref.dtype)


# ----------------------------- wrapper-side parameter prep -----------------------------

def _conv1_toeplitz(w1):
    # T1[kh*28 + w', dj*120 + j*10 + c] = w1[c, kh, w' - (2j+dj)]  if 0 <= w'-(2j+dj) < 5 else 0
    w1t = jnp.transpose(w1.reshape(10, 5, 5), (1, 2, 0))                   # (kh, kw, c)
    w_out = 2 * jnp.arange(12)[None, :] + jnp.arange(2)[:, None]           # (dj, j)
    diff = jnp.arange(28)[:, None, None] - w_out[None, :, :]               # (w', dj, j)
    mask = (diff >= 0) & (diff < 5)
    idx = jnp.clip(diff, 0, 4)
    gathered = w1t[:, idx, :]                                              # (kh, w', dj, j, c)
    t = jnp.where(mask[None, :, :, :, None], gathered, 0.0)
    return t.reshape(140, 240)


def _prep_params(params):
    w1, b1, w2, b2, wf1, bf1, wf2, bf2 = params
    t1 = _conv1_toeplitz(w1.astype(jnp.float32)).astype(jnp.bfloat16)       # (140, 240)
    b1t = jnp.tile(b1.astype(jnp.float32), 12).reshape(1, 120)              # cols = j*10 + c
    w2m = jnp.transpose(w2, (2, 3, 1, 0)).reshape(250, 20).astype(jnp.float32)
    wf1m = jnp.transpose(wf1.reshape(50, 20, 16), (2, 1, 0)).reshape(320, 50).astype(jnp.float32)
    wf2p = jnp.zeros((50, 128), jnp.float32).at[:, :10].set(wf2.T)           # lane-dense fc2
    bf2p = jnp.zeros((1, 128), jnp.float32).at[:, :10].set(bf2.reshape(1, 10))
    return (t1, b1t, w2m, b2.reshape(1, 20).astype(jnp.float32),
            wf1m, bf1.reshape(1, 50).astype(jnp.float32), wf2p, bf2p)


def _prep_images(x, block_b):
    # (B, 1, 28, 28) NCHW -> (28, B_pad, 28) bf16, batch in sublanes, w in lanes.
    B = x.shape[0]
    xk = jnp.transpose(x[:, 0, :, :], (1, 0, 2))                            # (28, B, 28)
    b_pad = ((B + block_b - 1) // block_b) * block_b
    if b_pad != B:
        xk = jnp.pad(xk, ((0, 0), (0, b_pad - B), (0, 0)))
    return xk.astype(jnp.bfloat16), b_pad


def _choose_block(batch):
    b8 = ((batch + 7) // 8) * 8
    if b8 <= _MAX_BB:
        return b8                     # single grid step for small/medium batches
    return _MAX_BB                    # >= 2 grid steps (v7x megacore + DMA pipeline)


@jax.jit
def mnist_cnn_forward(x, params):
    B = x.shape[0]
    assert x.shape[1:] == (1, 28, 28), "MNIST_CNN expects (B, 1, 28, 28) inputs"
    block_b = _choose_block(B)
    t1, b1t, w2m, b2r, wf1m, bf1r, wf2p, bf2p = _prep_params(params)
    xk, b_pad = _prep_images(x, block_b)

    out = pl.pallas_call(
        _fused_mnist_kernel,
        out_shape=jax.ShapeDtypeStruct((b_pad, 128), jnp.float32),
        grid=(b_pad // block_b,),
        in_specs=[
            pl.BlockSpec((28, block_b, 28), lambda i: (0, i, 0)),
            pl.BlockSpec((140, 240), lambda i: (0, 0)),
            pl.BlockSpec((1, 120), lambda i: (0, 0)),
            pl.BlockSpec((250, 20), lambda i: (0, 0)),
            pl.BlockSpec((1, 20), lambda i: (0, 0)),
            pl.BlockSpec((320, 50), lambda i: (0, 0)),
            pl.BlockSpec((1, 50), lambda i: (0, 0)),
            pl.BlockSpec((50, 128), lambda i: (0, 0)),
            pl.BlockSpec((1, 128), lambda i: (0, 0)),
        ],
        out_specs=pl.BlockSpec((block_b, 128), lambda i: (i, 0)),
        compiler_params=pltpu.CompilerParams(
            dimension_semantics=("parallel",),
            vmem_limit_bytes=48 * 1024 * 1024),
    )(xk, t1, b1t, w2m, b2r, wf1m, bf1r, wf2p, bf2p)

    return out[:B, :10]


# ----------------------------- pure-JAX reference -----------------------------

def reference_forward(x, params):
    w1, b1, w2, b2, wf1, bf1, wf2, bf2 = params
    dn = ("NCHW", "OIHW", "NCHW")

    def conv(y, w, b):
        c = lax.conv_general_dilated(y, w, (1, 1), "VALID", dimension_numbers=dn,
                                     precision=lax.Precision.HIGHEST)
        return c + b.reshape(1, -1, 1, 1)

    def maxpool2(y):
        return lax.reduce_window(y, -jnp.inf, lax.max, (1, 1, 2, 2), (1, 1, 2, 2), "VALID")

    y = jnp.maximum(maxpool2(conv(x, w1, b1)), 0.0)
    y = jnp.maximum(maxpool2(conv(y, w2, b2)), 0.0)
    y = y.reshape(y.shape[0], 320)
    y = jnp.maximum(jnp.dot(y, wf1.T, precision=lax.Precision.HIGHEST) + bf1, 0.0)
    return jnp.dot(y, wf2.T, precision=lax.Precision.HIGHEST) + bf2


# ----------------------------- main -----------------------------

if __name__ == "__main__":
    key = jax.random.PRNGKey(0)
    ks = jax.random.split(key, 9)
    B = 2
    # fc1 expects 320 = 20*4*4 features -> input spatial size must be 28x28 (MNIST)
    x = jax.random.normal(ks[0], (B, 1, 28, 28), jnp.float32)
    params = (
        jax.random.normal(ks[1], (10, 1, 5, 5), jnp.float32) * 0.1,   # conv1.weight
        jax.random.normal(ks[2], (10,), jnp.float32) * 0.1,           # conv1.bias
        jax.random.normal(ks[3], (20, 10, 5, 5), jnp.float32) * 0.1,  # conv2.weight
        jax.random.normal(ks[4], (20,), jnp.float32) * 0.1,           # conv2.bias
        jax.random.normal(ks[5], (50, 320), jnp.float32) * 0.1,       # fc1.weight
        jax.random.normal(ks[6], (50,), jnp.float32) * 0.1,           # fc1.bias
        jax.random.normal(ks[7], (10, 50), jnp.float32) * 0.1,        # fc2.weight
        jax.random.normal(ks[8], (10,), jnp.float32) * 0.1,           # fc2.bias
    )

    out = mnist_cnn_forward(x, params)
    jax.block_until_ready(out)
    assert out.shape == (B, 10), out.shape

    ref = reference_forward(x, params)
    err = float(jnp.max(jnp.abs(out - ref)))
    assert err < 5e-2, f"max abs error vs reference: {err}"
    print("KERNEL_OK")
</pallas_src>

<mosaic_0001>
module attributes {stable_mosaic.version = 11 : i64} {
  func.func @_fused_mnist_kernel(%arg0: i32, %arg1: memref<28x8x28xbf16, #tpu.memory_space<vmem>>, %arg2: memref<140x240xbf16, #tpu.memory_space<vmem>>, %arg3: memref<1x120xf32, #tpu.memory_space<vmem>>, %arg4: memref<250x20xf32, #tpu.memory_space<vmem>>, %arg5: memref<1x20xf32, #tpu.memory_space<vmem>>, %arg6: memref<320x50xf32, #tpu.memory_space<vmem>>, %arg7: memref<1x50xf32, #tpu.memory_space<vmem>>, %arg8: memref<50x128xf32, #tpu.memory_space<vmem>>, %arg9: memref<1x128xf32, #tpu.memory_space<vmem>>, %arg10: memref<8x128xf32, #tpu.memory_space<vmem>>) attributes {dimension_semantics = [#tpu.dimension_semantics<parallel>], iteration_bounds = array<i64: 1>, scalar_prefetch = 0 : i64, scratch_operands = 0 : i64, tpu.core_type = #tpu.core_type<tc>, window_params = [{transform_indices = @transform_0, window_bounds = array<i64: 28, 8, 28>}, {pipeline_mode = #tpu.pipeline_mode<synchronous>, transform_indices = @transform_1, window_bounds = array<i64: 140, 240>}, {pipeline_mode = #tpu.pipeline_mode<synchronous>, transform_indices = @transform_2, window_bounds = array<i64: 1, 120>}, {pipeline_mode = #tpu.pipeline_mode<synchronous>, transform_indices = @transform_3, window_bounds = array<i64: 250, 20>}, {pipeline_mode = #tpu.pipeline_mode<synchronous>, transform_indices = @transform_4, window_bounds = array<i64: 1, 20>}, {pipeline_mode = #tpu.pipeline_mode<synchronous>, transform_indices = @transform_5, window_bounds = array<i64: 320, 50>}, {pipeline_mode = #tpu.pipeline_mode<synchronous>, transform_indices = @transform_6, window_bounds = array<i64: 1, 50>}, {pipeline_mode = #tpu.pipeline_mode<synchronous>, transform_indices = @transform_7, window_bounds = array<i64: 50, 128>}, {pipeline_mode = #tpu.pipeline_mode<synchronous>, transform_indices = @transform_8, window_bounds = array<i64: 1, 128>}, {transform_indices = @transform_9, window_bounds = array<i64: 8, 128>}]} {
    %c0 = arith.constant 0 : index
    %c0_0 = arith.constant 0 : index
    %c0_1 = arith.constant 0 : index
    %0 = vector.load %arg1[%c0, %c0_0, %c0_1] : memref<28x8x28xbf16, #tpu.memory_space<vmem>>, vector<28x8x28xbf16>
    %1 = vector.extract_strided_slice %0 {offsets = [0, 0, 0], sizes = [24, 8, 28], strides = [1, 1, 1]} : vector<28x8x28xbf16> to vector<24x8x28xbf16>
    %2 = vector.extract_strided_slice %0 {offsets = [1, 0, 0], sizes = [24, 8, 28], strides = [1, 1, 1]} : vector<28x8x28xbf16> to vector<24x8x28xbf16>
    %3 = vector.extract_strided_slice %0 {offsets = [2, 0, 0], sizes = [24, 8, 28], strides = [1, 1, 1]} : vector<28x8x28xbf16> to vector<24x8x28xbf16>
    %4 = vector.extract_strided_slice %0 {offsets = [3, 0, 0], sizes = [24, 8, 28], strides = [1, 1, 1]} : vector<28x8x28xbf16> to vector<24x8x28xbf16>
    %5 = vector.extract_strided_slice %0 {offsets = [4, 0, 0], sizes = [24, 8, 28], strides = [1, 1, 1]} : vector<28x8x28xbf16> to vector<24x8x28xbf16>
    %6 = tpu.concatenate %1, %2, %3, %4, %5 in 2 : vector<24x8x28xbf16>, vector<24x8x28xbf16>, vector<24x8x28xbf16>, vector<24x8x28xbf16>, vector<24x8x28xbf16> -> vector<24x8x140xbf16>
    %7 = vector.shape_cast %6 : vector<24x8x140xbf16> to vector<192x140xbf16>
    %c0_2 = arith.constant 0 : index
    %c0_3 = arith.constant 0 : index
    %8 = vector.load %arg2[%c0_2, %c0_3] : memref<140x240xbf16, #tpu.memory_space<vmem>>, vector<140x240xbf16>
    %cst = arith.constant dense<0.000000e+00> : vector<192x240xf32>
    %9 = tpu.matmul %7, %8, %cst {dimension_numbers = #tpu.dot_dimension_numbers<[1], [0], [0], [1], [0, 0, 1, 1], [], []>} : vector<192x140xbf16>, vector<140x240xbf16>, vector<192x240xf32> -> vector<192x240xf32>
    %10 = vector.shape_cast %9 : vector<192x240xf32> to vector<12x2x8x240xf32>
    %cst_4 = arith.constant dense<0xFF800000> : vector<12x8x240xf32>
    %11 = vector.multi_reduction <maximumf>, %10, %cst_4 [1] : vector<12x2x8x240xf32> to vector<12x8x240xf32>
    %12 = vector.extract_strided_slice %11 {offsets = [0, 0, 0], sizes = [12, 8, 120], strides = [1, 1, 1]} : vector<12x8x240xf32> to vector<12x8x120xf32>
    %13 = vector.extract_strided_slice %11 {offsets = [0, 0, 120], sizes = [12, 8, 120], strides = [1, 1, 1]} : vector<12x8x240xf32> to vector<12x8x120xf32>
    %14 = arith.maximumf %12, %13 : vector<12x8x120xf32>
    %c0_5 = arith.constant 0 : index
    %c0_6 = arith.constant 0 : index
    %15 = vector.load %arg3[%c0_5, %c0_6] : memref<1x120xf32, #tpu.memory_space<vmem>>, vector<1x120xf32>
    %16 = vector.shape_cast %15 : vector<1x120xf32> to vector<1x1x120xf32>
    %17 = vector.broadcast %16 : vector<1x1x120xf32> to vector<12x8x120xf32>
    %18 = arith.addf %14, %17 : vector<12x8x120xf32>
    %cst_7 = arith.constant 0.000000e+00 : f32
    %19 = vector.broadcast %cst_7 : f32 to vector<12x8x120xf32>
    %20 = arith.maximumf %18, %19 : vector<12x8x120xf32>
    %21 = vector.extract_strided_slice %20 {offsets = [0, 0, 0], sizes = [8, 8, 50], strides = [1, 1, 1]} : vector<12x8x120xf32> to vector<8x8x50xf32>
    %22 = vector.extract_strided_slice %20 {offsets = [1, 0, 0], sizes = [8, 8, 50], strides = [1, 1, 1]} : vector<12x8x120xf32> to vector<8x8x50xf32>
    %23 = vector.extract_strided_slice %20 {offsets = [2, 0, 0], sizes = [8, 8, 50], strides = [1, 1, 1]} : vector<12x8x120xf32> to vector<8x8x50xf32>
    %24 = vector.extract_strided_slice %20 {offsets = [3, 0, 0], sizes = [8, 8, 50], strides = [1, 1, 1]} : vector<12x8x120xf32> to vector<8x8x50xf32>
    %25 = vector.extract_strided_slice %20 {offsets = [4, 0, 0], sizes = [8, 8, 50], strides = [1, 1, 1]} : vector<12x8x120xf32> to vector<8x8x50xf32>
    %26 = tpu.concatenate %21, %22, %23, %24, %25 in 2 : vector<8x8x50xf32>, vector<8x8x50xf32>, vector<8x8x50xf32>, vector<8x8x50xf32>, vector<8x8x50xf32> -> vector<8x8x250xf32>
    %27 = vector.extract_strided_slice %20 {offsets = [0, 0, 10], sizes = [8, 8, 50], strides = [1, 1, 1]} : vector<12x8x120xf32> to vector<8x8x50xf32>
    %28 = vector.extract_strided_slice %20 {offsets = [1, 0, 10], sizes = [8, 8, 50], strides = [1, 1, 1]} : vector<12x8x120xf32> to vector<8x8x50xf32>
    %29 = vector.extract_strided_slice %20 {offsets = [2, 0, 10], sizes = [8, 8, 50], strides = [1, 1, 1]} : vector<12x8x120xf32> to vector<8x8x50xf32>
    %30 = vector.extract_strided_slice %20 {offsets = [3, 0, 10], sizes = [8, 8, 50], strides = [1, 1, 1]} : vector<12x8x120xf32> to vector<8x8x50xf32>
    %31 = vector.extract_strided_slice %20 {offsets = [4, 0, 10], sizes = [8, 8, 50], strides = [1, 1, 1]} : vector<12x8x120xf32> to vector<8x8x50xf32>
    %32 = tpu.concatenate %27, %28, %29, %30, %31 in 2 : vector<8x8x50xf32>, vector<8x8x50xf32>, vector<8x8x50xf32>, vector<8x8x50xf32>, vector<8x8x50xf32> -> vector<8x8x250xf32>
    %33 = vector.extract_strided_slice %20 {offsets = [0, 0, 20], sizes = [8, 8, 50], strides = [1, 1, 1]} : vector<12x8x120xf32> to vector<8x8x50xf32>
    %34 = vector.extract_strided_slice %20 {offsets = [1, 0, 20], sizes = [8, 8, 50], strides = [1, 1, 1]} : vector<12x8x120xf32> to vector<8x8x50xf32>
    %35 = vector.extract_strided_slice %20 {offsets = [2, 0, 20], sizes = [8, 8, 50], strides = [1, 1, 1]} : vector<12x8x120xf32> to vector<8x8x50xf32>
    %36 = vector.extract_strided_slice %20 {offsets = [3, 0, 20], sizes = [8, 8, 50], strides = [1, 1, 1]} : vector<12x8x120xf32> to vector<8x8x50xf32>
    %37 = vector.extract_strided_slice %20 {offsets = [4, 0, 20], sizes = [8, 8, 50], strides = [1, 1, 1]} : vector<12x8x120xf32> to vector<8x8x50xf32>
    %38 = tpu.concatenate %33, %34, %35, %36, %37 in 2 : vector<8x8x50xf32>, vector<8x8x50xf32>, vector<8x8x50xf32>, vector<8x8x50xf32>, vector<8x8x50xf32> -> vector<8x8x250xf32>
    %39 = vector.extract_strided_slice %20 {offsets = [0, 0, 30], sizes = [8, 8, 50], strides = [1, 1, 1]} : vector<12x8x120xf32> to vector<8x8x50xf32>
    %40 = vector.extract_strided_slice %20 {offsets = [1, 0, 30], sizes = [8, 8, 50], strides = [1, 1, 1]} : vector<12x8x120xf32> to vector<8x8x50xf32>
    %41 = vector.extract_strided_slice %20 {offsets = [2, 0, 30], sizes = [8, 8, 50], strides = [1, 1, 1]} : vector<12x8x120xf32> to vector<8x8x50xf32>
    %42 = vector.extract_strided_slice %20 {offsets = [3, 0, 30], sizes = [8, 8, 50], strides = [1, 1, 1]} : vector<12x8x120xf32> to vector<8x8x50xf32>
    %43 = vector.extract_strided_slice %20 {offsets = [4, 0, 30], sizes = [8, 8, 50], strides = [1, 1, 1]} : vector<12x8x120xf32> to vector<8x8x50xf32>
    %44 = tpu.concatenate %39, %40, %41, %42, %43 in 2 : vector<8x8x50xf32>, vector<8x8x50xf32>, vector<8x8x50xf32>, vector<8x8x50xf32>, vector<8x8x50xf32> -> vector<8x8x250xf32>
    %45 = vector.extract_strided_slice %20 {offsets = [0, 0, 40], sizes = [8, 8, 50], strides = [1, 1, 1]} : vector<12x8x120xf32> to vector<8x8x50xf32>
    %46 = vector.extract_strided_slice %20 {offsets = [1, 0, 40], sizes = [8, 8, 50], strides = [1, 1, 1]} : vector<12x8x120xf32> to vector<8x8x50xf32>
    %47 = vector.extract_strided_slice %20 {offsets = [2, 0, 40], sizes = [8, 8, 50], strides = [1, 1, 1]} : vector<12x8x120xf32> to vector<8x8x50xf32>
    %48 = vector.extract_strided_slice %20 {offsets = [3, 0, 40], sizes = [8, 8, 50], strides = [1, 1, 1]} : vector<12x8x120xf32> to vector<8x8x50xf32>
    %49 = vector.extract_strided_slice %20 {offsets = [4, 0, 40], sizes = [8, 8, 50], strides = [1, 1, 1]} : vector<12x8x120xf32> to vector<8x8x50xf32>
    %50 = tpu.concatenate %45, %46, %47, %48, %49 in 2 : vector<8x8x50xf32>, vector<8x8x50xf32>, vector<8x8x50xf32>, vector<8x8x50xf32>, vector<8x8x50xf32> -> vector<8x8x250xf32>
    %51 = vector.extract_strided_slice %20 {offsets = [0, 0, 50], sizes = [8, 8, 50], strides = [1, 1, 1]} : vector<12x8x120xf32> to vector<8x8x50xf32>
    %52 = vector.extract_strided_slice %20 {offsets = [1, 0, 50], sizes = [8, 8, 50], strides = [1, 1, 1]} : vector<12x8x120xf32> to vector<8x8x50xf32>
    %53 = vector.extract_strided_slice %20 {offsets = [2, 0, 50], sizes = [8, 8, 50], strides = [1, 1, 1]} : vector<12x8x120xf32> to vector<8x8x50xf32>
    %54 = vector.extract_strided_slice %20 {offsets = [3, 0, 50], sizes = [8, 8, 50], strides = [1, 1, 1]} : vector<12x8x120xf32> to vector<8x8x50xf32>
    %55 = vector.extract_strided_slice %20 {offsets = [4, 0, 50], sizes = [8, 8, 50], strides = [1, 1, 1]} : vector<12x8x120xf32> to vector<8x8x50xf32>
    %56 = tpu.concatenate %51, %52, %53, %54, %55 in 2 : vector<8x8x50xf32>, vector<8x8x50xf32>, vector<8x8x50xf32>, vector<8x8x50xf32>, vector<8x8x50xf32> -> vector<8x8x250xf32>
    %57 = vector.extract_strided_slice %20 {offsets = [0, 0, 60], sizes = [8, 8, 50], strides = [1, 1, 1]} : vector<12x8x120xf32> to vector<8x8x50xf32>
    %58 = vector.extract_strided_slice %20 {offsets = [1, 0, 60], sizes = [8, 8, 50], strides = [1, 1, 1]} : vector<12x8x120xf32> to vector<8x8x50xf32>
    %59 = vector.extract_strided_slice %20 {offsets = [2, 0, 60], sizes = [8, 8, 50], strides = [1, 1, 1]} : vector<12x8x120xf32> to vector<8x8x50xf32>
    %60 = vector.extract_strided_slice %20 {offsets = [3, 0, 60], sizes = [8, 8, 50], strides = [1, 1, 1]} : vector<12x8x120xf32> to vector<8x8x50xf32>
    %61 = vector.extract_strided_slice %20 {offsets = [4, 0, 60], sizes = [8, 8, 50], strides = [1, 1, 1]} : vector<12x8x120xf32> to vector<8x8x50xf32>
    %62 = tpu.concatenate %57, %58, %59, %60, %61 in 2 : vector<8x8x50xf32>, vector<8x8x50xf32>, vector<8x8x50xf32>, vector<8x8x50xf32>, vector<8x8x50xf32> -> vector<8x8x250xf32>
    %63 = vector.extract_strided_slice %20 {offsets = [0, 0, 70], sizes = [8, 8, 50], strides = [1, 1, 1]} : vector<12x8x120xf32> to vector<8x8x50xf32>
    %64 = vector.extract_strided_slice %20 {offsets = [1, 0, 70], sizes = [8, 8, 50], strides = [1, 1, 1]} : vector<12x8x120xf32> to vector<8x8x50xf32>
    %65 = vector.extract_strided_slice %20 {offsets = [2, 0, 70], sizes = [8, 8, 50], strides = [1, 1, 1]} : vector<12x8x120xf32> to vector<8x8x50xf32>
    %66 = vector.extract_strided_slice %20 {offsets = [3, 0, 70], sizes = [8, 8, 50], strides = [1, 1, 1]} : vector<12x8x120xf32> to vector<8x8x50xf32>
    %67 = vector.extract_strided_slice %20 {offsets = [4, 0, 70], sizes = [8, 8, 50], strides = [1, 1, 1]} : vector<12x8x120xf32> to vector<8x8x50xf32>
    %68 = tpu.concatenate %63, %64, %65, %66, %67 in 2 : vector<8x8x50xf32>, vector<8x8x50xf32>, vector<8x8x50xf32>, vector<8x8x50xf32>, vector<8x8x50xf32> -> vector<8x8x250xf32>
    %69 = vector.shape_cast %26 : vector<8x8x250xf32> to vector<8x1x8x250xf32>
    %70 = vector.shape_cast %32 : vector<8x8x250xf32> to vector<8x1x8x250xf32>
    %71 = vector.shape_cast %38 : vector<8x8x250xf32> to vector<8x1x8x250xf32>
    %72 = vector.shape_cast %44 : vector<8x8x250xf32> to vector<8x1x8x250xf32>
    %73 = vector.shape_cast %50 : vector<8x8x250xf32> to vector<8x1x8x250xf32>
    %74 = vector.shape_cast %56 : vector<8x8x250xf32> to vector<8x1x8x250xf32>
    %75 = vector.shape_cast %62 : vector<8x8x250xf32> to vector<8x1x8x250xf32>
    %76 = vector.shape_cast %68 : vector<8x8x250xf32> to vector<8x1x8x250xf32>
    %77 = tpu.concatenate %69, %70, %71, %72, %73, %74, %75, %76 in 1 : vector<8x1x8x250xf32>, vector<8x1x8x250xf32>, vector<8x1x8x250xf32>, vector<8x1x8x250xf32>, vector<8x1x8x250xf32>, vector<8x1x8x250xf32>, vector<8x1x8x250xf32>, vector<8x1x8x250xf32> -> vector<8x8x8x250xf32>
    %78 = vector.shape_cast %77 : vector<8x8x8x250xf32> to vector<512x250xf32>
    %c0_8 = arith.constant 0 : index
    %c0_9 = arith.constant 0 : index
    %79 = vector.load %arg4[%c0_8, %c0_9] : memref<250x20xf32, #tpu.memory_space<vmem>>, vector<250x20xf32>
    %cst_10 = arith.constant dense<0.000000e+00> : vector<512x20xf32>
    %80 = tpu.matmul %78, %79, %cst_10 {dimension_numbers = #tpu.dot_dimension_numbers<[1], [0], [0], [1], [0, 0, 1, 1], [], []>} : vector<512x250xf32>, vector<250x20xf32>, vector<512x20xf32> -> vector<512x20xf32>
    %c0_11 = arith.constant 0 : index
    %c0_12 = arith.constant 0 : index
    %81 = vector.load %arg5[%c0_11, %c0_12] : memref<1x20xf32, #tpu.memory_space<vmem>>, vector<1x20xf32>
    %82 = vector.broadcast %81 : vector<1x20xf32> to vector<512x20xf32>
    %83 = arith.addf %80, %82 : vector<512x20xf32>
    %84 = vector.shape_cast %83 : vector<512x20xf32> to vector<4x2x4x2x8x20xf32>
    %cst_13 = arith.constant dense<0xFF800000> : vector<4x2x4x8x20xf32>
    %85 = vector.multi_reduction <maximumf>, %84, %cst_13 [3] : vector<4x2x4x2x8x20xf32> to vector<4x2x4x8x20xf32>
    %cst_14 = arith.constant dense<0xFF800000> : vector<4x4x8x20xf32>
    %86 = vector.multi_reduction <maximumf>, %85, %cst_14 [1] : vector<4x2x4x8x20xf32> to vector<4x4x8x20xf32>
    %cst_15 = arith.constant 0.000000e+00 : f32
    %87 = vector.broadcast %cst_15 : f32 to vector<4x4x8x20xf32>
    %88 = arith.maximumf %86, %87 : vector<4x4x8x20xf32>
    %89 = vector.shape_cast %88 : vector<4x4x8x20xf32> to vector<16x8x20xf32>
    %90 = vector.extract_strided_slice %89 {offsets = [0, 0, 0], sizes = [1, 8, 20], strides = [1, 1, 1]} : vector<16x8x20xf32> to vector<1x8x20xf32>
    %91 = vector.shape_cast %90 : vector<1x8x20xf32> to vector<8x20xf32>
    %92 = vector.extract_strided_slice %89 {offsets = [1, 0, 0], sizes = [1, 8, 20], strides = [1, 1, 1]} : vector<16x8x20xf32> to vector<1x8x20xf32>
    %93 = vector.shape_cast %92 : vector<1x8x20xf32> to vector<8x20xf32>
    %94 = vector.extract_strided_slice %89 {offsets = [2, 0, 0], sizes = [1, 8, 20], strides = [1, 1, 1]} : vector<16x8x20xf32> to vector<1x8x20xf32>
    %95 = vector.shape_cast %94 : vector<1x8x20xf32> to vector<8x20xf32>
    %96 = vector.extract_strided_slice %89 {offsets = [3, 0, 0], sizes = [1, 8, 20], strides = [1, 1, 1]} : vector<16x8x20xf32> to vector<1x8x20xf32>
    %97 = vector.shape_cast %96 : vector<1x8x20xf32> to vector<8x20xf32>
    %98 = vector.extract_strided_slice %89 {offsets = [4, 0, 0], sizes = [1, 8, 20], strides = [1, 1, 1]} : vector<16x8x20xf32> to vector<1x8x20xf32>
    %99 = vector.shape_cast %98 : vector<1x8x20xf32> to vector<8x20xf32>
    %100 = vector.extract_strided_slice %89 {offsets = [5, 0, 0], sizes = [1, 8, 20], strides = [1, 1, 1]} : vector<16x8x20xf32> to vector<1x8x20xf32>
    %101 = vector.shape_cast %100 : vector<1x8x20xf32> to vector<8x20xf32>
    %102 = vector.extract_strided_slice %89 {offsets = [6, 0, 0], sizes = [1, 8, 20], strides = [1, 1, 1]} : vector<16x8x20xf32> to vector<1x8x20xf32>
    %103 = vector.shape_cast %102 : vector<1x8x20xf32> to vector<8x20xf32>
    %104 = vector.extract_strided_slice %89 {offsets = [7, 0, 0], sizes = [1, 8, 20], strides = [1, 1, 1]} : vector<16x8x20xf32> to vector<1x8x20xf32>
    %105 = vector.shape_cast %104 : vector<1x8x20xf32> to vector<8x20xf32>
    %106 = vector.extract_strided_slice %89 {offsets = [8, 0, 0], sizes = [1, 8, 20], strides = [1, 1, 1]} : vector<16x8x20xf32> to vector<1x8x20xf32>
    %107 = vector.shape_cast %106 : vector<1x8x20xf32> to vector<8x20xf32>
    %108 = vector.extract_strided_slice %89 {offsets = [9, 0, 0], sizes = [1, 8, 20], strides = [1, 1, 1]} : vector<16x8x20xf32> to vector<1x8x20xf32>
    %109 = vector.shape_cast %108 : vector<1x8x20xf32> to vector<8x20xf32>
    %110 = vector.extract_strided_slice %89 {offsets = [10, 0, 0], sizes = [1, 8, 20], strides = [1, 1, 1]} : vector<16x8x20xf32> to vector<1x8x20xf32>
    %111 = vector.shape_cast %110 : vector<1x8x20xf32> to vector<8x20xf32>
    %112 = vector.extract_strided_slice %89 {offsets = [11, 0, 0], sizes = [1, 8, 20], strides = [1, 1, 1]} : vector<16x8x20xf32> to vector<1x8x20xf32>
    %113 = vector.shape_cast %112 : vector<1x8x20xf32> to vector<8x20xf32>
    %114 = vector.extract_strided_slice %89 {offsets = [12, 0, 0], sizes = [1, 8, 20], strides = [1, 1, 1]} : vector<16x8x20xf32> to vector<1x8x20xf32>
    %115 = vector.shape_cast %114 : vector<1x8x20xf32> to vector<8x20xf32>
    %116 = vector.extract_strided_slice %89 {offsets = [13, 0, 0], sizes = [1, 8, 20], strides = [1, 1, 1]} : vector<16x8x20xf32> to vector<1x8x20xf32>
    %117 = vector.shape_cast %116 : vector<1x8x20xf32> to vector<8x20xf32>
    %118 = vector.extract_strided_slice %89 {offsets = [14, 0, 0], sizes = [1, 8, 20], strides = [1, 1, 1]} : vector<16x8x20xf32> to vector<1x8x20xf32>
    %119 = vector.shape_cast %118 : vector<1x8x20xf32> to vector<8x20xf32>
    %120 = vector.extract_strided_slice %89 {offsets = [15, 0, 0], sizes = [1, 8, 20], strides = [1, 1, 1]} : vector<16x8x20xf32> to vector<1x8x20xf32>
    %121 = vector.shape_cast %120 : vector<1x8x20xf32> to vector<8x20xf32>
    %122 = tpu.concatenate %91, %93, %95, %97, %99, %101, %103, %105, %107, %109, %111, %113, %115, %117, %119, %121 in 1 : vector<8x20xf32>, vector<8x20xf32>, vector<8x20xf32>, vector<8x20xf32>, vector<8x20xf32>, vector<8x20xf32>, vector<8x20xf32>, vector<8x20xf32>, vector<8x20xf32>, vector<8x20xf32>, vector<8x20xf32>, vector<8x20xf32>, vector<8x20xf32>, vector<8x20xf32>, vector<8x20xf32>, vector<8x20xf32> -> vector<8x320xf32>
    %c0_16 = arith.constant 0 : index
    %c0_17 = arith.constant 0 : index
    %123 = vector.load %arg6[%c0_16, %c0_17] : memref<320x50xf32, #tpu.memory_space<vmem>>, vector<320x50xf32>
    %cst_18 = arith.constant dense<0.000000e+00> : vector<8x50xf32>
    %124 = tpu.matmul %122, %123, %cst_18 {dimension_numbers = #tpu.dot_dimension_numbers<[1], [0], [0], [1], [0, 0, 1, 1], [], []>} : vector<8x320xf32>, vector<320x50xf32>, vector<8x50xf32> -> vector<8x50xf32>
    %c0_19 = arith.constant 0 : index
    %c0_20 = arith.constant 0 : index
    %125 = vector.load %arg7[%c0_19, %c0_20] : memref<1x50xf32, #tpu.memory_space<vmem>>, vector<1x50xf32>
    %126 = vector.broadcast %125 : vector<1x50xf32> to vector<8x50xf32>
    %127 = arith.addf %124, %126 : vector<8x50xf32>
    %cst_21 = arith.constant 0.000000e+00 : f32
    %128 = vector.broadcast %cst_21 : f32 to vector<8x50xf32>
    %129 = arith.maximumf %127, %128 : vector<8x50xf32>
    %c0_22 = arith.constant 0 : index
    %c0_23 = arith.constant 0 : index
    %130 = vector.load %arg8[%c0_22, %c0_23] : memref<50x128xf32, #tpu.memory_space<vmem>>, vector<50x128xf32>
    %cst_24 = arith.constant dense<0.000000e+00> : vector<8x128xf32>
    %131 = tpu.matmul %129, %130, %cst_24 {dimension_numbers = #tpu.dot_dimension_numbers<[1], [0], [0], [1], [0, 0, 1, 1], [], []>} : vector<8x50xf32>, vector<50x128xf32>, vector<8x128xf32> -> vector<8x128xf32>
    %c0_25 = arith.constant 0 : index
    %c0_26 = arith.constant 0 : index
    %132 = vector.load %arg9[%c0_25, %c0_26] : memref<1x128xf32, #tpu.memory_space<vmem>>, vector<1x128xf32>
    %133 = vector.broadcast %132 : vector<1x128xf32> to vector<8x128xf32>
    %134 = arith.addf %131, %133 : vector<8x128xf32>
    %c0_27 = arith.constant 0 : index
    %c0_28 = arith.constant 0 : index
    %135 = vector.load %arg10[%c0_27, %c0_28] : memref<8x128xf32, #tpu.memory_space<vmem>>, vector<8x128xf32>
    tpu.vector_store %arg10[%c0_27, %c0_28], %134 {strides = array<i32>} : memref<8x128xf32, #tpu.memory_space<vmem>>, vector<8x128xf32>,
    return
  }
  func.func @transform_0(%arg0: i32) -> (i32, i32, i32) {
    %c0_i32 = arith.constant 0 : i32
    %c0_i32_0 = arith.constant 0 : i32
    %c0_i32_1 = arith.constant 0 : i32
    return %c0_i32, %arg0, %c0_i32_0 : i32, i32, i32
  }
  func.func @transform_1(%arg0: i32) -> (i32, i32) {
    %c0_i32 = arith.constant 0 : i32
    %c0_i32_0 = arith.constant 0 : i32
    %c0_i32_1 = arith.constant 0 : i32
    return %c0_i32, %c0_i32_0 : i32, i32
  }
  func.func @transform_2(%arg0: i32) -> (i32, i32) {
    %c0_i32 = arith.constant 0 : i32
    %c0_i32_0 = arith.constant 0 : i32
    %c0_i32_1 = arith.constant 0 : i32
    return %c0_i32, %c0_i32_0 : i32, i32
  }
  func.func @transform_3(%arg0: i32) -> (i32, i32) {
    %c0_i32 = arith.constant 0 : i32
    %c0_i32_0 = arith.constant 0 : i32
    %c0_i32_1 = arith.constant 0 : i32
    return %c0_i32, %c0_i32_0 : i32, i32
  }
  func.func @transform_4(%arg0: i32) -> (i32, i32) {
    %c0_i32 = arith.constant 0 : i32
    %c0_i32_0 = arith.constant 0 : i32
    %c0_i32_1 = arith.constant 0 : i32
    return %c0_i32, %c0_i32_0 : i32, i32
  }
  func.func @transform_5(%arg0: i32) -> (i32, i32) {
    %c0_i32 = arith.constant 0 : i32
    %c0_i32_0 = arith.constant 0 : i32
    %c0_i32_1 = arith.constant 0 : i32
    return %c0_i32, %c0_i32_0 : i32, i32
  }
  func.func @transform_6(%arg0: i32) -> (i32, i32) {
    %c0_i32 = arith.constant 0 : i32
    %c0_i32_0 = arith.constant 0 : i32
    %c0_i32_1 = arith.constant 0 : i32
    return %c0_i32, %c0_i32_0 : i32, i32
  }
  func.func @transform_7(%arg0: i32) -> (i32, i32) {
    %c0_i32 = arith.constant 0 : i32
    %c0_i32_0 = arith.constant 0 : i32
    %c0_i32_1 = arith.constant 0 : i32
    return %c0_i32, %c0_i32_0 : i32, i32
  }
  func.func @transform_8(%arg0: i32) -> (i32, i32) {
    %c0_i32 = arith.constant 0 : i32
    %c0_i32_0 = arith.constant 0 : i32
    %c0_i32_1 = arith.constant 0 : i32
    return %c0_i32, %c0_i32_0 : i32, i32
  }
  func.func @transform_9(%arg0: i32) -> (i32, i32) {
    %c0_i32 = arith.constant 0 : i32
    %c0_i32_0 = arith.constant 0 : i32
    return %arg0, %c0_i32 : i32, i32
  }
}

</mosaic_0001>

<bundles_post_ra>
// kernel: tile.8
= control target key start
LH: loop header
LB: loop body
LE: loop exit
PB: predicated region body
PF: predicated region fallthrough
CT: control target
= control target key end

     0   :  { %s28_s0 = inlined_call_operand.vmem [shape: f32[10], index: 0, kind: input, shape index: {}]   ;;  %s29_s1 = inlined_call_operand.vmem [shape: f32[12,10], index: 1, kind: output, shape index: {}]  }
   0x1   :  { %v4_v0 = vld [vmem:[%s28_s0] ss:$0 sm:$0xff] }
   0x2   :  { %5 = vst [vmem:[%s29_s1] sm:$0xff] %v4_v0 }
   0x3   :  { %8 = vst [vmem:[%s29_s1 + $0x8] sm:$0xff] %v4_v0 }

// kernel: tile.9
= control target key start
LH: loop header
LB: loop body
LE: loop exit
PB: predicated region body
PF: predicated region fallthrough
CT: control target
= control target key end

     0   :  { %s99_s10 = smov 110   ;;  %s100_s11 = smov 90   ;;  %vm3_vm0 = vcmask 80896   ;;  %vm9_vm1 = vcmask 982896   ;;  %vm15_vm2 = vcmask 900896   ;;  %vm21_vm3 = vcmask 818896   ;;  %s159_s0 = inlined_call_operand.vmem [shape: f32[12,10], index: 0, kind: input, shape index: {}]   ;;  %s160_s1 = inlined_call_operand.vmem [shape: f32[1,120], index: 1, kind: output, shape index: {}]  }
   0x1   :  { %v77_v0 = vld [vmem:[%s159_s0 + $0xb] sm:$0x1]   ;;  %v79_v1 = vld [vmem:[%s159_s0 + $0x9] sm:$0x1]   ;;  %v81_v2 = vld [vmem:[%s159_s0 + $0x7] sm:$0x1]  }
   0x2   :  { %7 = vrot.lane.b32.xlu0 %v77_v0, %s99_s10  ;;  %19 = vrot.lane.b32.xlu1 %v79_v1, %s100_s11  ;;  %s101_s14 = smov 70   ;;  %v78_v3 = vld [vmem:[%s159_s0 + $0xa] sm:$0x1]   ;;  %v80_v4 = vld [vmem:[%s159_s0 + $0x8] sm:$0x1]   ;;  %s102_s19 = smov 100  }
   0x3   :  { %31 = vrot.lane.b32.xlu2 %v81_v2, %s101_s14  ;;  %s103_s20 = smov 80   ;;  %v82_v5 = vld [vmem:[%s159_s0 + $0x6] sm:$0x1]   ;;  %s104_s23 = smov 60   ;;  %v83_v6 = vld [vmem:[%s159_s0 + $0x5] sm:$0x1]  }
   0x4   :  { %v84_v7 = vld [vmem:[%s159_s0 + $0x4] sm:$0x1]   ;;  %s105_s28 = smov 50   ;;  %s106_s29 = smov 40   ;;  %v85_v8 = vld [vmem:[%s159_s0 + $0x3] sm:$0x1]  }
   0x5   :  { %s107_s3 = smov 30   ;;  %v86_v9 = vld [vmem:[%s159_s0 + $0x2] sm:$0x1]   ;;  %v87_v10 = vld [vmem:[%s159_s0 + $0x1] sm:$0x1]   ;;  %s108_s8 = smov 20  }
   0x6   :  { %s109_s9 = smov 10   ;;  %v2_v11 = vld [vmem:[%s159_s0] sm:$0x1]   ;;  %vm27_vm4 = vcmask 736896   ;;  %vm33_vm5 = vcmask 654896   ;;  %vm39_vm6 = vcmask 572896  }
   0x7   :  { %4 = vst.msk [vmem:[#allocation0] sm:$0x1] %vm3_vm0, %v2_v11   ;;  %vm45_vm7 = vcmask 490896   ;;  %vm51_vm8 = vcmask 408896   ;;  %vm57_vm9 = vcmask 326896   ;;  %vm63_vm10 = vcmask 244896  }
   0x8   :  { %vm69_vm11 = vcmask 162896  }
   0xa   :  { %13 = vrot.lane.b32.xlu0 %v78_v3, %s102_s19  ;;  %25 = vrot.lane.b32.xlu1 %v80_v4, %s103_s20 }
   0xb   :  { %37 = vrot.lane.b32.xlu2 %v82_v5, %s104_s23 }
  0x12   :  { %43 = vrot.lane.b32.xlu0 %v83_v6, %s105_s28  ;;  %49 = vrot.lane.b32.xlu1 %v84_v7, %s106_s29 }
  0x13   :  { %55 = vrot.lane.b32.xlu2 %v85_v8, %s107_s3 }
  0x1a   :  { %61 = vrot.lane.b32.xlu0 %v86_v9, %s108_s8  ;;  %67 = vrot.lane.b32.xlu1 %v87_v10, %s109_s9 }
  0x5d   :  { %v32_v12 = vpop.permute.xlu2 %31  }
  0x65   :  { %v38_v13 = vpop.permute.xlu2 %37  }
  0x6d   :  { %v56_v14 = vpop.permute.xlu2 %55  }
  0x74   :  { %v8_v15 = vpop.permute.xlu0 %7   ;;  %v20_v16 = vpop.permute.xlu1 %19  }
  0x75   :  { %10 = vst.msk [vmem:[#allocation0] sm:$0x1] %vm9_vm1, %v8_v15  }
  0x7c   :  { %v14_v17 = vpop.permute.xlu0 %13   ;;  %v26_v18 = vpop.permute.xlu1 %25  }
  0x7d   :  { %16 = vst.msk [vmem:[#allocation0] sm:$0x1] %vm15_vm2, %v14_v17  }
  0x7e   :  { %22 = vst.msk [vmem:[#allocation0] sm:$0x1] %vm21_vm3, %v20_v16  }
  0x7f   :  { %28 = vst.msk [vmem:[#allocation0] sm:$0x1] %vm27_vm4, %v26_v18  }
  0x80   :  { %34 = vst.msk [vmem:[#allocation0] sm:$0x1] %vm33_vm5, %v32_v12  }
  0x81   :  { %40 = vst.msk [vmem:[#allocation0] sm:$0x1] %vm39_vm6, %v38_v13  }
  0x84   :  { %v44_v19 = vpop.permute.xlu0 %43   ;;  %v50_v20 = vpop.permute.xlu1 %49  }
  0x85   :  { %46 = vst.msk [vmem:[#allocation0] sm:$0x1] %vm45_vm7, %v44_v19  }
  0x86   :  { %52 = vst.msk [vmem:[#allocation0] sm:$0x1] %vm51_vm8, %v50_v20  }
  0x87   :  { %58 = vst.msk [vmem:[#allocation0] sm:$0x1] %vm57_vm9, %v56_v14  }
  0x8c   :  { %v62_v21 = vpop.permute.xlu0 %61   ;;  %v68_v22 = vpop.permute.xlu1 %67  }
  0x8d   :  { %64 = vst.msk [vmem:[#allocation0] sm:$0x1] %vm63_vm10, %v62_v21  }
  0x8e   :  { %70 = vst.msk [vmem:[#allocation0] sm:$0x1] %vm69_vm11, %v68_v22  }
  0x95   :  { %v73_v23 = vld [vmem:[#allocation0] sm:$0x1] }
  0x96   :  { %76 = vst [vmem:[%s160_s1] sm:$0x1] %v73_v23 }

// kernel: mnist_cnn_forward.1
= control target key start
LH: loop header
LB: loop body
LE: loop exit
PB: predicated region body
PF: predicated region fallthrough
CT: control target
= control target key end

     0   :  { %s3700_s15 = smov 56   ;;  %s3701_s16 = smov 28   ;;  %vm805_vm0 = vcmask 1045504   ;;  %vm334_vm1 = vcmask 228352   ;;  %vm407_vm2 = vcmask 457728   ;;  %vm456_vm3 = vcmask 687104   ;;  %s6515_s0 = inlined_call_operand.vmem [shape: bf16[28,8,28], index: 0, kind: input, shape index: {}]   ;;  %s6516_s1 = inlined_call_operand.vmem [shape: bf16[140,240], index: 1, kind: input, shape index: {}]   ;;  %s6517_s2 = inlined_call_operand.vmem [shape: f32[1,120], index: 2, kind: input, shape index: {}]   ;;  %s6518_s3 = inlined_call_operand.vmem [shape: f32[250,20], index: 3, kind: input, shape index: {}]   ;;  %s6519_s4 = inlined_call_operand.vmem [shape: f32[1,20], index: 4, kind: input, shape index: {}]   ;;  %s6520_s5 = inlined_call_operand.vmem [shape: f32[320,50], index: 5, kind: input, shape index: {}]   ;;  %s6521_s6 = inlined_call_operand.vmem [shape: f32[1,50], index: 6, kind: input, shape index: {}]   ;;  %s6522_s8 = inlined_call_operand.vmem [shape: f32[1,128], index: 8, kind: input, shape index: {}]   ;;  %s6523_s7 = inlined_call_operand.vmem [shape: f32[50,128], index: 7, kind: input, shape index: {}]   ;;  %s6524_s9 = inlined_call_operand.vmem [shape: f32[8,128], index: 9, kind: output, shape index: {}]  }
   0x1   :  { %v3789_v0 = vld [vmem:[%s6515_s0 + $0x8] sm:$0xf]  ;;  %v3794_v1 = vld [vmem:[%s6515_s0 + $0x4] sm:$0xf]  ;;  %v3799_v2 = vld [vmem:[%s6515_s0 + $0xc] sm:$0xf] }
   0x2   :  { %v86_v3 = vunpack.c.l.b16 %v3789_v0  ;;  %v85_v4 = vunpack.c.l.b16 %v3794_v1  ;;  %v87_v5 = vunpack.c.l.b16 %v3799_v2  ;;  %v3809_v9 = vld [vmem:[%s6515_s0 + $0x10] sm:$0xf]  ;;  %s3702_s19 = smov 84   ;;  %v3816_v11 = vld [vmem:[%s6515_s0 + $0x14] sm:$0xf]  ;;  %s6525_s22 = smov 112  }
   0x3   :  { %v88_v10 = vunpack.c.l.b16 %v3809_v9  ;;  %v89_v13 = vunpack.c.l.b16 %v3816_v11  ;;  %v3828_v15 = vld [vmem:[%s6515_s0 + $0x18] sm:$0xf]  ;;  %v3837_v18 = vld [vmem:[%s6515_s0 + $0x1c] sm:$0xf]  ;;  %v3849_v21 = vld [vmem:[%s6515_s0 + $0x20] sm:$0xf] }
   0x4   :  { %v110_v6 = vpack.c.b16 %v86_v3, %v86_v3  ;;  %v109_v7 = vpack.c.b16 %v85_v4, %v85_v4  ;;  %v111_v8 = vpack.c.b16 %v87_v5, %v87_v5  ;;  %v90_v16 = vunpack.c.l.b16 %v3828_v15  ;;  %v3857_v23 = vld [vmem:[%s6515_s0 + $0x24] sm:$0xf]  ;;  %v3869_v27 = vld [vmem:[%s6515_s0 + $0x28] sm:$0xf]  ;;  %v3876_v29 = vld [vmem:[%s6515_s0 + $0x2c] sm:$0xf] }
   0x5   :  { %v112_v12 = vpack.c.b16 %v88_v10, %v88_v10  ;;  %v113_v14 = vpack.c.b16 %v89_v13, %v89_v13  ;;  %v91_v19 = vunpack.c.l.b16 %v3837_v18  ;;  %v92_v22 = vunpack.c.l.b16 %v3849_v21  ;;  %v3332_v30 = vld [vmem:[%s6516_s1 + $0x70] sm:$0xf]  ;;  %v3453_v31 = vld [vmem:[%s6516_s1 + $0x74] sm:$0xf0]  ;;  %v3452_v32 = vld [vmem:[%s6516_s1 + $0x74] sm:$0xf] }
   0x6   :  { %184 = vrot.lane.b32.xlu1 %v110_v6, %s3700_s15  ;;  %133 = vrot.lane.b32.xlu0 %v109_v7, %s3701_s16  ;;  %v114_v17 = vpack.c.b16 %v90_v16, %v90_v16  ;;  %v93_v24 = vunpack.c.l.b16 %v3857_v23  ;;  %v94_v28 = vunpack.c.l.b16 %v3869_v27  ;;  %v3333_v34 = vor.u32 %v3453_v31, %v3332_v30  ;;  %v3334_v35 = vld [vmem:[%s6516_s1 + $0x78] sm:$0xf0]  ;;  %v3324_v38 = vld [vmem:[%s6516_s1 + $0x60] sm:$0xf]  ;;  %s6544_s12 = smov 108   ;;  %s6546_s13 = smov 118  }
   0x7   :  { %235 = vrot.lane.b32.xlu2 %v111_v8, %s3702_s19  ;;  %v115_v20 = vpack.c.b16 %v91_v19, %v91_v19  ;;  %v116_v25 = vpack.c.b16 %v92_v22, %v92_v22  ;;  %v95_v36 = vunpack.c.l.b16 %v3876_v29  ;;  %v3337_v37 = vor.u32 %v3452_v32, %v3334_v35  ;;  %v3451_v39 = vld [vmem:[%s6516_s1 + $0x64] sm:$0xf0]  ;;  %v3450_v41 = vld [vmem:[%s6516_s1 + $0x64] sm:$0xf]  ;;  %v3326_v42 = vld [vmem:[%s6516_s1 + $0x68] sm:$0xf0] }
   0x8   :  { %v117_v26 = vpack.c.b16 %v93_v24, %v93_v24  ;;  %v118_v33 = vpack.c.b16 %v94_v28, %v94_v28  ;;  %812 = vmatpush.bf16.msra.mxu0 %v3333_v34  ;;  %v3325_v40 = vor.u32 %v3451_v39, %v3324_v38  ;;  %v3329_v43 = vor.u32 %v3450_v41, %v3326_v42  ;;  %v3316_v45 = vld [vmem:[%s6516_s1 + $0x50] sm:$0xf]  ;;  %v3449_v46 = vld [vmem:[%s6516_s1 + $0x54] sm:$0xf0]  ;;  %v3448_v47 = vld [vmem:[%s6516_s1 + $0x54] sm:$0xf] }
   0x9   :  { %950 = vmatpush.bf16.msra.mxu2 %v3337_v37  ;;  %v3906_v44 = vpack.c.b16 %v95_v36, %v95_v36  ;;  %v3317_v48 = vor.u32 %v3449_v46, %v3316_v45  ;;  %v3318_v49 = vld [vmem:[%s6516_s1 + $0x58] sm:$0xf0]  ;;  %v3308_v51 = vld [vmem:[%s6516_s1 + $0x40] sm:$0xf]  ;;  %v3447_v52 = vld [vmem:[%s6516_s1 + $0x44] sm:$0xf0] }
   0xa   :  { %v3321_v50 = vor.u32 %v3448_v47, %v3318_v49  ;;  %v3446_v53 = vld [vmem:[%s6516_s1 + $0x44] sm:$0xf]  ;;  %v3310_v54 = vld [vmem:[%s6516_s1 + $0x48] sm:$0xf0]  ;;  %v3309_v55 = vor.u32 %v3447_v52, %v3308_v51  ;;  %v3939_v57 = vld [vmem:[%s6515_s0 + $0x30] sm:$0xf] }
   0xb   :  { %v3313_v56 = vor.u32 %v3446_v53, %v3310_v54  ;;  %v3300_v58 = vld [vmem:[%s6516_s1 + $0x30] sm:$0xf]  ;;  %v3445_v59 = vld [vmem:[%s6516_s1 + $0x34] sm:$0xf0]  ;;  %v3444_v60 = vld [vmem:[%s6516_s1 + $0x34] sm:$0xf]  ;;  %v96_v63 = vunpack.c.l.b16 %v3939_v57 }
   0xc   :  { %813 = vmatpush.bf16.msra.mxu0 %v3325_v40  ;;  %v3301_v61 = vor.u32 %v3445_v59, %v3300_v58  ;;  %v3302_v62 = vld [vmem:[%s6516_s1 + $0x38] sm:$0xf0]  ;;  %v3292_v4 = vld [vmem:[%s6516_s1 + $0x20] sm:$0xf]  ;;  %v3443_v5 = vld [vmem:[%s6516_s1 + $0x24] sm:$0xf0] }
   0xd   :  { %951 = vmatpush.bf16.msra.mxu2 %v3329_v43  ;;  %v3305_v3 = vor.u32 %v3444_v60, %v3302_v62  ;;  %v3294_v10 = vld [vmem:[%s6516_s1 + $0x28] sm:$0xf0]  ;;  %v3284_v16 = vld [vmem:[%s6516_s1 + $0x10] sm:$0xf]  ;;  %v3440_v19 = vld [vmem:[%s6516_s1 + $0x14] sm:$0xf] }
   0xe   :  { %186 = vrot.lane.b32.xlu1 %v111_v8, %s3700_s15  ;;  %135 = vrot.lane.b32.xlu0 %v110_v6, %s3701_s16  ;;  %v3442_v6 = vld [vmem:[%s6516_s1 + $0x24] sm:$0xf]  ;;  %v3286_v22 = vld [vmem:[%s6516_s1 + $0x18] sm:$0xf0]  ;;  %vm505_vm4 = vcmask 916480   ;;  %vm768_vm5 = vcmask 97280  }
   0xf   :  { %237 = vrot.lane.b32.xlu2 %v112_v12, %s3702_s19  ;;  %v3297_v13 = vor.u32 %v3442_v6, %v3294_v10  ;;  %v3455_v28 = vld [vmem:[%s6516_s1 + $0x84] sm:$0x30]  ;;  %v3454_v31 = vld [vmem:[%s6516_s1 + $0x84] sm:$0xf]  ;;  %v3342_v32 = vld [vmem:[%s6516_s1 + $0x88] sm:$0x30] }
  0x10   :  { %814 = vmatpush.bf16.msra.mxu0 %v3317_v48  ;;  %v3276_v34 = vld [vmem:[%s6516_s1] sm:$0xf]  ;;  %v3439_v35 = vld [vmem:[%s6516_s1 + $0x4] sm:$0xf0]  ;;  %v3438_v39 = vld [vmem:[%s6516_s1 + $0x4] sm:$0xf] }
  0x11   :  { %952 = vmatpush.bf16.msra.mxu2 %v3321_v50  ;;  %v3277_v38 = vor.u32 %v3439_v35, %v3276_v34  ;;  %v3278_v40 = vld [vmem:[%s6516_s1 + $0x8] sm:$0xf0]  ;;  %v4027_v46 = vld [vmem:[%s6515_s0 + $0x38] sm:$0xf]  ;;  %v33_v54 = vld [vmem:[%s6515_s0] sm:$0xf] }
  0x12   :  { %v3281_v43 = vor.u32 %v3438_v39, %v3278_v40  ;;  %v98_v47 = vunpack.c.l.b16 %v4027_v46  ;;  %vm1208_vm6 = vcmask 64512   ;;  %s6581_s14 = smov 50   ;;  %s6556_s17 = smov 100   ;;  %vm1380_vm7 = vcmask 408576  }
  0x13   :  { %s3710_s18 = smov 30   ;;  %s6534_s20 = smov 90   ;;  %vm1389_vm8 = vcmask 818176   ;;  %vm2455_vm9 = vcmask 1041408   ;;  %vm1398_vm10 = vcmask 179200   ;;  %vm2262_vm11 = vcmask 998400  }
  0x14   :  { %815 = vmatpush.bf16.msra.mxu0 %v3309_v55  ;;  %v122_v52 = vpack.c.b16 %v98_v47, %v98_v47  ;;  %s6528_s21 = smov 98   ;;  %s6536_s23 = smov 80   ;;  %vm1407_vm12 = vcmask 588800   ;;  %vm2877_vm13 = vcmask 162816   ;;  %vm3109_vm14 = vcmask 261120  }
  0x15   :  { %953 = vmatpush.bf16.msra.mxu2 %v3313_v56  ;;  %s6554_s24 = smov 70   ;;  %s6530_s25 = smov 20   ;;  %vm3111_vm15 = vcmask 424960  }
  0x16   :  { %288 = vrot.lane.b32.xlu1 %v113_v14, %s6525_s22  ;;  %286 = vrot.lane.b32.xlu0 %v112_v12, %s6525_s22  ;;  %s3716_s26 = smov 22   ;;  %s6552_s27 = smov 60  }
  0x17   :  { %137 = vrot.lane.b32.xlu2 %v111_v8, %s3701_s16  ;;  %v3293_v8 = vor.u32 %v3443_v5, %v3292_v4  ;;  %s6579_s28 = smov 12   ;;  %s3720_s29 = smov 110  }
  0x18   :  { %816 = vmatpush.bf16.msra.mxu0 %v3301_v61  ;;  %s3721_s30 = smov 2   ;;  %s6540_s10 = smov 68  }
  0x19   :  { %954 = vmatpush.bf16.msra.mxu2 %v3305_v3  ;;  %s6599_s11 = smov 70  }
  0x1c   :  { %817 = vmatpush.bf16.msra.mxu0 %v3293_v8 }
  0x1d   :  { %955 = vmatpush.bf16.msra.mxu2 %v3297_v13 }
  0x1e   :  { %188 = vrot.lane.b32.xlu1 %v112_v12, %s3700_s15  ;;  %139 = vrot.lane.b32.xlu0 %v112_v12, %s3701_s16  ;;  %v120_v12 = vpack.c.b16 %v96_v63, %v96_v63  ;;  %v4059_v63 = vld [vmem:[%s6515_s0 + $0x40] sm:$0xf] }
  0x1f   :  { %190 = vrot.lane.b32.xlu2 %v113_v14, %s3700_s15 }
  0x26   :  { %241 = vrot.lane.b32.xlu1 %v114_v17, %s3702_s19  ;;  %239 = vrot.lane.b32.xlu0 %v113_v14, %s3702_s19 }
  0x27   :  { %290 = vrot.lane.b32.xlu2 %v114_v17, %s6525_s22 }
  0x2e   :  { %141 = vrot.lane.b32.xlu1 %v113_v14, %s3701_s16  ;;  %292 = vrot.lane.b32.xlu0 %v115_v20, %s6525_s22  ;;  %v3975_v14 = vld [vmem:[%s6515_s0 + $0x34] sm:$0xf] }
  0x2f   :  { %143 = vrot.lane.b32.xlu2 %v114_v17, %s3701_s16  ;;  %v97_v24 = vunpack.c.l.b16 %v3975_v14 }
  0x31   :  { %v121_v41 = vpack.c.b16 %v97_v24, %v97_v24 }
  0x36   :  { %194 = vrot.lane.b32.xlu1 %v115_v20, %s3700_s15  ;;  %192 = vrot.lane.b32.xlu0 %v114_v17, %s3700_s15  ;;  %v3441_v17 = vld [vmem:[%s6516_s1 + $0x14] sm:$0xf0] }
  0x37   :  { %243 = vrot.lane.b32.xlu2 %v115_v20, %s3702_s19 }
  0x3e   :  { %294 = vrot.lane.b32.xlu1 %v116_v25, %s6525_s22  ;;  %245 = vrot.lane.b32.xlu0 %v116_v25, %s3702_s19 }
  0x3f   :  { %296 = vrot.lane.b32.xlu2 %v117_v26, %s6525_s22 }
  0x46   :  { %147 = vrot.lane.b32.xlu1 %v116_v25, %s3701_s16  ;;  %145 = vrot.lane.b32.xlu0 %v115_v20, %s3701_s16  ;;  %v3285_v20 = vor.u32 %v3441_v17, %v3284_v16 }
  0x47   :  { %196 = vrot.lane.b32.xlu2 %v116_v25, %s3700_s15  ;;  %v3289_v25 = vor.u32 %v3440_v19, %v3286_v22  ;;  %v100_v19 = vunpack.c.l.b16 %v4059_v63  ;;  %v4073_v22 = vld [vmem:[%s6515_s0 + $0x44] sm:$0xf] }
  0x48   :  { %818 = vmatpush.bf16.msra.mxu0 %v3285_v20  ;;  %v101_v24 = vunpack.c.l.b16 %v4073_v22 }
  0x49   :  { %956 = vmatpush.bf16.msra.mxu2 %v3289_v25  ;;  %v124_v25 = vpack.c.b16 %v100_v19, %v100_v19 }
  0x4c   :  { %819 = vmatpush.bf16.msra.mxu0 %v3277_v38 }
  0x4d   :  { %957 = vmatpush.bf16.msra.mxu2 %v3281_v43 }
  0x4e   :  { %247 = vrot.lane.b32.xlu1 %v117_v26, %s3702_s19  ;;  %198 = vrot.lane.b32.xlu0 %v117_v26, %s3700_s15 }
  0x4f   :  { %249 = vrot.lane.b32.xlu2 %v118_v33, %s3702_s19 }
  0x56   :  { %300 = vrot.lane.b32.xlu1 %v3906_v44, %s6525_s22  ;;  %298 = vrot.lane.b32.xlu0 %v118_v33, %s6525_s22 }
  0x57   :  { %149 = vrot.lane.b32.xlu2 %v117_v26, %s3701_s16  ;;  %v3340_v26 = vld [vmem:[%s6516_s1 + $0x80] sm:$0xf]  ;;  %s6532_s1 = smov 120  }
  0x58   :  { %v3341_v30 = vor.u32 %v3455_v28, %v3340_v26 }
  0x5a   :  { %v807_v37 = vsel %vm805_vm0, %v3341_v30, 0 }
  0x5b   :  { %888 = vmatpush.bf16.msra.mxu1 %v807_v37  ;;  %v4091_v37 = vld [vmem:[%s6515_s0 + $0x48] sm:$0xf] }
  0x5e   :  { %200 = vrot.lane.b32.xlu1 %v118_v33, %s3700_s15  ;;  %151 = vrot.lane.b32.xlu0 %v118_v33, %s3701_s16  ;;  %v3345_v33 = vor.u32 %v3454_v31, %v3342_v32  ;;  %v125_v31 = vpack.c.b16 %v101_v24, %v101_v24 }
  0x5f   :  { %202 = vrot.lane.b32.xlu2 %v3906_v44, %s3700_s15 }
  0x60   :  { %v810_v42 = vsel %vm805_vm0, %v3345_v33, 0  ;;  %vm3114_vm0 = vcmask 752640  }
  0x61   :  { %v3967_v7 = vpop.permute.xlu2 %235  ;;  %1026 = vmatpush.bf16.msra.mxu3 %v810_v42 }
  0x66   :  { %253 = vrot.lane.b32.xlu1 %v120_v12, %s3702_s19  ;;  %251 = vrot.lane.b32.xlu0 %v3906_v44, %s3702_s19 }
  0x67   :  { %302 = vrot.lane.b32.xlu2 %v120_v12, %s6525_s22 }
  0x69   :  { %v238_v36 = vpop.permute.xlu2 %237 }
  0x6e   :  { %153 = vrot.lane.b32.xlu1 %v3906_v44, %s3701_s16  ;;  %304 = vrot.lane.b32.xlu0 %v121_v41, %s6525_s22  ;;  %v4035_v44 = vld [vmem:[%s6515_s0 + $0x3c] sm:$0xf] }
  0x6f   :  { %155 = vrot.lane.b32.xlu2 %v120_v12, %s3701_s16  ;;  %v99_v50 = vunpack.c.l.b16 %v4035_v44 }
  0x71   :  { %v4022_v45 = vpop.permute.xlu2 %137  ;;  %v123_v53 = vpack.c.b16 %v99_v50, %v99_v50 }
  0x72   :  { %v343_v32 = vsel %vm334_vm1, %v3789_v0, %v4022_v45  ;;  %v102_v0 = vunpack.c.l.b16 %v4091_v37 }
  0x74   :  { %v126_v50 = vpack.c.b16 %v102_v0, %v102_v0 }
  0x76   :  { %206 = vrot.lane.b32.xlu1 %v121_v41, %s3700_s15  ;;  %204 = vrot.lane.b32.xlu0 %v120_v12, %s3700_s15 }
  0x77   :  { %255 = vrot.lane.b32.xlu2 %v121_v41, %s3702_s19 }
  0x78   :  { %v185_v48 = vpop.permute.xlu1 %184  ;;  %v134_v49 = vpop.permute.xlu0 %133 }
  0x79   :  { %v4039_v51 = vpop.permute.xlu2 %190  ;;  %v337_v59 = vsel %vm334_vm1, %v33_v54, %v134_v49 }
  0x7a   :  { %v409_v61 = vsel %vm407_vm2, %v337_v59, %v185_v48 }
  0x7b   :  { %v458_v5 = vsel %vm456_vm3, %v409_v61, %v3967_v7 }
  0x7e   :  { %306 = vrot.lane.b32.xlu1 %v122_v52, %s6525_s22  ;;  %257 = vrot.lane.b32.xlu0 %v122_v52, %s3702_s19 }
  0x7f   :  { %308 = vrot.lane.b32.xlu2 %v123_v53, %s6525_s22 }
  0x80   :  { %v187_v55 = vpop.permute.xlu1 %186  ;;  %v136_v56 = vpop.permute.xlu0 %135 }
  0x81   :  { %v4047_v58 = vpop.permute.xlu2 %290  ;;  %v340_v60 = vsel %vm334_vm1, %v3794_v1, %v136_v56 }
  0x82   :  { %v411_v62 = vsel %vm407_vm2, %v340_v60, %v187_v55  ;;  %v583_v40 = vunpack.c.l.b16 %v4047_v58 }
  0x83   :  { %v460_v1 = vsel %vm456_vm3, %v411_v62, %v238_v36 }
  0x86   :  { %159 = vrot.lane.b32.xlu1 %v122_v52, %s3701_s16  ;;  %157 = vrot.lane.b32.xlu0 %v121_v41, %s3701_s16 }
  0x87   :  { %208 = vrot.lane.b32.xlu2 %v122_v52, %s3700_s15 }
  0x88   :  { %v289_v3 = vpop.permute.xlu1 %288  ;;  %v287_v4 = vpop.permute.xlu0 %286 }
  0x89   :  { %v509_v6 = vsel %vm505_vm4, %v460_v1, %v289_v3  ;;  %v581_v8 = vunpack.c.l.b16 %v289_v3  ;;  %v507_v10 = vsel %vm505_vm4, %v458_v5, %v287_v4  ;;  %v579_v12 = vunpack.c.l.b16 %v287_v4  ;;  %v4067_v13 = vpop.permute.xlu2 %143 }
  0x8a   :  { %v578_v16 = vunpack.c.l.b16 %v507_v10  ;;  %v580_v17 = vunpack.c.l.b16 %v509_v6  ;;  %v352_v3 = vsel %vm334_vm1, %v3816_v11, %v4067_v13 }
  0x8b   :  { %v645_v20 = vpack.c.b16 %v581_v8, %v579_v12 }
  0x8c   :  { %v644_v7 = vpack.c.b16 %v580_v17, %v578_v16 }
  0x8d   :  { %3346 = vmatmul.msk.bf16.vlgmr.msra.gmra.mxu1 %vm768_vm5, %v645_v20  ;;  %3358 = vmatmul.msk.bf16.vlgmr.msra.gmra.mxu3 %vm768_vm5, %v645_v20 }
  0x8e   :  { %259 = vrot.lane.b32.xlu1 %v123_v53, %s3702_s19  ;;  %210 = vrot.lane.b32.xlu0 %v123_v53, %s3700_s15 }
  0x8f   :  { %820 = vmatmul.bf16.vlgmr.msra.gmra.mxu0 %v644_v7  ;;  %958 = vmatmul.bf16.vlgmr.msra.gmra.mxu2 %v644_v7  ;;  %v4139_v7 = vld [vmem:[%s6515_s0 + $0x50] sm:$0xf] }
  0x90   :  { %v189_v26 = vpop.permute.xlu1 %188  ;;  %v140_v28 = vpop.permute.xlu0 %139  ;;  %261 = vrot.lane.b32.xlu2 %v124_v25, %s3702_s19 }
  0x91   :  { %v244_v30 = vpop.permute.xlu2 %243  ;;  %v413_v36 = vsel %vm407_vm2, %v343_v32, %v189_v26  ;;  %v346_v38 = vsel %vm334_vm1, %v3799_v2, %v140_v28  ;;  %v4149_v26 = vld [vmem:[%s6515_s0 + $0x54] sm:$0xf] }
  0x92   :  { %v415_v41 = vsel %vm407_vm2, %v346_v38, %v4039_v51  ;;  %v4112_v51 = vld [vmem:[%s6515_s0 + $0x4c] sm:$0xf] }
  0x93   :  { %v103_v56 = vunpack.c.l.b16 %v4112_v51 }
  0x95   :  { %v127_v61 = vpack.c.b16 %v103_v56, %v103_v56  ;;  %v4183_v56 = vld [vmem:[%s6515_s0 + $0x5c] sm:$0xf] }
  0x96   :  { %312 = vrot.lane.b32.xlu1 %v125_v31, %s6525_s22  ;;  %310 = vrot.lane.b32.xlu0 %v124_v25, %s6525_s22 }
  0x98   :  { %v242_v33 = vpop.permute.xlu1 %241  ;;  %v240_v34 = vpop.permute.xlu0 %239  ;;  %161 = vrot.lane.b32.xlu2 %v123_v53, %s3701_s16 }
  0x99   :  { %v297_v35 = vpop.permute.xlu2 %296  ;;  %v462_v39 = vsel %vm456_vm3, %v413_v36, %v240_v34  ;;  %v464_v43 = vsel %vm456_vm3, %v415_v41, %v242_v33  ;;  %v105_v33 = vunpack.c.l.b16 %v4149_v26 }
  0x9a   :  { %v511_v42 = vsel %vm505_vm4, %v462_v39, %v4047_v58  ;;  %v589_v4 = vunpack.c.l.b16 %v297_v35 }
  0x9b   :  { %v582_v52 = vunpack.c.l.b16 %v511_v42  ;;  %v129_v34 = vpack.c.b16 %v105_v33, %v105_v33  ;;  %v4170_v42 = vld [vmem:[%s6515_s0 + $0x58] sm:$0xf] }
  0x9e   :  { %212 = vrot.lane.b32.xlu1 %v124_v25, %s3700_s15  ;;  %163 = vrot.lane.b32.xlu0 %v124_v25, %s3701_s16  ;;  %v104_v25 = vunpack.c.l.b16 %v4139_v7 }
  0xa0   :  { %v142_v45 = vpop.permute.xlu1 %141  ;;  %v293_v2 = vpop.permute.xlu0 %292  ;;  %214 = vrot.lane.b32.xlu2 %v125_v31, %s3700_s15  ;;  %v128_v32 = vpack.c.b16 %v104_v25, %v104_v25 }
  0xa1   :  { %v513_v47 = vsel %vm505_vm4, %v464_v43, %v293_v2  ;;  %v585_v48 = vunpack.c.l.b16 %v293_v2  ;;  %v4107_v49 = vpop.permute.xlu2 %196  ;;  %v349_v62 = vsel %vm334_vm1, %v3809_v9, %v142_v45 }
  0xa2   :  { %v584_v53 = vunpack.c.l.b16 %v513_v47 }
  0xa3   :  { %v647_v54 = vpack.c.b16 %v585_v48, %v583_v40 }
  0xa4   :  { %v646_v55 = vpack.c.b16 %v584_v53, %v582_v52 }
  0xa5   :  { %3347 = vmatmul.msk.bf16.gmra.mxu1 %vm768_vm5, %v647_v54  ;;  %3359 = vmatmul.msk.bf16.gmra.mxu3 %vm768_vm5, %v647_v54  ;;  %v106_v54 = vunpack.c.l.b16 %v4170_v42 }
  0xa6   :  { %265 = vrot.lane.b32.xlu1 %v126_v50, %s3702_s19  ;;  %263 = vrot.lane.b32.xlu0 %v125_v31, %s3702_s19 }
  0xa7   :  { %825 = vmatmul.bf16.gmra.mxu0 %v646_v55  ;;  %963 = vmatmul.bf16.gmra.mxu2 %v646_v55 }
  0xa8   :  { %v195_v58 = vpop.permute.xlu1 %194  ;;  %v193_v59 = vpop.permute.xlu0 %192  ;;  %314 = vrot.lane.b32.xlu2 %v126_v50, %s6525_s22 }
  0xa9   :  { %v250_v60 = vpop.permute.xlu2 %249  ;;  %v417_v1 = vsel %vm407_vm2, %v349_v62, %v193_v59  ;;  %v419_v5 = vsel %vm407_vm2, %v352_v3, %v195_v58  ;;  %v107_v59 = vunpack.c.l.b16 %v4183_v56 }
  0xaa   :  { %v466_v6 = vsel %vm456_vm3, %v417_v1, %v244_v30 }
  0xab   :  { %v131_v1 = vpack.c.b16 %v107_v59, %v107_v59 }
  0xae   :  { %165 = vrot.lane.b32.xlu1 %v125_v31, %s3701_s16  ;;  %316 = vrot.lane.b32.xlu0 %v127_v61, %s6525_s22 }
  0xb0   :  { %v295_v8 = vpop.permute.xlu1 %294  ;;  %v246_v10 = vpop.permute.xlu0 %245  ;;  %167 = vrot.lane.b32.xlu2 %v126_v50, %s3701_s16 }
  0xb1   :  { %v515_v9 = vsel %vm505_vm4, %v466_v6, %v295_v8  ;;  %v587_v12 = vunpack.c.l.b16 %v295_v8  ;;  %v468_v11 = vsel %vm456_vm3, %v419_v5, %v246_v10  ;;  %v4133_v13 = vpop.permute.xlu2 %149  ;;  %v3464_v10 = vld [vmem:[%s6515_s0 + $0x60] sm:$0xff]  }
  0xb2   :  { %v517_v16 = vsel %vm505_vm4, %v468_v11, %v297_v35  ;;  %v586_v17 = vunpack.c.l.b16 %v515_v9 }
  0xb3   :  { %v649_v19 = vpack.c.b16 %v589_v4, %v587_v12  ;;  %v588_v20 = vunpack.c.l.b16 %v517_v16  ;;  %v361_v4 = vsel %vm334_vm1, %v3849_v21, %v4133_v13  ;;  %v3458_v21 = vunpack.c.l.b16 %v3464_v10 }
  0xb5   :  { %3348 = vmatmul.msk.bf16.gmra.mxu1 %vm768_vm5, %v649_v19  ;;  %3360 = vmatmul.msk.bf16.gmra.mxu3 %vm768_vm5, %v649_v19  ;;  %v648_v24 = vpack.c.b16 %v588_v20, %v586_v17 }
  0xb6   :  { %218 = vrot.lane.b32.xlu1 %v127_v61, %s3700_s15  ;;  %216 = vrot.lane.b32.xlu0 %v126_v50, %s3700_s15 }
  0xb7   :  { %830 = vmatmul.bf16.gmra.mxu0 %v648_v24  ;;  %968 = vmatmul.bf16.gmra.mxu2 %v648_v24 }
  0xb8   :  { %v148_v28 = vpop.permute.xlu1 %147  ;;  %v146_v30 = vpop.permute.xlu0 %145  ;;  %267 = vrot.lane.b32.xlu2 %v127_v61, %s3702_s19 }
  0xb9   :  { %v203_v31 = vpop.permute.xlu2 %202  ;;  %v358_v39 = vsel %vm334_vm1, %v3837_v18, %v148_v28  ;;  %v355_v0 = vsel %vm334_vm1, %v3828_v15, %v146_v30  ;;  %v132_v28 = vpack.c.b16 %v3458_v21, %v3458_v21 }
  0xba   :  { %v421_v41 = vsel %vm407_vm2, %v355_v0, %v4107_v49  ;;  %v3465_v0 = vld [vmem:[%s6515_s0 + $0x68] sm:$0xff]   ;;  %s6526_s0 = smov 8  }
  0xbe   :  { %318 = vrot.lane.b32.xlu1 %v128_v32, %s6525_s22  ;;  %269 = vrot.lane.b32.xlu0 %v128_v32, %s3702_s19 }
  0xc0   :  { %v248_v35 = vpop.permute.xlu1 %247  ;;  %v199_v36 = vpop.permute.xlu0 %198  ;;  %320 = vrot.lane.b32.xlu2 %v129_v34, %s6525_s22 }
  0xc1   :  { %v4156_v38 = vpop.permute.xlu2 %302  ;;  %v423_v40 = vsel %vm407_vm2, %v358_v39, %v199_v36  ;;  %v470_v43 = vsel %vm456_vm3, %v421_v41, %v248_v35  ;;  %v3459_v35 = vunpack.c.h.b16 %v3464_v10  ;;  %v3462_v41 = vunpack.c.l.b16 %v3465_v0 }
  0xc2   :  { %v472_v18 = vsel %vm456_vm3, %v423_v40, %v250_v60  ;;  %v130_v60 = vpack.c.b16 %v106_v54, %v106_v54  ;;  %v595_v13 = vunpack.c.l.b16 %v4156_v38 }
  0xc3   :  { %v4218_v39 = vpack.c.b16 %v3459_v35, %v3459_v35 }
  0xc6   :  { %171 = vrot.lane.b32.xlu1 %v128_v32, %s3701_s16  ;;  %169 = vrot.lane.b32.xlu0 %v127_v61, %s3701_s16 }
  0xc8   :  { %v301_v45 = vpop.permute.xlu1 %300  ;;  %v299_v15 = vpop.permute.xlu0 %298  ;;  %220 = vrot.lane.b32.xlu2 %v128_v32, %s3700_s15 }
  0xc9   :  { %v521_v2 = vsel %vm505_vm4, %v472_v18, %v301_v45  ;;  %v593_v47 = vunpack.c.l.b16 %v301_v45  ;;  %v519_v48 = vsel %vm505_vm4, %v470_v43, %v299_v15  ;;  %v591_v50 = vunpack.c.l.b16 %v299_v15  ;;  %v4177_v49 = vpop.permute.xlu2 %155 }
  0xca   :  { %v590_v52 = vunpack.c.l.b16 %v519_v48  ;;  %v592_v53 = vunpack.c.l.b16 %v521_v2  ;;  %v370_v43 = vsel %vm334_vm1, %v3876_v29, %v4177_v49  ;;  %v234_v45 = vpack.c.b16 %v3462_v41, %v3462_v41 }
  0xcb   :  { %v651_v55 = vpack.c.b16 %v593_v47, %v591_v50 }
  0xcc   :  { %v650_v58 = vpack.c.b16 %v592_v53, %v590_v52 }
  0xcd   :  { %3349 = vmatmul.msk.bf16.gmra.mxu1 %vm768_vm5, %v651_v55  ;;  %3361 = vmatmul.msk.bf16.gmra.mxu3 %vm768_vm5, %v651_v55 }
  0xce   :  { %271 = vrot.lane.b32.xlu1 %v129_v34, %s3702_s19  ;;  %222 = vrot.lane.b32.xlu0 %v129_v34, %s3700_s15 }
  0xcf   :  { %835 = vmatmul.bf16.gmra.mxu0 %v650_v58  ;;  %973 = vmatmul.bf16.gmra.mxu2 %v650_v58 }
  0xd0   :  { %v201_v61 = vpop.permute.xlu1 %200  ;;  %v152_v62 = vpop.permute.xlu0 %151  ;;  %273 = vrot.lane.b32.xlu2 %v130_v60, %s3702_s19 }
  0xd1   :  { %v256_v3 = vpop.permute.xlu2 %255  ;;  %v425_v8 = vsel %vm407_vm2, %v361_v4, %v201_v61  ;;  %v364_v12 = vsel %vm334_vm1, %v3857_v23, %v152_v62 }
  0xd2   :  { %v427_v16 = vsel %vm407_vm2, %v364_v12, %v203_v31 }
  0xd6   :  { %324 = vrot.lane.b32.xlu1 %v131_v1, %s6525_s22  ;;  %322 = vrot.lane.b32.xlu0 %v130_v60, %s6525_s22 }
  0xd8   :  { %v254_v5 = vpop.permute.xlu1 %253  ;;  %v252_v6 = vpop.permute.xlu0 %251  ;;  %173 = vrot.lane.b32.xlu2 %v129_v34, %s3701_s16 }
  0xd9   :  { %v309_v9 = vpop.permute.xlu2 %308  ;;  %v474_v11 = vsel %vm456_vm3, %v425_v8, %v252_v6  ;;  %v476_v19 = vsel %vm456_vm3, %v427_v16, %v254_v5  ;;  %v3463_v8 = vunpack.c.h.b16 %v3465_v0 }
  0xda   :  { %v523_v17 = vsel %vm505_vm4, %v474_v11, %v4156_v38  ;;  %v601_v15 = vunpack.c.l.b16 %v309_v9 }
  0xdb   :  { %v594_v30 = vunpack.c.l.b16 %v523_v17 }
  0xde   :  { %224 = vrot.lane.b32.xlu1 %v130_v60, %s3700_s15  ;;  %175 = vrot.lane.b32.xlu0 %v130_v60, %s3701_s16 }
  0xe0   :  { %v154_v20 = vpop.permute.xlu1 %153  ;;  %v305_v24 = vpop.permute.xlu0 %304  ;;  %226 = vrot.lane.b32.xlu2 %v131_v1, %s3700_s15 }
  0xe1   :  { %v525_v23 = vsel %vm505_vm4, %v476_v19, %v305_v24  ;;  %v597_v25 = vunpack.c.l.b16 %v305_v24  ;;  %v209_v31 = vpop.permute.xlu2 %208  ;;  %v367_v40 = vsel %vm334_vm1, %v3869_v27, %v154_v20 }
  0xe2   :  { %v596_v32 = vunpack.c.l.b16 %v525_v23 }
  0xe3   :  { %v653_v33 = vpack.c.b16 %v597_v25, %v595_v13 }
  0xe4   :  { %v652_v34 = vpack.c.b16 %v596_v32, %v594_v30 }
  0xe5   :  { %3350 = vmatmul.msk.bf16.gmra.mxu1 %vm768_vm5, %v653_v33  ;;  %3362 = vmatmul.msk.bf16.gmra.mxu3 %vm768_vm5, %v653_v33 }
  0xe6   :  { %277 = vrot.lane.b32.xlu1 %v132_v28, %s3702_s19  ;;  %275 = vrot.lane.b32.xlu0 %v131_v1, %s3702_s19 }
  0xe7   :  { %840 = vmatmul.bf16.gmra.mxu0 %v652_v34  ;;  %978 = vmatmul.bf16.gmra.mxu2 %v652_v34 }
  0xe8   :  { %v207_v36 = vpop.permute.xlu1 %206  ;;  %v205_v38 = vpop.permute.xlu0 %204  ;;  %326 = vrot.lane.b32.xlu2 %v132_v28, %s6525_s22 }
  0xe9   :  { %v429_v18 = vsel %vm407_vm2, %v367_v40, %v205_v38  ;;  %v431_v47 = vsel %vm407_vm2, %v370_v43, %v207_v36 }
  0xea   :  { %v262_v2 = vpop.permute.xlu2 %261  ;;  %v478_v48 = vsel %vm456_vm3, %v429_v18, %v256_v3 }
  0xee   :  { %328 = vrot.lane.b32.xlu0 %v4218_v39, %s6525_s22  ;;  %177 = vrot.lane.b32.xlu1 %v131_v1, %s3701_s16 }
  0xf0   :  { %v307_v27 = vpop.permute.xlu1 %306  ;;  %v258_v50 = vpop.permute.xlu0 %257  ;;  %330 = vrot.lane.b32.xlu2 %v234_v45, %s6525_s22 }
  0xf1   :  { %v527_v29 = vsel %vm505_vm4, %v478_v48, %v307_v27  ;;  %v599_v49 = vunpack.c.l.b16 %v307_v27  ;;  %v480_v52 = vsel %vm456_vm3, %v431_v47, %v258_v50 }
  0xf2   :  { %v529_v53 = vsel %vm505_vm4, %v480_v52, %v309_v9  ;;  %v598_v54 = vunpack.c.l.b16 %v527_v29  ;;  %v162_v62 = vpop.permute.xlu2 %161  ;;  %v285_v9 = vpack.c.b16 %v3463_v8, %v3463_v8 }
  0xf3   :  { %v655_v55 = vpack.c.b16 %v601_v15, %v599_v49  ;;  %v600_v58 = vunpack.c.l.b16 %v529_v53  ;;  %v379_v15 = vsel %vm334_vm1, %v4027_v46, %v162_v62 }
  0xf5   :  { %3351 = vmatmul.msk.bf16.gmra.mxu1 %vm768_vm5, %v655_v55  ;;  %3363 = vmatmul.msk.bf16.gmra.mxu3 %vm768_vm5, %v655_v55  ;;  %v654_v59 = vpack.c.b16 %v600_v58, %v598_v54 }
  0xf6   :  { %179 = vrot.lane.b32.xlu1 %v132_v28, %s3701_s16  ;;  %332 = vrot.lane.b32.xlu0 %v285_v9, %s6525_s22  ;;  %s6548_s22 = smov 78   ;;  %s3727_s16 = smov 42  }
  0xf7   :  { %845 = vmatmul.bf16.gmra.mxu0 %v654_v59  ;;  %983 = vmatmul.bf16.gmra.mxu2 %v654_v59 }
  0xf8   :  { %v160_v60 = vpop.permute.xlu1 %159  ;;  %v158_v61 = vpop.permute.xlu0 %157  ;;  %230 = vrot.lane.b32.xlu2 %v4218_v39, %s3700_s15 }
  0xf9   :  { %v376_v5 = vsel %vm334_vm1, %v3975_v14, %v160_v60  ;;  %v373_v6 = vsel %vm334_vm1, %v3939_v57, %v158_v61 }
  0xfa   :  { %v215_v4 = vpop.permute.xlu2 %214  ;;  %v433_v12 = vsel %vm407_vm2, %v373_v6, %v209_v31 }
  0xfe   :  { %228 = vrot.lane.b32.xlu1 %v132_v28, %s3700_s15  ;;  %279 = vrot.lane.b32.xlu0 %v4218_v39, %s3702_s19  ;;  %s3730_s15 = smov 32  }
 0x100   :  { %v260_v3 = vpop.permute.xlu1 %259  ;;  %v211_v1 = vpop.permute.xlu0 %210 }
 0x101   :  { %v435_v10 = vsel %vm407_vm2, %v376_v5, %v211_v1  ;;  %v482_v11 = vsel %vm456_vm3, %v433_v12, %v260_v3 }
 0x102   :  { %v484_v21 = vsel %vm456_vm3, %v435_v10, %v262_v2  ;;  %v315_v32 = vpop.permute.xlu2 %314 }
 0x103   :  { %v607_v53 = vunpack.c.l.b16 %v315_v32 }
 0x106   :  { %281 = vrot.lane.b32.xlu1 %v234_v45, %s3702_s19  ;;  %s6550_s19 = smov 40  }
 0x108   :  { %v313_v13 = vpop.permute.xlu1 %312  ;;  %v311_v16 = vpop.permute.xlu0 %310 }
 0x109   :  { %v533_v14 = vsel %vm505_vm4, %v484_v21, %v313_v13  ;;  %v605_v17 = vunpack.c.l.b16 %v313_v13  ;;  %v531_v57 = vsel %vm505_vm4, %v482_v11, %v311_v16  ;;  %v603_v19 = vunpack.c.l.b16 %v311_v16 }
 0x10a   :  { %v890_v20 = vpop.f32.mrf.mxu1  ;;  %v602_v24 = vunpack.c.l.b16 %v531_v57  ;;  %v604_v23 = vunpack.c.l.b16 %v533_v14  ;;  %v168_v43 = vpop.permute.xlu2 %167 }
 0x10b   :  { %v657_v25 = vpack.c.b16 %v605_v17, %v603_v19 }
 0x10c   :  { %v821_v28 = vpop.f32.mrf.mxu0  ;;  %v656_v30 = vpack.c.b16 %v604_v23, %v602_v24 }
 0x10d   :  { %3352 = vmatmul.msk.bf16.gmra.mxu1 %vm768_vm5, %v657_v25  ;;  %3364 = vmatmul.msk.bf16.gmra.mxu3 %vm768_vm5, %v657_v25  ;;  %v891_v0 = vadd.f32 %v890_v20, %v821_v28  ;;  %v388_v20 = vsel %vm334_vm1, %v4073_v22, %v168_v43 }
 0x10e   :  { %850 = vmatmul.bf16.gmra.mxu0 %v656_v30  ;;  %988 = vmatmul.bf16.gmra.mxu2 %v656_v30 }
 0x110   :  { %v213_v33 = vpop.permute.xlu1 %212  ;;  %v1028_v34 = vpop.f32.mrf.mxu3 }
 0x111   :  { %v164_v31 = vpop.permute.xlu0 %163  ;;  %v437_v27 = vsel %vm407_vm2, %v379_v15, %v213_v33 }
 0x112   :  { %v959_v35 = vpop.f32.mrf.mxu2  ;;  %v892_v36 = vpop.f32.mrf.mxu1  ;;  %v382_v50 = vsel %vm334_vm1, %v4035_v44, %v164_v31 }
 0x113   :  { %v1029_v2 = vadd.f32 %v1028_v34, %v959_v35  ;;  %v439_v54 = vsel %vm407_vm2, %v382_v50, %v215_v4  ;;  %v268_v61 = vpop.permute.xlu2 %267 }
 0x114   :  { %v823_v38 = vpop.f32.mrf.mxu0 }
 0x115   :  { %v893_v40 = vadd.f32 %v892_v36, %v823_v38  ;;  %v1089_v29 = vsel %vm505_vm4, %v1029_v2, -inf }
 0x117   :  { %v4260_v41 = vmax.f32 %v891_v0, %v893_v40 }
 0x118   :  { %v266_v18 = vpop.permute.xlu1 %265  ;;  %v1030_v45 = vpop.f32.mrf.mxu3 }
 0x119   :  { %v264_v47 = vpop.permute.xlu0 %263  ;;  %1160 = vrot.lane.b32.xlu1 %v4260_v41, %s6526_s0  ;;  %v488_v59 = vsel %vm456_vm3, %v439_v54, %v266_v18 }
 0x11a   :  { %v961_v39 = vpop.f32.mrf.mxu2  ;;  %v486_v49 = vsel %vm456_vm3, %v437_v27, %v264_v47 }
 0x11b   :  { %v1031_v48 = vadd.f32 %v1030_v45, %v961_v39  ;;  %v535_v58 = vsel %vm505_vm4, %v486_v49, %v315_v32  ;;  %v321_v13 = vpop.permute.xlu2 %320 }
 0x11c   :  { %v606_v1 = vunpack.c.l.b16 %v535_v58  ;;  %v613_v23 = vunpack.c.l.b16 %v321_v13 }
 0x11d   :  { %v1090_v52 = vsel %vm505_vm4, %v1031_v48, -inf }
 0x11e   :  { %v1091_v46 = vmax.f32 %v1089_v29, %v1090_v52 }
 0x120   :  { %1162 = vrot.lane.b32.xlu2 %v1091_v46, %s6526_s0  ;;  %v166_v55 = vpop.permute.xlu1 %165 }
 0x121   :  { %v317_v60 = vpop.permute.xlu0 %316  ;;  %v385_v16 = vsel %vm334_vm1, %v4059_v63, %v166_v55 }
 0x122   :  { %v537_v44 = vsel %vm505_vm4, %v488_v59, %v317_v60  ;;  %v609_v62 = vunpack.c.l.b16 %v317_v60  ;;  %v895_v3 = vpop.f32.mrf.mxu1 }
 0x123   :  { %v608_v5 = vunpack.c.l.b16 %v537_v44  ;;  %v221_v47 = vpop.permute.xlu2 %220 }
 0x124   :  { %v826_v6 = vpop.f32.mrf.mxu0  ;;  %v659_v8 = vpack.c.b16 %v609_v62, %v607_v53 }
 0x125   :  { %v658_v10 = vpack.c.b16 %v608_v5, %v606_v1  ;;  %v896_v17 = vadd.f32 %v895_v3, %v826_v6 }
 0x126   :  { %3353 = vmatmul.msk.bf16.gmra.mxu1 %vm768_vm5, %v659_v8  ;;  %3365 = vmatmul.msk.bf16.gmra.mxu3 %vm768_vm5, %v659_v8 }
 0x127   :  { %855 = vmatmul.bf16.gmra.mxu0 %v658_v10  ;;  %993 = vmatmul.bf16.gmra.mxu2 %v658_v10 }
 0x128   :  { %v219_v4 = vpop.permute.xlu1 %218  ;;  %v1033_v9 = vpop.f32.mrf.mxu3 }
 0x129   :  { %v217_v12 = vpop.permute.xlu0 %216  ;;  %v443_v32 = vsel %vm407_vm2, %v388_v20, %v219_v4 }
 0x12a   :  { %v964_v11 = vpop.f32.mrf.mxu2  ;;  %v897_v21 = vpop.f32.mrf.mxu1  ;;  %v441_v57 = vsel %vm407_vm2, %v385_v16, %v217_v12 }
 0x12b   :  { %v490_v25 = vsel %vm456_vm3, %v441_v57, %v268_v61  ;;  %v1034_v33 = vadd.f32 %v1033_v9, %v964_v11  ;;  %v274_v58 = vpop.permute.xlu2 %273 }
 0x12c   :  { %v828_v14 = vpop.f32.mrf.mxu0 }
 0x12d   :  { %v898_v19 = vadd.f32 %v897_v21, %v828_v14  ;;  %v1093_v15 = vsel %vm505_vm4, %v1034_v33, -inf }
 0x12f   :  { %v4284_v24 = vmax.f32 %v896_v17, %v898_v19 }
 0x130   :  { %v319_v28 = vpop.permute.xlu1 %318  ;;  %v1035_v30 = vpop.f32.mrf.mxu3 }
 0x131   :  { %v539_v63 = vsel %vm505_vm4, %v490_v25, %v319_v28  ;;  %v611_v34 = vunpack.c.l.b16 %v319_v28  ;;  %v270_v31 = vpop.permute.xlu0 %269  ;;  %1164 = vrot.lane.b32.xlu2 %v4284_v24, %s6526_s0 }
 0x132   :  { %v492_v35 = vsel %vm456_vm3, %v443_v32, %v270_v31  ;;  %v966_v22 = vpop.f32.mrf.mxu2  ;;  %v900_v36 = vpop.f32.mrf.mxu1  ;;  %v610_v38 = vunpack.c.l.b16 %v539_v63 }
 0x133   :  { %v1036_v0 = vadd.f32 %v1035_v30, %v966_v22  ;;  %v661_v40 = vpack.c.b16 %v613_v23, %v611_v34  ;;  %v541_v43 = vsel %vm505_vm4, %v492_v35, %v321_v13  ;;  %v174_v16 = vpop.permute.xlu2 %173 }
 0x134   :  { %v831_v18 = vpop.f32.mrf.mxu0  ;;  %v612_v45 = vunpack.c.l.b16 %v541_v43 }
 0x135   :  { %v1094_v2 = vsel %vm505_vm4, %v1036_v0, -inf  ;;  %v901_v53 = vadd.f32 %v900_v36, %v831_v18 }
 0x136   :  { %3354 = vmatmul.msk.bf16.gmra.mxu1 %vm768_vm5, %v661_v40  ;;  %3366 = vmatmul.msk.bf16.gmra.mxu3 %vm768_vm5, %v661_v40  ;;  %v660_v39 = vpack.c.b16 %v612_v45, %v610_v38  ;;  %v1095_v48 = vmax.f32 %v1093_v15, %v1094_v2  ;;  %v397_v40 = vsel %vm334_vm1, %v4139_v7, %v174_v16 }
 0x138   :  { %998 = vmatmul.bf16.gmra.mxu2 %v660_v39  ;;  %1166 = vrot.lane.b32.xlu0 %v1095_v48, %s6526_s0  ;;  %v172_v27 = vpop.permute.xlu1 %171  ;;  %v1038_v50 = vpop.f32.mrf.mxu3 }
 0x139   :  { %860 = vmatmul.bf16.gmra.mxu0 %v660_v39  ;;  %v170_v29 = vpop.permute.xlu0 %169  ;;  %v394_v1 = vsel %vm334_vm1, %v4112_v51, %v172_v27 }
 0x13a   :  { %v969_v49 = vpop.f32.mrf.mxu2  ;;  %v902_v52 = vpop.f32.mrf.mxu1  ;;  %v391_v5 = vsel %vm334_vm1, %v4091_v37, %v170_v29 }
 0x13b   :  { %v1039_v60 = vadd.f32 %v1038_v50, %v969_v49  ;;  %v445_v9 = vsel %vm407_vm2, %v391_v5, %v221_v47  ;;  %v227_v34 = vpop.permute.xlu2 %226 }
 0x13c   :  { %v833_v46 = vpop.f32.mrf.mxu0 }
 0x13d   :  { %v903_v54 = vadd.f32 %v902_v52, %v833_v46  ;;  %v1097_v6 = vsel %vm505_vm4, %v1039_v60, -inf }
 0x13f   :  { %v4298_v55 = vmax.f32 %v901_v53, %v903_v54 }
 0x140   :  { %v272_v59 = vpop.permute.xlu1 %271  ;;  %v1040_v44 = vpop.f32.mrf.mxu3 }
 0x141   :  { %v223_v61 = vpop.permute.xlu0 %222  ;;  %1168 = vrot.lane.b32.xlu1 %v4298_v55, %s6526_s0  ;;  %v494_v21 = vsel %vm456_vm3, %v445_v9, %v272_v59 }
 0x142   :  { %v971_v62 = vpop.f32.mrf.mxu2  ;;  %v447_v8 = vsel %vm407_vm2, %v394_v1, %v223_v61 }
 0x143   :  { %v1041_v3 = vadd.f32 %v1040_v44, %v971_v62  ;;  %v496_v12 = vsel %vm456_vm3, %v447_v8, %v274_v58  ;;  %v327_v27 = vpop.permute.xlu2 %326 }
 0x144   :  { %v619_v46 = vunpack.c.l.b16 %v327_v27 }
 0x145   :  { %v1098_v10 = vsel %vm505_vm4, %v1041_v3, -inf }
 0x146   :  { %v1099_v4 = vmax.f32 %v1097_v6, %v1098_v10 }
 0x148   :  { %v325_v11 = vpop.permute.xlu1 %324  ;;  %1170 = vrot.lane.b32.xlu2 %v1099_v4, %s6526_s0 }
 0x149   :  { %v545_v51 = vsel %vm505_vm4, %v496_v12, %v325_v11  ;;  %v617_v13 = vunpack.c.l.b16 %v325_v11  ;;  %v323_v37 = vpop.permute.xlu0 %322 }
 0x14a   :  { %v543_v14 = vsel %vm505_vm4, %v494_v21, %v323_v37  ;;  %v615_v17 = vunpack.c.l.b16 %v323_v37  ;;  %v905_v57 = vpop.f32.mrf.mxu1  ;;  %v616_v19 = vunpack.c.l.b16 %v545_v51 }
 0x14b   :  { %v614_v20 = vunpack.c.l.b16 %v543_v14 }
 0x14c   :  { %v836_v23 = vpop.f32.mrf.mxu0  ;;  %v663_v25 = vpack.c.b16 %v617_v13, %v615_v17 }
 0x14d   :  { %v662_v28 = vpack.c.b16 %v616_v19, %v614_v20  ;;  %v906_v22 = vadd.f32 %v905_v57, %v836_v23  ;;  %v331_v20 = vpop.permute.xlu2 %330 }
 0x14e   :  { %3355 = vmatmul.msk.bf16.gmra.mxu1 %vm768_vm5, %v663_v25  ;;  %3367 = vmatmul.msk.bf16.gmra.mxu3 %vm768_vm5, %v663_v25 }
 0x14f   :  { %865 = vmatmul.bf16.gmra.mxu0 %v662_v28  ;;  %1003 = vmatmul.bf16.gmra.mxu2 %v662_v28 }
 0x150   :  { %v1043_v30 = vpop.f32.mrf.mxu3  ;;  %v225_v31 = vpop.permute.xlu1 %224 }
 0x151   :  { %v176_v32 = vpop.permute.xlu0 %175  ;;  %v449_v2 = vsel %vm407_vm2, %v397_v40, %v225_v31 }
 0x152   :  { %v974_v33 = vpop.f32.mrf.mxu2  ;;  %v907_v63 = vpop.f32.mrf.mxu1  ;;  %v400_v47 = vsel %vm334_vm1, %v4149_v26, %v176_v32 }
 0x153   :  { %v1044_v43 = vadd.f32 %v1043_v30, %v974_v33  ;;  %v451_v49 = vsel %vm407_vm2, %v400_v47, %v227_v34 }
 0x154   :  { %v838_v35 = vpop.f32.mrf.mxu0 }
 0x155   :  { %v908_v36 = vadd.f32 %v907_v63, %v838_v35  ;;  %v1101_v39 = vsel %vm505_vm4, %v1044_v43, -inf }
 0x157   :  { %v4317_v38 = vmax.f32 %v906_v22, %v908_v36  ;;  %v231_v22 = vpop.permute.xlu2 %230 }
 0x158   :  { %v1045_v0 = vpop.f32.mrf.mxu3  ;;  %v278_v7 = vpop.permute.xlu1 %277 }
 0x159   :  { %v276_v18 = vpop.permute.xlu0 %275  ;;  %1172 = vrot.lane.b32.xlu1 %v4317_v38, %s6526_s0  ;;  %v500_v53 = vsel %vm456_vm3, %v451_v49, %v278_v7 }
 0x15a   :  { %v976_v45 = vpop.f32.mrf.mxu2  ;;  %v498_v48 = vsel %vm456_vm3, %v449_v2, %v276_v18 }
 0x15b   :  { %v1046_v15 = vadd.f32 %v1045_v0, %v976_v45  ;;  %v547_v52 = vsel %vm505_vm4, %v498_v48, %v327_v27 }
 0x15c   :  { %v618_v60 = vunpack.c.l.b16 %v547_v52 }
 0x15d   :  { %v1102_v50 = vsel %vm505_vm4, %v1046_v15, -inf }
 0x15e   :  { %v1103_v29 = vmax.f32 %v1101_v39, %v1102_v50 }
 0x160   :  { %1174 = vrot.lane.b32.xlu2 %v1103_v29, %s6526_s0  ;;  %v178_v1 = vpop.permute.xlu1 %177  ;;  %v623_v29 = vunpack.c.l.b16 %v331_v20 }
 0x161   :  { %v329_v54 = vpop.permute.xlu0 %328  ;;  %v403_v0 = vsel %vm334_vm1, %v4170_v42, %v178_v1 }
 0x162   :  { %v549_v26 = vsel %vm505_vm4, %v500_v53, %v329_v54  ;;  %v621_v58 = vunpack.c.l.b16 %v329_v54  ;;  %v910_v59 = vpop.f32.mrf.mxu1 }
 0x163   :  { %v620_v61 = vunpack.c.l.b16 %v549_v26 }
 0x164   :  { %v841_v44 = vpop.f32.mrf.mxu0  ;;  %v665_v62 = vpack.c.b16 %v621_v58, %v619_v46 }
 0x165   :  { %v664_v3 = vpack.c.b16 %v620_v61, %v618_v60  ;;  %v911_v4 = vadd.f32 %v910_v59, %v841_v44 }
 0x166   :  { %3356 = vmatmul.msk.bf16.gmra.mxu1 %vm768_vm5, %v665_v62  ;;  %3368 = vmatmul.msk.bf16.gmra.mxu3 %vm768_vm5, %v665_v62 }
 0x167   :  { %870 = vmatmul.bf16.gmra.mxu0 %v664_v3  ;;  %1008 = vmatmul.bf16.gmra.mxu2 %v664_v3 }
 0x168   :  { %v1048_v5 = vpop.f32.mrf.mxu3  ;;  %v180_v51 = vpop.permute.xlu1 %179 }
 0x169   :  { %v333_v34 = vpop.permute.xlu0 %332  ;;  %v406_v35 = vsel %vm334_vm1, %v4183_v56, %v180_v51  ;;  %vm3099_vm1 = vcmask 326656  }
 0x16a   :  { %v979_v6 = vpop.f32.mrf.mxu2  ;;  %v912_v8 = vpop.f32.mrf.mxu1  ;;  %v455_v18 = vsel %vm407_vm2, %v406_v35, %v231_v22  ;;  %v625_v49 = vunpack.c.l.b16 %v333_v34 }
 0x16b   :  { %v1049_v21 = vadd.f32 %v1048_v5, %v979_v6 }
 0x16c   :  { %v843_v10 = vpop.f32.mrf.mxu0  ;;  %v667_v58 = vpack.c.b16 %v625_v49, %v623_v29 }
 0x16d   :  { %v913_v9 = vadd.f32 %v912_v8, %v843_v10  ;;  %v1105_v17 = vsel %vm505_vm4, %v1049_v21, -inf }
 0x16f   :  { %v4336_v12 = vmax.f32 %v911_v4, %v913_v9 }
 0x170   :  { %v1050_v11 = vpop.f32.mrf.mxu3  ;;  %v229_v25 = vpop.permute.xlu1 %228 }
 0x171   :  { %1176 = vrot.lane.b32.xlu0 %v4336_v12, %s6526_s0  ;;  %v453_v15 = vsel %vm407_vm2, %v403_v0, %v229_v25  ;;  %v280_v27 = vpop.permute.xlu0 %279  ;;  %vm3101_vm2 = vcmask 490496  }
 0x172   :  { %v981_v13 = vpop.f32.mrf.mxu2  ;;  %v915_v37 = vpop.f32.mrf.mxu1  ;;  %v502_v42 = vsel %vm456_vm3, %v453_v15, %v280_v27 }
 0x173   :  { %v1051_v16 = vadd.f32 %v1050_v11, %v981_v13  ;;  %v551_v46 = vsel %vm505_vm4, %v502_v42, %v331_v20 }
 0x174   :  { %v846_v14 = vpop.f32.mrf.mxu0  ;;  %v622_v53 = vunpack.c.l.b16 %v551_v46 }
 0x175   :  { %v1106_v57 = vsel %vm505_vm4, %v1051_v16, -inf  ;;  %v916_v33 = vadd.f32 %v915_v37, %v846_v14 }
 0x176   :  { %v1107_v19 = vmax.f32 %v1105_v17, %v1106_v57  ;;  %3357 = vmatmul.msk.bf16.gmra.mxu1 %vm768_vm5, %v667_v58  ;;  %3369 = vmatmul.msk.bf16.gmra.mxu3 %vm768_vm5, %v667_v58 }
 0x178   :  { %1178 = vrot.lane.b32.xlu1 %v1107_v19, %s6526_s0  ;;  %v1053_v23 = vpop.f32.mrf.mxu3  ;;  %v282_v47 = vpop.permute.xlu1 %281 }
 0x179   :  { %v504_v39 = vsel %vm456_vm3, %v455_v18, %v282_v47  ;;  %v4380_v18 = vld [vmem:[%s6517_s2] ss:$0 sm:$0xff]  ;;  %vm3103_vm3 = vcmask 654336  }
 0x17a   :  { %v984_v28 = vpop.f32.mrf.mxu2  ;;  %v917_v30 = vpop.f32.mrf.mxu1  ;;  %v553_v7 = vsel %vm505_vm4, %v504_v39, %v333_v34 }
 0x17b   :  { %v1054_v36 = vadd.f32 %v1053_v23, %v984_v28  ;;  %v624_v54 = vunpack.c.l.b16 %v553_v7  ;;  %v1163_v37 = vpop.permute.xlu2 %1162 }
 0x17c   :  { %v848_v32 = vpop.f32.mrf.mxu0 }
 0x17d   :  { %v918_v63 = vadd.f32 %v917_v30, %v848_v32  ;;  %v1109_v2 = vsel %vm505_vm4, %v1054_v36, -inf  ;;  %v666_v26 = vpack.c.b16 %v624_v54, %v622_v53 }
 0x17f   :  { %v4343_v31 = vmax.f32 %v916_v33, %v918_v63  ;;  %875 = vmatmul.bf16.gmra.mxu0 %v666_v26  ;;  %1013 = vmatmul.bf16.gmra.mxu2 %v666_v26 }
 0x180   :  { %v1055_v40 = vpop.f32.mrf.mxu3 }
 0x181   :  { %1180 = vrot.lane.b32.xlu0 %v4343_v31, %s6526_s0 }
 0x182   :  { %v986_v43 = vpop.f32.mrf.mxu2 }
 0x183   :  { %v1056_v45 = vadd.f32 %v1055_v40, %v986_v43 }
 0x185   :  { %v1110_v56 = vsel %vm505_vm4, %v1056_v45, -inf }
 0x186   :  { %v1111_v48 = vmax.f32 %v1109_v2, %v1110_v56 }
 0x188   :  { %1182 = vrot.lane.b32.xlu1 %v1111_v48, %s6526_s0 }
 0x18a   :  { %v920_v50 = vpop.f32.mrf.mxu1 }
 0x18b   :  { %v851_v52 = vpop.f32.mrf.mxu0  ;;  %v1165_v30 = vpop.permute.xlu2 %1164 }
 0x18c   :  { %v921_v62 = vadd.f32 %v920_v50, %v851_v52  ;;  %v1161_v36 = vpop.permute.xlu1 %1160 }
 0x18d   :  { %v1209_v45 = vsel %vm1208_vm6, %v1161_v36, %v1163_v37 }
 0x18e   :  { %v1233_v56 = vmax.f32 %v4260_v41, %v1209_v45 }
 0x190   :  { %v1058_v59 = vpop.f32.mrf.mxu3  ;;  %v1249_v50 = vadd.f32 %v4380_v18, %v1233_v56 }
 0x191   :  { %v989_v60 = vpop.f32.mrf.mxu2 }
 0x192   :  { %v922_v61 = vpop.f32.mrf.mxu1  ;;  %v1059_v5 = vadd.f32 %v1058_v59, %v989_v60  ;;  %v4395_v52 = vmax.f32 %v1249_v50, 0.0 }
 0x193   :  { %v853_v44 = vpop.f32.mrf.mxu0 }
 0x194   :  { %v923_v3 = vadd.f32 %v922_v61, %v853_v44  ;;  %v1113_v4 = vsel %vm505_vm4, %v1059_v5, -inf }
 0x196   :  { %v4362_v1 = vmax.f32 %v921_v62, %v923_v3 }
 0x198   :  { %v1060_v6 = vpop.f32.mrf.mxu3  ;;  %1184 = vrot.lane.b32.xlu2 %v4362_v1, %s6526_s0 }
 0x199   :  { %v991_v8 = vpop.f32.mrf.mxu2 }
 0x19a   :  { %v1061_v10 = vadd.f32 %v1060_v6, %v991_v8 }
 0x19c   :  { %v1114_v9 = vsel %vm505_vm4, %v1061_v10, -inf }
 0x19d   :  { %v1115_v11 = vmax.f32 %v1113_v4, %v1114_v9 }
 0x19f   :  { %1186 = vrot.lane.b32.xlu0 %v1115_v11, %s6526_s0 }
 0x1a2   :  { %v1171_v11 = vpop.permute.xlu2 %1170 }
 0x1a3   :  { %v925_v21 = vpop.f32.mrf.mxu1 }
 0x1a4   :  { %v856_v51 = vpop.f32.mrf.mxu0 }
 0x1a5   :  { %v926_v57 = vadd.f32 %v925_v21, %v856_v51 }
 0x1a9   :  { %v1063_v13 = vpop.f32.mrf.mxu3 }
 0x1aa   :  { %v994_v16 = vpop.f32.mrf.mxu2  ;;  %v1167_v23 = vpop.permute.xlu0 %1166 }
 0x1ab   :  { %v927_v14 = vpop.f32.mrf.mxu1  ;;  %v1064_v25 = vadd.f32 %v1063_v13, %v994_v16  ;;  %v1210_v33 = vsel %vm1208_vm6, %v1165_v30, %v1167_v23 }
 0x1ac   :  { %v858_v17 = vpop.f32.mrf.mxu0  ;;  %v1234_v0 = vmax.f32 %v4284_v24, %v1210_v33 }
 0x1ad   :  { %v928_v19 = vadd.f32 %v927_v14, %v858_v17  ;;  %v1117_v35 = vsel %vm505_vm4, %v1064_v25, -inf }
 0x1ae   :  { %v1250_v2 = vadd.f32 %v4380_v18, %v1234_v0 }
 0x1af   :  { %v4369_v20 = vmax.f32 %v926_v57, %v928_v19 }
 0x1b0   :  { %v4386_v39 = vmax.f32 %v1250_v2, 0.0 }
 0x1b1   :  { %v1065_v28 = vpop.f32.mrf.mxu3  ;;  %1188 = vrot.lane.b32.xlu0 %v4369_v20, %s6526_s0 }
 0x1b2   :  { %v996_v32 = vpop.f32.mrf.mxu2  ;;  %v3539_v26 = vpack.i.bf16 %v4386_v39, %v4395_v52 }
 0x1b3   :  { %v1066_v63 = vadd.f32 %v1065_v28, %v996_v32  ;;  %v930_v34 = vpop.f32.mrf.mxu1  ;;  %v1169_v10 = vpop.permute.xlu1 %1168 }
 0x1b4   :  { %v1211_v51 = vsel %vm1208_vm6, %v1169_v10, %v1171_v11  ;;  %v2230_v11 = vld [vmem:[%s6518_s3 + $0x20] sm:$0xff] }
 0x1b5   :  { %v1118_v22 = vsel %vm505_vm4, %v1066_v63, -inf  ;;  %v1235_v14 = vmax.f32 %v4298_v55, %v1211_v51  ;;  %v2228_v51 = vld [vmem:[%s6518_s3 + $0x10] sm:$0xff] }
 0x1b6   :  { %v861_v40 = vpop.f32.mrf.mxu0  ;;  %v1119_v43 = vmax.f32 %v1117_v35, %v1118_v22 }
 0x1b7   :  { %v931_v27 = vadd.f32 %v930_v34, %v861_v40  ;;  %v1251_v57 = vadd.f32 %v4380_v18, %v1235_v14  ;;  %v2226_v14 = vld [vmem:[%s6518_s3] sm:$0xff] }
 0x1b8   :  { %1190 = vrot.lane.b32.xlu1 %v1119_v43, %s6526_s0 }
 0x1b9   :  { %v1068_v15 = vpop.f32.mrf.mxu3  ;;  %v4416_v25 = vmax.f32 %v1251_v57, 0.0 }
 0x1ba   :  { %v1175_v40 = vpop.permute.xlu2 %1174 }
 0x1bb   :  { %v999_v47 = vpop.f32.mrf.mxu2  ;;  %v932_v24 = vpop.f32.mrf.mxu1 }
 0x1bc   :  { %v1069_v29 = vadd.f32 %v1068_v15, %v999_v47 }
 0x1be   :  { %v863_v48 = vpop.f32.mrf.mxu0  ;;  %v1121_v53 = vsel %vm505_vm4, %v1069_v29, -inf }
 0x1bf   :  { %v933_v42 = vadd.f32 %v932_v24, %v863_v48  ;;  %v3549_v48 = vpack.i.bf16 %v4416_v25, %v4386_v39 }
 0x1c0   :  { %1441 = vrot.lane.b32.xlu1 %v4386_v39, %s6550_s19 }
 0x1c1   :  { %v4391_v7 = vmax.f32 %v931_v27, %v933_v42  ;;  %v1070_v49 = vpop.f32.mrf.mxu3 }
 0x1c3   :  { %1192 = vrot.lane.b32.xlu2 %v4391_v7, %s6526_s0  ;;  %v1001_v41 = vpop.f32.mrf.mxu2 }
 0x1c4   :  { %v1071_v46 = vadd.f32 %v1070_v49, %v1001_v41 }
 0x1c6   :  { %v1122_v54 = vsel %vm505_vm4, %v1071_v46, -inf  ;;  %v2241_v46 = vld [vmem:[%s6518_s3 + $0x78] sm:$0xff] }
 0x1c7   :  { %v1123_v58 = vmax.f32 %v1121_v53, %v1122_v54  ;;  %2459 = vmatpush.msrb.mxu1 %v2241_v46  ;;  %3466 = vmatpush.msrb.mxu2 %v2241_v46  ;;  %v2240_v53 = vld [vmem:[%s6518_s3 + $0x70] sm:$0xff]  ;;  %v2239_v54 = vld [vmem:[%s6518_s3 + $0x68] sm:$0xff] }
 0x1c8   :  { %3540 = vrot.lane.b32.xlu1 %v3539_v26, %s6544_s12 }
 0x1c9   :  { %1194 = vrot.lane.b32.xlu0 %v1123_v58, %s6526_s0  ;;  %2460 = vmatpush.msrb.mxu1 %v2240_v53 }
 0x1ca   :  { %3467 = vmatpush.msrb.mxu2 %v2240_v53 }
 0x1cb   :  { %v935_v59 = vpop.f32.mrf.mxu1  ;;  %v1173_v35 = vpop.permute.xlu1 %1172  ;;  %2461 = vmatpush.msrb.mxu1 %v2239_v54 }
 0x1cc   :  { %v866_v60 = vpop.f32.mrf.mxu0  ;;  %v1212_v45 = vsel %vm1208_vm6, %v1173_v35, %v1175_v40  ;;  %3468 = vmatpush.msrb.mxu2 %v2239_v54 }
 0x1cd   :  { %v936_v5 = vadd.f32 %v935_v59, %v866_v60  ;;  %v1236_v56 = vmax.f32 %v4317_v38, %v1212_v45  ;;  %v2237_v59 = vld [vmem:[%s6518_s3 + $0x58] sm:$0xff]  ;;  %v2236_v60 = vld [vmem:[%s6518_s3 + $0x50] sm:$0xff] }
 0x1cf   :  { %v1252_v24 = vadd.f32 %v4380_v18, %v1236_v56 }
 0x1d1   :  { %v1073_v61 = vpop.f32.mrf.mxu3  ;;  %3535 = vrot.lane.b32.xlu0 %v3539_v26, %s6546_s13  ;;  %v4441_v27 = vmax.f32 %v1252_v24, 0.0 }
 0x1d2   :  { %v1004_v44 = vpop.f32.mrf.mxu2 }
 0x1d3   :  { %v937_v62 = vpop.f32.mrf.mxu1  ;;  %v1074_v4 = vadd.f32 %v1073_v61, %v1004_v44  ;;  %6587 = vst [vmem:[#allocation2_spill] sm:$0xff] %v4441_v27  ;;  %v2235_v44 = vld [vmem:[%s6518_s3 + $0x48] sm:$0xff] }
 0x1d4   :  { %v868_v3 = vpop.f32.mrf.mxu0 }
 0x1d5   :  { %v938_v6 = vadd.f32 %v937_v62, %v868_v3  ;;  %v1125_v37 = vsel %vm505_vm4, %v1074_v4, -inf  ;;  %v2234_v62 = vld [vmem:[%s6518_s3 + $0x40] sm:$0xff]  ;;  %v2231_v4 = vld [vmem:[%s6518_s3 + $0x28] sm:$0xff] }
 0x1d7   :  { %v4404_v8 = vmax.f32 %v936_v5, %v938_v6  ;;  %v2233_v5 = vld [vmem:[%s6518_s3 + $0x38] sm:$0xff]  ;;  %v2232_v6 = vld [vmem:[%s6518_s3 + $0x30] sm:$0xff] }
 0x1d9   :  { %v1075_v9 = vpop.f32.mrf.mxu3  ;;  %1196 = vrot.lane.b32.xlu2 %v4404_v8, %s6526_s0 }
 0x1da   :  { %v1006_v21 = vpop.f32.mrf.mxu2 }
 0x1db   :  { %v1076_v13 = vadd.f32 %v1075_v9, %v1006_v21  ;;  %v2229_v21 = vld [vmem:[%s6518_s3 + $0x18] sm:$0xff] }
 0x1dd   :  { %v1126_v16 = vsel %vm505_vm4, %v1076_v13, -inf }
 0x1de   :  { %v1127_v17 = vmax.f32 %v1125_v37, %v1126_v16  ;;  %v2227_v37 = vld [vmem:[%s6518_s3 + $0x8] sm:$0xff] }
 0x1e0   :  { %1198 = vrot.lane.b32.xlu0 %v1127_v17, %s6526_s0 }
 0x1e1   :  { %1281 = vrot.lane.b32.xlu2 %v4386_v39, %s6581_s14 }
 0x1e3   :  { %v940_v19 = vpop.f32.mrf.mxu1  ;;  %v1177_v42 = vpop.permute.xlu0 %1176 }
 0x1e4   :  { %v871_v23 = vpop.f32.mrf.mxu0 }
 0x1e5   :  { %v941_v33 = vadd.f32 %v940_v19, %v871_v23 }
 0x1e8   :  { %1306 = vrot.lane.b32.xlu0 %v4416_v25, %s6556_s17 }
 0x1e9   :  { %v1078_v28 = vpop.f32.mrf.mxu3  ;;  %1593 = vrot.lane.b32.xlu2 %v4386_v39, %s3710_s18 }
 0x1ea   :  { %v1009_v55 = vpop.f32.mrf.mxu2  ;;  %v1179_v38 = vpop.permute.xlu1 %1178 }
 0x1eb   :  { %v942_v30 = vpop.f32.mrf.mxu1  ;;  %v1079_v22 = vadd.f32 %v1078_v28, %v1009_v55  ;;  %v1213_v50 = vsel %vm1208_vm6, %v1177_v42, %v1179_v38 }
 0x1ec   :  { %v873_v32 = vpop.f32.mrf.mxu0  ;;  %v1237_v29 = vmax.f32 %v4336_v12, %v1213_v50 }
 0x1ed   :  { %v943_v63 = vadd.f32 %v942_v30, %v873_v32  ;;  %v1129_v15 = vsel %vm505_vm4, %v1079_v22, -inf }
 0x1ee   :  { %v1253_v49 = vadd.f32 %v4380_v18, %v1237_v29 }
 0x1ef   :  { %v4422_v34 = vmax.f32 %v941_v33, %v943_v63 }
 0x1f0   :  { %1465 = vrot.lane.b32.xlu0 %v4416_v25, %s6534_s20  ;;  %v4469_v41 = vmax.f32 %v1253_v49, 0.0 }
 0x1f1   :  { %v1080_v36 = vpop.f32.mrf.mxu3  ;;  %3545 = vrot.lane.b32.xlu2 %v3539_v26, %s6528_s21  ;;  %1200 = vrot.lane.b32.xlu1 %v4422_v34, %s6526_s0  ;;  %v2238_v26 = vld [vmem:[%s6518_s3 + $0x60] sm:$0xff]  ;;  %s6538_s21 = smov 58  }
 0x1f2   :  { %v1011_v0 = vpop.f32.mrf.mxu2  ;;  %v3559_v12 = vpack.i.bf16 %v4469_v41, %v4395_v52  ;;  %v4490_v58 = vpop.permute.xlu2 %1184  ;;  %2462 = vmatpush.msrb.mxu1 %v2238_v26  ;;  %3469 = vmatpush.msrb.mxu2 %v2238_v26 }
 0x1f3   :  { %v1081_v43 = vadd.f32 %v1080_v36, %v1011_v0  ;;  %v1181_v61 = vpop.permute.xlu0 %1180 }
 0x1f4   :  { %2463 = vmatpush.msrb.mxu1 %v2237_v59  ;;  %3470 = vmatpush.msrb.mxu2 %v2237_v59  ;;  %v2257_v59 = vld [vmem:[%s6518_s3 + $0xf8] sm:$0x3] }
 0x1f5   :  { %v1130_v2 = vsel %vm505_vm4, %v1081_v43, -inf  ;;  %3370 = vmatpush.msk.msrb.mxu0 %vm2455_vm9, %v2257_v59  ;;  %3482 = vmatpush.msk.msrb.mxu3 %vm2455_vm9, %v2257_v59 }
 0x1f6   :  { %v1131_v47 = vmax.f32 %v1129_v15, %v1130_v2  ;;  %2464 = vmatpush.msrb.mxu1 %v2236_v60  ;;  %3471 = vmatpush.msrb.mxu2 %v2236_v60  ;;  %v2256_v60 = vld [vmem:[%s6518_s3 + $0xf0] sm:$0xff] }
 0x1f7   :  { %2669 = vmatpush.msrb.mxu0 %v2256_v60  ;;  %3483 = vmatpush.msrb.mxu3 %v2256_v60 }
 0x1f8   :  { %1617 = vrot.lane.b32.xlu0 %v4416_v25, %s6536_s23  ;;  %2465 = vmatpush.msrb.mxu1 %v2235_v44 }
 0x1f9   :  { %1202 = vrot.lane.b32.xlu2 %v1131_v47, %s6526_s0  ;;  %1769 = vrot.lane.b32.xlu1 %v4416_v25, %s6554_s24  ;;  %s6558_s0 = smov 10  }
 0x1fa   :  { %2466 = vmatpush.msrb.mxu1 %v2234_v62  ;;  %3472 = vmatpush.msrb.mxu2 %v2235_v44  ;;  %v1183_v16 = vpop.permute.xlu1 %1182  ;;  %v2255_v44 = vld [vmem:[%s6518_s3 + $0xe8] sm:$0xff] }
 0x1fb   :  { %v1214_v57 = vsel %vm1208_vm6, %v1181_v61, %v1183_v16  ;;  %2670 = vmatpush.msrb.mxu0 %v2255_v44  ;;  %3484 = vmatpush.msrb.mxu3 %v2255_v44 }
 0x1fc   :  { %2467 = vmatpush.msrb.mxu1 %v2233_v5  ;;  %3473 = vmatpush.msrb.mxu2 %v2234_v62  ;;  %v1238_v19 = vmax.f32 %v4343_v31, %v1214_v57 }
 0x1fe   :  { %2468 = vmatpush.msrb.mxu1 %v2232_v6  ;;  %3474 = vmatpush.msrb.mxu2 %v2233_v5  ;;  %v1254_v28 = vadd.f32 %v4380_v18, %v1238_v19 }
 0x200   :  { %3550 = vrot.lane.b32.xlu0 %v3549_v48, %s6530_s25  ;;  %2469 = vmatpush.msrb.mxu1 %v2231_v4  ;;  %s3728_s25 = smov 62   ;;  %v4560_v31 = vmax.f32 %v1254_v28, 0.0  ;;  %v2250_v28 = vld [vmem:[%s6518_s3 + $0xc0] sm:$0xff] }
 0x201   :  { %1331 = vrot.lane.b32.xlu2 %v4441_v27, %s3716_s26  ;;  %1921 = vrot.lane.b32.xlu1 %v4416_v25, %s6552_s27 }
 0x202   :  { %2470 = vmatpush.msrb.mxu1 %v2230_v11  ;;  %3475 = vmatpush.msrb.mxu2 %v2232_v6  ;;  %v3574_v0 = vpack.i.bf16 %v4560_v31, %v4386_v39  ;;  %v4605_v24 = vpack.i.bf16 %v4416_v25, %v4560_v31 }
 0x204   :  { %2471 = vmatpush.msrb.mxu1 %v2229_v21  ;;  %3476 = vmatpush.msrb.mxu2 %v2231_v4 }
 0x206   :  { %2472 = vmatpush.msrb.mxu1 %v2228_v51  ;;  %3477 = vmatpush.msrb.mxu2 %v2230_v11  ;;  %v2254_v11 = vld [vmem:[%s6518_s3 + $0xe0] sm:$0xff] }
 0x207   :  { %2671 = vmatpush.msrb.mxu0 %v2254_v11  ;;  %3485 = vmatpush.msrb.mxu3 %v2254_v11 }
 0x208   :  { %1793 = vrot.lane.b32.xlu0 %v4441_v27, %s6532_s1  ;;  %2473 = vmatpush.msrb.mxu1 %v2227_v37  ;;  %s3729_s1 = smov 52  }
 0x209   :  { %1489 = vrot.lane.b32.xlu2 %v4441_v27, %s6579_s28  ;;  %1283 = vrot.lane.b32.xlu1 %v4416_v25, %s6581_s14 }
 0x20a   :  { %2474 = vmatpush.msrb.mxu1 %v2226_v14  ;;  %3478 = vmatpush.msrb.mxu2 %v2229_v21  ;;  %v2253_v21 = vld [vmem:[%s6518_s3 + $0xd8] sm:$0xff] }
 0x20b   :  { %2672 = vmatpush.msrb.mxu0 %v2253_v21  ;;  %3486 = vmatpush.msrb.mxu3 %v2253_v21 }
 0x20c   :  { %3479 = vmatpush.msrb.mxu2 %v2228_v51 }
 0x20e   :  { %3480 = vmatpush.msrb.mxu2 %v2227_v37 }
 0x210   :  { %1945 = vrot.lane.b32.xlu0 %v4441_v27, %s3720_s29  ;;  %3481 = vmatpush.msrb.mxu2 %v2226_v14  ;;  %v2251_v14 = vld [vmem:[%s6518_s3 + $0xc8] sm:$0xff] }
 0x211   :  { %1641 = vrot.lane.b32.xlu2 %v4441_v27, %s3721_s30  ;;  %1443 = vrot.lane.b32.xlu1 %v4416_v25, %s6550_s19  ;;  %v1187_v10 = vpop.permute.xlu0 %1186 }
 0x212   :  { %v1215_v36 = vsel %vm1208_vm6, %v4490_v58, %v1187_v10 }
 0x213   :  { %v1239_v40 = vmax.f32 %v4362_v1, %v1215_v36 }
 0x215   :  { %v1255_v15 = vadd.f32 %v4380_v18, %v1239_v40 }
 0x217   :  { %v4607_v48 = vmax.f32 %v1255_v15, 0.0  ;;  %v2245_v15 = vld [vmem:[%s6518_s3 + $0x98] sm:$0xff] }
 0x218   :  { %1597 = vrot.lane.b32.xlu0 %v4441_v27, %s3710_s18 }
 0x219   :  { %1771 = vrot.lane.b32.xlu2 %v4441_v27, %s6554_s24  ;;  %1595 = vrot.lane.b32.xlu1 %v4416_v25, %s3710_s18 }
 0x21d   :  { %v4509_v3 = vpop.permute.xlu2 %1192 }
 0x220   :  { %3560 = vrot.lane.b32.xlu0 %v3559_v12, %s6548_s22 }
 0x221   :  { %1923 = vrot.lane.b32.xlu2 %v4441_v27, %s6552_s27  ;;  %1308 = vrot.lane.b32.xlu1 %v4441_v27, %s6556_s17 }
 0x223   :  { %v4535_v13 = vpop.permute.xlu0 %1188 }
 0x228   :  { %3565 = vrot.lane.b32.xlu0 %v3559_v12, %s6540_s10 }
 0x229   :  { %1445 = vrot.lane.b32.xlu2 %v4441_v27, %s6550_s19  ;;  %1467 = vrot.lane.b32.xlu1 %v4441_v27, %s6534_s20  ;;  %s6542_s20 = smov 88  }
 0x22a   :  { %v1191_v30 = vpop.permute.xlu1 %1190 }
 0x22b   :  { %v1216_v58 = vsel %vm1208_vm6, %v4535_v13, %v1191_v30  ;;  %v2252_v13 = vld [vmem:[%s6518_s3 + $0xd0] sm:$0xff] }
 0x22c   :  { %v1240_v61 = vmax.f32 %v4369_v20, %v1216_v58  ;;  %2673 = vmatpush.msrb.mxu0 %v2252_v13  ;;  %3487 = vmatpush.msrb.mxu3 %v2252_v13  ;;  %v2248_v30 = vld [vmem:[%s6518_s3 + $0xb0] sm:$0xff] }
 0x22e   :  { %v1256_v20 = vadd.f32 %v4380_v18, %v1240_v61  ;;  %2674 = vmatpush.msrb.mxu0 %v2251_v14  ;;  %3488 = vmatpush.msrb.mxu3 %v2251_v14 }
 0x230   :  { %3570 = vrot.lane.b32.xlu0 %v3559_v12, %s6538_s21  ;;  %v4678_v16 = vmax.f32 %v1256_v20, 0.0  ;;  %2675 = vmatpush.msrb.mxu0 %v2250_v28  ;;  %v4766_v20 = vpack.i.bf16 %v4441_v27, %v4607_v48 }
 0x231   :  { %3555 = vrot.lane.b32.xlu2 %v3559_v12, %s6542_s20  ;;  %1619 = vrot.lane.b32.xlu1 %v4441_v27, %s6536_s23  ;;  %s3726_s23 = smov 72  }
 0x232   :  { %v1442_v63 = vpop.permute.xlu1 %1441  ;;  %3489 = vmatpush.msrb.mxu3 %v2250_v28 }
 0x233   :  { %v4524_v9 = vpop.permute.xlu2 %1196 }
 0x238   :  { %1356 = vrot.lane.b32.xlu0 %v4469_v41, %s3726_s23 }
 0x239   :  { %1817 = vrot.lane.b32.xlu2 %v4469_v41, %s3727_s16  ;;  %1285 = vrot.lane.b32.xlu1 %v4441_v27, %s6581_s14 }
 0x23a   :  { %v4596_v2 = vpop.permute.xlu1 %3540 }
 0x23b   :  { %v1282_v17 = vpop.permute.xlu2 %1281  ;;  %v4551_v23 = vpop.permute.xlu0 %1194  ;;  %v3542_v49 = vunpack.i.l.bf16 %v4596_v2 }
 0x23c   :  { %v1381_v43 = vsel %vm1380_vm7, %v4395_v52, %v1282_v17  ;;  %v1217_v59 = vsel %vm1208_vm6, %v4509_v3, %v4551_v23 }
 0x23d   :  { %v1241_v44 = vmax.f32 %v4391_v7, %v1217_v59 }
 0x23f   :  { %v1257_v3 = vadd.f32 %v4380_v18, %v1241_v44 }
 0x240   :  { %1513 = vrot.lane.b32.xlu0 %v4469_v41, %s3728_s25 }
 0x241   :  { %1333 = vrot.lane.b32.xlu2 %v4469_v41, %s3716_s26  ;;  %1665 = vrot.lane.b32.xlu1 %v4469_v41, %s3729_s1 }
 0x243   :  { %v1594_v55 = vpop.permute.xlu2 %1593  ;;  %v4568_v32 = vpop.permute.xlu0 %3535 }
 0x244   :  { %v3537_v56 = vunpack.i.l.bf16 %v4568_v32  ;;  %v1689_v46 = vsel %vm1380_vm7, %v3542_v49, %v1594_v55  ;;  %v2249_v55 = vld [vmem:[%s6518_s3 + $0xb8] sm:$0xff] }
 0x245   :  { %2676 = vmatpush.msrb.mxu0 %v2249_v55  ;;  %3490 = vmatpush.msrb.mxu3 %v2249_v55 }
 0x246   :  { %v1537_v38 = vsel %vm1380_vm7, %v3537_v56, %v1442_v63  ;;  %v2247_v63 = vld [vmem:[%s6518_s3 + $0xa8] sm:$0xff]  ;;  %v4730_v56 = vpack.i.bf16 %v4607_v48, %v4416_v25 }
 0x247   :  { %2677 = vmatpush.msrb.mxu0 %v2248_v30  ;;  %3491 = vmatpush.msrb.mxu3 %v2248_v30 }
 0x248   :  { %1491 = vrot.lane.b32.xlu0 %v4469_v41, %s6579_s28 }
 0x249   :  { %1449 = vrot.lane.b32.xlu2 %v4560_v31, %s6550_s19  ;;  %1969 = vrot.lane.b32.xlu1 %v4469_v41, %s3730_s15 }
 0x24a   :  { %2678 = vmatpush.msrb.mxu0 %v2247_v63  ;;  %3492 = vmatpush.msrb.mxu3 %v2247_v63 }
 0x24b   :  { %v4570_v33 = vpop.permute.xlu2 %3545 }
 0x24c   :  { %v3547_v5 = vunpack.i.l.bf16 %v4570_v33 }
 0x250   :  { %1643 = vrot.lane.b32.xlu0 %v4469_v41, %s3721_s30 }
 0x251   :  { %1601 = vrot.lane.b32.xlu2 %v4560_v31, %s3710_s18  ;;  %1927 = vrot.lane.b32.xlu1 %v4560_v31, %s6552_s27 }
 0x252   :  { %v4578_v35 = vpop.permute.xlu0 %1198 }
 0x253   :  { %v4580_v22 = vpop.permute.xlu2 %1202 }
 0x258   :  { %3575 = vrot.lane.b32.xlu0 %v3574_v0, %s6558_s0 }
 0x259   :  { %3605 = vrot.lane.b32.xlu2 %v3574_v0, %s6538_s21  ;;  %1289 = vrot.lane.b32.xlu1 %v4560_v31, %s6581_s14  ;;  %s6607_s21 = smov 108  }
 0x25a   :  { %v4593_v45 = vpop.permute.xlu0 %1306 }
 0x25b   :  { %v4598_v1 = vpop.permute.xlu2 %1331  ;;  %v1390_v47 = vsel %vm1389_vm8, %v1381_v43, %v4593_v45  ;;  %v2246_v43 = vld [vmem:[%s6518_s3 + $0xa0] sm:$0xff] }
 0x25c   :  { %2475 = vmatmul.f32.vlgmr.msrb.gmra.mxu1 %v1390_v47  ;;  %2679 = vmatpush.msrb.mxu0 %v2246_v43  ;;  %v2244_v47 = vld [vmem:[%s6518_s3 + $0x90] sm:$0xff]  ;;  %v1399_v13 = vsel %vm1398_vm10, %v4593_v45, %v4598_v1 }
 0x25d   :  { %3493 = vmatpush.msrb.mxu3 %v2246_v43 }
 0x25e   :  { %2680 = vmatpush.msrb.mxu0 %v2245_v15 }
 0x25f   :  { %3494 = vmatpush.msrb.mxu3 %v2245_v15 }
 0x260   :  { %3580 = vrot.lane.b32.xlu0 %v4605_v24, %s6546_s13  ;;  %2681 = vmatpush.msrb.mxu0 %v2244_v47  ;;  %s6603_s13 = smov 60  }
 0x261   :  { %1951 = vrot.lane.b32.xlu2 %v4607_v48, %s3720_s29  ;;  %3585 = vrot.lane.b32.xlu1 %v4605_v24, %s6544_s12  ;;  %s6589_s12 = smov 90  }
 0x262   :  { %v4615_v52 = vpop.permute.xlu0 %1465  ;;  %3495 = vmatpush.msrb.mxu3 %v2244_v47 }
 0x263   :  { %v4618_v42 = vpop.permute.xlu2 %1489  ;;  %v4620_v50 = vpop.permute.xlu1 %1200  ;;  %v1545_v29 = vsel %vm1389_vm8, %v1537_v38, %v4615_v52  ;;  %v2243_v38 = vld [vmem:[%s6518_s3 + $0x88] sm:$0xff] }
 0x264   :  { %2478 = vmatmul.f32.gmra.mxu1 %v1545_v29  ;;  %2682 = vmatpush.msrb.mxu0 %v2243_v38  ;;  %v1553_v45 = vsel %vm1398_vm10, %v4615_v52, %v4618_v42 }
 0x265   :  { %3496 = vmatpush.msrb.mxu3 %v2243_v38 }
 0x268   :  { %3590 = vrot.lane.b32.xlu0 %v3574_v0, %s6542_s20  ;;  %s6604_s20 = smov 118  }
 0x269   :  { %1314 = vrot.lane.b32.xlu2 %v4607_v48, %s6556_s17  ;;  %3600 = vrot.lane.b32.xlu1 %v3574_v0, %s6540_s10  ;;  %s6592_s10 = smov 120  }
 0x26a   :  { %v4630_v12 = vpop.permute.xlu0 %1617 }
 0x26b   :  { %v4632_v53 = vpop.permute.xlu2 %1641  ;;  %v4634_v54 = vpop.permute.xlu1 %1769  ;;  %v1697_v26 = vsel %vm1389_vm8, %v1689_v46, %v4630_v12 }
 0x26c   :  { %2481 = vmatmul.f32.gmra.mxu1 %v1697_v26  ;;  %v2242_v26 = vld [vmem:[%s6518_s3 + $0x80] sm:$0xff]  ;;  %s6593_s3 = smov 20  }
 0x26d   :  { %2683 = vmatpush.msrb.mxu0 %v2242_v26  ;;  %3497 = vmatpush.msrb.mxu3 %v2242_v26 }
 0x270   :  { %3595 = vrot.lane.b32.xlu0 %v3574_v0, %s6548_s22  ;;  %s6605_s22 = smov 40  }
 0x271   :  { %1451 = vrot.lane.b32.xlu2 %v4607_v48, %s6550_s19  ;;  %1777 = vrot.lane.b32.xlu1 %v4607_v48, %s6554_s24  ;;  %s6591_s19 = smov 80   ;;  %s6609_s24 = smov 88  }
 0x272   :  { %v4657_v62 = vpop.permute.xlu0 %3550 }
 0x273   :  { %v3552_v6 = vunpack.i.l.bf16 %v4657_v62  ;;  %v4662_v10 = vpop.permute.xlu2 %1771  ;;  %v4664_v4 = vpop.permute.xlu1 %1921 }
 0x274   :  { %6588 = vst [vmem:[#allocation3_spill] sm:$0xff] %v4662_v10 }
 0x275   :  { %v1841_v51 = vsel %vm1380_vm7, %v3547_v5, %v3552_v6  ;;  %v4781_v6 = vmax.f32 %v1257_v3, 0.0 }
 0x276   :  { %v1849_v37 = vsel %vm1389_vm8, %v1841_v51, %v4634_v54 }
 0x277   :  { %2484 = vmatmul.f32.gmra.mxu1 %v1849_v37 }
 0x278   :  { %1473 = vrot.lane.b32.xlu0 %v4607_v48, %s6589_s12 }
 0x279   :  { %1975 = vrot.lane.b32.xlu2 %v4678_v16, %s3730_s15  ;;  %1929 = vrot.lane.b32.xlu1 %v4607_v48, %s6552_s27  ;;  %s6596_s27 = smov 98  }
 0x27a   :  { %v4689_v17 = vpop.permute.xlu0 %1793 }
 0x27b   :  { %v4691_v57 = vpop.permute.xlu2 %1923  ;;  %v4693_v19 = vpop.permute.xlu1 %1283 }
 0x27c   :  { %6590 = vst [vmem:[#allocation4_spill] sm:$0xff] %v4691_v57 }
 0x280   :  { %1625 = vrot.lane.b32.xlu0 %v4607_v48, %s6591_s19 }
 0x281   :  { %1801 = vrot.lane.b32.xlu2 %v4678_v16, %s6592_s10  ;;  %1291 = vrot.lane.b32.xlu1 %v4607_v48, %s6581_s14 }
 0x282   :  { %v4713_v36 = vpop.permute.xlu0 %1945 }
 0x283   :  { %v4715_v0 = vpop.permute.xlu2 %1445  ;;  %v4717_v40 = vpop.permute.xlu1 %1443 }
 0x288   :  { %1603 = vrot.lane.b32.xlu0 %v4607_v48, %s3710_s18 }
 0x289   :  { %1953 = vrot.lane.b32.xlu2 %v4678_v16, %s3720_s29  ;;  %3610 = vrot.lane.b32.xlu1 %v4730_v56, %s6558_s0 }
 0x28a   :  { %v4741_v29 = vpop.permute.xlu0 %1597 }
 0x28b   :  { %v4743_v49 = vpop.permute.xlu2 %3555  ;;  %v4745_v46 = vpop.permute.xlu1 %1595 }
 0x290   :  { %1339 = vrot.lane.b32.xlu0 %v4678_v16, %s3716_s26 }
 0x291   :  { %1316 = vrot.lane.b32.xlu2 %v4678_v16, %s6556_s17  ;;  %1497 = vrot.lane.b32.xlu1 %v4678_v16, %s6579_s28 }
 0x292   :  { %v4756_v58 = vpop.permute.xlu0 %3560 }
 0x293   :  { %v1818_v60 = vpop.permute.xlu2 %1817  ;;  %v4761_v61 = vpop.permute.xlu1 %1308 }
 0x298   :  { %1475 = vrot.lane.b32.xlu0 %v4678_v16, %s6589_s12 }
 0x299   :  { %3620 = vrot.lane.b32.xlu2 %v4766_v20, %s6593_s3  ;;  %1649 = vrot.lane.b32.xlu1 %v4678_v16, %s3721_s30 }
 0x29a   :  { %v4775_v23 = vpop.permute.xlu0 %3565 }
 0x29b   :  { %v4777_v5 = vpop.permute.xlu2 %1333  ;;  %v4779_v7 = vpop.permute.xlu1 %1467 }
 0x2a0   :  { %1825 = vrot.lane.b32.xlu0 %v4781_v6, %s3727_s16 }
 0x2a1   :  { %1364 = vrot.lane.b32.xlu2 %v4781_v6, %s3726_s23  ;;  %1627 = vrot.lane.b32.xlu1 %v4678_v16, %s6591_s19 }
 0x2a2   :  { %v4789_v11 = vpop.permute.xlu0 %3570 }
 0x2a3   :  { %v4791_v21 = vpop.permute.xlu2 %1449  ;;  %v4793_v51 = vpop.permute.xlu1 %1619 }
 0x2a4   :  { %6594 = vst [vmem:[#allocation5_spill] sm:$0xff] %v4791_v21 }
 0x2a5   :  { %6595 = vst [vmem:[#allocation6_spill] sm:$0xff] %v4793_v51 }
 0x2a8   :  { %1977 = vrot.lane.b32.xlu0 %v4781_v6, %s3730_s15 }
 0x2a9   :  { %1521 = vrot.lane.b32.xlu2 %v4781_v6, %s3728_s25  ;;  %3615 = vrot.lane.b32.xlu1 %v4605_v24, %s6596_s27  ;;  %v1218_v24 = vsel %vm1208_vm6, %v4524_v9, %v4578_v35  ;;  %v1705_v35 = vsel %vm1398_vm10, %v4630_v12, %v4632_v53 }
 0x2aa   :  { %v1357_v37 = vpop.permute.xlu0 %1356  ;;  %v1242_v15 = vmax.f32 %v4404_v8, %v1218_v24  ;;  %v2074_v24 = vsel %vm1398_vm10, %v4693_v19, %v4761_v61 }
 0x2ab   :  { %v1408_v14 = vsel %vm1407_vm12, %v1399_v13, %v1357_v37  ;;  %v4805_v28 = vpop.permute.xlu2 %1601  ;;  %v4807_v55 = vpop.permute.xlu1 %1285 }
 0x2ac   :  { %6597 = vst [vmem:[#allocation7_spill] sm:$0xff] %v4805_v28  ;;  %3371 = vmatmul.msk.f32.vlgmr.msrb.gmra.mxu0 %vm2262_vm11, %v1408_v14  ;;  %v1258_v9 = vadd.f32 %v4380_v18, %v1242_v15  ;;  %v1857_v18 = vsel %vm1398_vm10, %v4634_v54, %v4689_v17  ;;  %v2009_v54 = vsel %vm1398_vm10, %v4664_v4, %v4713_v36  ;;  %v3562_v36 = vunpack.i.l.bf16 %v4756_v58 }
 0x2ad   :  { %v1865_v53 = vsel %vm1407_vm12, %v1857_v18, %v1818_v60  ;;  %v3557_v60 = vunpack.i.l.bf16 %v4743_v49  ;;  %v2082_v15 = vsel %vm1407_vm12, %v2074_v24, %v4777_v5  ;;  %v2210_v24 = vsel %vm1398_vm10, %v4745_v46, %v4793_v51 }
 0x2ae   :  { %v4841_v38 = vmax.f32 %v1258_v9, 0.0  ;;  %v2058_v9 = vsel %vm1380_vm7, %v3562_v36, %v4386_v39 }
 0x2b0   :  { %1341 = vrot.lane.b32.xlu0 %v4781_v6, %s3716_s26 }
 0x2b1   :  { %1673 = vrot.lane.b32.xlu2 %v4781_v6, %s3729_s1  ;;  %1499 = vrot.lane.b32.xlu1 %v4781_v6, %s6579_s28 }
 0x2b2   :  { %v1514_v1 = vpop.permute.xlu0 %1513 }
 0x2b3   :  { %v1561_v30 = vsel %vm1407_vm12, %v1553_v45, %v1514_v1  ;;  %v4823_v63 = vpop.permute.xlu2 %3605  ;;  %v1666_v43 = vpop.permute.xlu1 %1665 }
 0x2b4   :  { %6598 = vst [vmem:[#allocation8_spill] sm:$0xff] %v4823_v63  ;;  %3372 = vmatmul.msk.f32.gmra.mxu0 %vm2262_vm11, %v1561_v30  ;;  %v1713_v42 = vsel %vm1407_vm12, %v1705_v35, %v1666_v43 }
 0x2b8   :  { %1779 = vrot.lane.b32.xlu0 %v4678_v16, %s6599_s11 }
 0x2b9   :  { %1651 = vrot.lane.b32.xlu2 %v4781_v6, %s3721_s30  ;;  %1803 = vrot.lane.b32.xlu1 %v4781_v6, %s6592_s10 }
 0x2ba   :  { %v4837_v52 = vpop.permute.xlu0 %1491 }
 0x2bb   :  { %v1952_v8 = vpop.permute.xlu2 %1951  ;;  %v1970_v47 = vpop.permute.xlu1 %1969 }
 0x2bc   :  { %3373 = vmatmul.msk.f32.gmra.mxu0 %vm2262_vm11, %v1713_v42  ;;  %v2017_v44 = vsel %vm1407_vm12, %v2009_v54, %v1970_v47  ;;  %v2066_v42 = vsel %vm1389_vm8, %v2058_v9, %v4693_v19  ;;  %v3538_v47 = vunpack.i.h.bf16 %v4568_v32 }
 0x2c0   :  { %1523 = vrot.lane.b32.xlu0 %v4841_v38, %s3728_s25 }
 0x2c1   :  { %1366 = vrot.lane.b32.xlu2 %v4841_v38, %s3726_s23  ;;  %1675 = vrot.lane.b32.xlu1 %v4841_v38, %s3729_s1 }
 0x2c2   :  { %v4852_v12 = vpop.permute.xlu0 %1643 }
 0x2c3   :  { %v4855_v26 = vpop.permute.xlu2 %1314  ;;  %v4857_v59 = vpop.permute.xlu1 %1927 }
 0x2c4   :  { %6600 = vst [vmem:[#allocation9_spill] sm:$0xff] %v4855_v26  ;;  %3374 = vmatmul.msk.f32.gmra.mxu0 %vm2262_vm11, %v1865_v53  ;;  %v2142_v53 = vsel %vm1398_vm10, %v4717_v40, %v4779_v7 }
 0x2c5   :  { %6601 = vst [vmem:[#allocation10_spill] sm:$0xff] %v4857_v59 }
 0x2c8   :  { %1310 = vrot.lane.b32.xlu0 %v4469_v41, %s6556_s17 }
 0x2c9   :  { %1827 = vrot.lane.b32.xlu2 %v4841_v38, %s3727_s16  ;;  %1358 = vrot.lane.b32.xlu1 %v4560_v31, %s3726_s23 }
 0x2ca   :  { %v4869_v17 = vpop.permute.xlu0 %3575 }
 0x2cb   :  { %v3577_v3 = vunpack.i.l.bf16 %v4869_v17  ;;  %v4874_v13 = vpop.permute.xlu2 %1451  ;;  %v4876_v37 = vpop.permute.xlu1 %1289 }
 0x2cc   :  { %6602 = vst [vmem:[#allocation11_spill] sm:$0xff] %v4876_v37  ;;  %3375 = vmatmul.msk.f32.gmra.mxu0 %vm2262_vm11, %v2017_v44  ;;  %v2150_v44 = vsel %vm1407_vm12, %v2142_v53, %v4837_v52 }
 0x2cd   :  { %v1993_v14 = vsel %vm1380_vm7, %v3557_v60, %v3577_v3 }
 0x2ce   :  { %v2001_v45 = vsel %vm1389_vm8, %v1993_v14, %v4664_v4  ;;  %v2012_v4 = vsel %vm1398_vm10, %v4857_v59, %v1952_v8  ;;  %v3567_v8 = vunpack.i.l.bf16 %v4775_v23  ;;  %v3572_v14 = vunpack.i.l.bf16 %v4789_v11 }
 0x2cf   :  { %2487 = vmatmul.f32.gmra.mxu1 %v2001_v45  ;;  %v3543_v45 = vunpack.i.h.bf16 %v4596_v2 }
 0x2d0   :  { %1955 = vrot.lane.b32.xlu0 %v4781_v6, %s3720_s29  ;;  %v2126_v32 = vsel %vm1380_vm7, %v3567_v8, %v3538_v47 }
 0x2d1   :  { %1931 = vrot.lane.b32.xlu2 %v4678_v16, %s6603_s13  ;;  %1979 = vrot.lane.b32.xlu1 %v4841_v38, %s3730_s15  ;;  %v2134_v3 = vsel %vm1389_vm8, %v2126_v32, %v4717_v40  ;;  %v2194_v2 = vsel %vm1380_vm7, %v3572_v14, %v3543_v45  ;;  %v3563_v14 = vunpack.i.h.bf16 %v4756_v58 }
 0x2d2   :  { %v4889_v1 = vpop.permute.xlu0 %3580  ;;  %v2202_v9 = vsel %vm1389_vm8, %v2194_v2, %v4745_v46 }
 0x2d3   :  { %v1976_v30 = vpop.permute.xlu2 %1975  ;;  %v4896_v43 = vpop.permute.xlu1 %3585  ;;  %v6560_v2 = vunpack.i.l.bf16 %v4889_v1 }
 0x2d4   :  { %v2020_v35 = vsel %vm1407_vm12, %v2012_v4, %v1976_v30  ;;  %3376 = vmatmul.msk.f32.gmra.mxu0 %vm2262_vm11, %v2082_v15  ;;  %v2218_v15 = vsel %vm1407_vm12, %v2210_v24, %v4852_v12 }
 0x2d5   :  { %3399 = vmatmul.msk.f32.vlgmr.msrb.gmra.mxu3 %vm2262_vm11, %v2020_v35  ;;  %v3578_v35 = vunpack.i.h.bf16 %v4869_v17 }
 0x2d7   :  { %2490 = vmatmul.f32.gmra.mxu1 %v2066_v42  ;;  %v3558_v42 = vunpack.i.h.bf16 %v4743_v49  ;;  %v1382_v49 = vsel %vm1380_vm7, %v4386_v39, %v4693_v19  ;;  %v2062_v19 = vsel %vm1380_vm7, %v3563_v14, %v4560_v31  ;;  %v3553_v14 = vunpack.i.h.bf16 %v4657_v62 }
 0x2d8   :  { %1515 = vrot.lane.b32.xlu0 %v4560_v31, %s3728_s25  ;;  %v2077_v62 = vsel %vm1398_vm10, %v4876_v37, %v4855_v26 }
 0x2d9   :  { %1469 = vrot.lane.b32.xlu2 %v4469_v41, %s6589_s12  ;;  %1293 = vrot.lane.b32.xlu1 %v4678_v16, %s6581_s14  ;;  %v1997_v17 = vsel %vm1380_vm7, %v3558_v42, %v3578_v35  ;;  %v3568_v42 = vunpack.i.h.bf16 %v4775_v23 }
 0x2da   :  { %v4915_v18 = vpop.permute.xlu0 %3590 }
 0x2db   :  { %v4920_v54 = vpop.permute.xlu2 %1801  ;;  %v4922_v60 = vpop.permute.xlu1 %3600 }
 0x2dc   :  { %3377 = vmatmul.msk.f32.gmra.mxu0 %vm2262_vm11, %v2150_v44 }
 0x2df   :  { %2493 = vmatmul.f32.gmra.mxu1 %v2134_v3  ;;  %v1391_v3 = vsel %vm1389_vm8, %v1382_v49, %v4761_v61  ;;  %v1690_v49 = vsel %vm1380_vm7, %v3543_v45, %v4745_v46 }
 0x2e0   :  { %1343 = vrot.lane.b32.xlu0 %v4841_v38, %s3716_s26 }
 0x2e1   :  { %1318 = vrot.lane.b32.xlu2 %v4781_v6, %s6556_s17  ;;  %1621 = vrot.lane.b32.xlu1 %v4469_v41, %s6591_s19  ;;  %s6618_s17 = smov 68  }
 0x2e2   :  { %v4938_v36 = vpop.permute.xlu0 %3595 }
 0x2e3   :  { %v4943_v4 = vpop.permute.xlu2 %1953  ;;  %v4945_v30 = vpop.permute.xlu1 %1777 }
 0x2e4   :  { %3378 = vmatmul.msk.f32.gmra.mxu0 %vm2262_vm11, %v2218_v15 }
 0x2e7   :  { %2496 = vmatmul.f32.gmra.mxu1 %v2202_v9  ;;  %v1538_v9 = vsel %vm1380_vm7, %v3538_v47, %v4717_v40 }
 0x2e8   :  { %1667 = vrot.lane.b32.xlu0 %v4560_v31, %s3729_s1  ;;  %v1546_v35 = vsel %vm1389_vm8, %v1538_v9, %v4779_v7  ;;  %v3573_v9 = vunpack.i.h.bf16 %v4789_v11 }
 0x2e9   :  { %3625 = vrot.lane.b32.xlu2 %v4766_v20, %s6604_s20  ;;  %1453 = vrot.lane.b32.xlu1 %v4678_v16, %s6605_s22 }
 0x2ea   :  { %v4961_v8 = vpop.permute.xlu0 %1473 }
 0x2eb   :  { %6606 = vst [vmem:[#allocation12_spill] sm:$0xff] %v4961_v8  ;;  %v4963_v53 = vpop.permute.xlu2 %1316  ;;  %v4965_v44 = vpop.permute.xlu1 %1929 }
 0x2ec   :  { %v2005_v32 = vsel %vm1389_vm8, %v1997_v17, %v4965_v44  ;;  %v2130_v17 = vsel %vm1380_vm7, %v3568_v42, %v6560_v2 }
 0x2ed   :  { %2583 = vmatmul.f32.vlgmr.msrb.gmra.mxu2 %v2005_v32  ;;  %v2138_v23 = vsel %vm1389_vm8, %v2130_v17, %v4874_v13  ;;  %v1219_v17 = vsel %vm1208_vm6, %v4620_v50, %v4580_v22  ;;  %v3592_v22 = vunpack.i.l.bf16 %v4915_v18 }
 0x2ef   :  { %2499 = vmatmul.f32.gmra.mxu1 %v1391_v3  ;;  %v1698_v3 = vsel %vm1389_vm8, %v1690_v49, %v4793_v51 }
 0x2f0   :  { %1501 = vrot.lane.b32.xlu0 %v4841_v38, %s6579_s28 }
 0x2f1   :  { %1477 = vrot.lane.b32.xlu2 %v4781_v6, %s6589_s12  ;;  %1773 = vrot.lane.b32.xlu1 %v4469_v41, %s6599_s11 }
 0x2f2   :  { %v4982_v24 = vpop.permute.xlu0 %1625 }
 0x2f3   :  { %v4984_v15 = vpop.permute.xlu2 %3620  ;;  %v4986_v39 = vpop.permute.xlu1 %1291 }
 0x2f4   :  { %v2070_v58 = vsel %vm1389_vm8, %v2062_v19, %v4986_v39  ;;  %v6559_v19 = vunpack.i.l.bf16 %v4896_v43  ;;  %v1386_v50 = vsel %vm1380_vm7, %v4560_v31, %v4986_v39  ;;  %v3622_v51 = vunpack.i.l.bf16 %v4984_v15 }
 0x2f5   :  { %2586 = vmatmul.f32.gmra.mxu2 %v2070_v58  ;;  %v3548_v58 = vunpack.i.h.bf16 %v4570_v33 }
 0x2f6   :  { %v2198_v33 = vsel %vm1380_vm7, %v3573_v9, %v6559_v19  ;;  %v1243_v9 = vmax.f32 %v4422_v34, %v1219_v17  ;;  %v2145_v34 = vsel %vm1398_vm10, %v4791_v21, %v4961_v8  ;;  %v3602_v21 = vunpack.i.l.bf16 %v4922_v60 }
 0x2f7   :  { %2502 = vmatmul.f32.gmra.mxu1 %v1546_v35  ;;  %v1842_v11 = vsel %vm1380_vm7, %v3548_v58, %v3553_v14 }
 0x2f8   :  { %3630 = vrot.lane.b32.xlu0 %v4766_v20, %s6607_s21  ;;  %v1850_v49 = vsel %vm1389_vm8, %v1842_v11, %v4662_v10  ;;  %v945_v10 = vpop.f32.mrf.mxu1 }
 0x2f9   :  { %1795 = vrot.lane.b32.xlu2 %v4469_v41, %s6592_s10  ;;  %1819 = vrot.lane.b32.xlu1 %v4560_v31, %s3727_s16 }
 0x2fa   :  { %v5007_v40 = vpop.permute.xlu0 %1603 }
 0x2fb   :  { %v5009_v47 = vpop.permute.xlu2 %1364  ;;  %v5011_v32 = vpop.permute.xlu1 %3610 }
 0x2fc   :  { %v3612_v14 = vunpack.i.l.bf16 %v5011_v32 }
 0x2fd   :  { %2589 = vmatmul.f32.gmra.mxu2 %v2138_v23  ;;  %v2206_v23 = vsel %vm1389_vm8, %v2198_v33, %v5007_v40 }
 0x2ff   :  { %2505 = vmatmul.f32.gmra.mxu1 %v1698_v3  ;;  %v5051_v3 = vpack.i.bf16 %v4678_v16, %v4441_v27 }
 0x300   :  { %1629 = vrot.lane.b32.xlu0 %v4781_v6, %s6591_s19 }
 0x301   :  { %1605 = vrot.lane.b32.xlu2 %v4678_v16, %s3710_s18  ;;  %1653 = vrot.lane.b32.xlu1 %v4841_v38, %s3721_s30  ;;  %6608 = vst [vmem:[#allocation13_spill] sm:$0xff] %v5051_v3 }
 0x302   :  { %v1340_v46 = vpop.permute.xlu0 %1339 }
 0x303   :  { %v2085_v45 = vsel %vm1407_vm12, %v2077_v62, %v1340_v46  ;;  %v5033_v35 = vpop.permute.xlu2 %1521  ;;  %v5035_v42 = vpop.permute.xlu1 %1497  ;;  %v5073_v62 = vld [vmem:[%s6517_s2] ss:$0 sm:$0xff]  ;;  %s6613_s2 = smov 78  }
 0x304   :  { %3400 = vmatmul.msk.f32.gmra.mxu3 %vm2262_vm11, %v2085_v45  ;;  %6610 = vst [vmem:[#allocation14_spill] sm:$0xff] %v5073_v62  ;;  %v1259_v45 = vadd.f32 %v5073_v62, %v1243_v9  ;;  %v2153_v33 = vsel %vm1407_vm12, %v2145_v34, %v5035_v42  ;;  %v3597_v9 = vunpack.i.l.bf16 %v4938_v36  ;;  %v3623_v62 = vunpack.i.h.bf16 %v4984_v15 }
 0x305   :  { %2592 = vmatmul.f32.gmra.mxu2 %v2206_v23  ;;  %v1994_v23 = vsel %vm1380_vm7, %v3592_v22, %v3612_v14  ;;  %v2213_v14 = vsel %vm1398_vm10, %v4805_v28, %v4982_v24 }
 0x306   :  { %v2002_v19 = vsel %vm1389_vm8, %v1994_v23, %v4691_v57  ;;  %v5088_v2 = vmax.f32 %v1259_v45, 0.0  ;;  %v6611_v45 = vunpack.i.l.bf16 %v4889_v1  ;;  %v2059_v23 = vsel %vm1380_vm7, %v3597_v9, %v4416_v25 }
 0x307   :  { %2508 = vmatmul.f32.gmra.mxu1 %v1850_v49  ;;  %v1395_v49 = vsel %vm1389_vm8, %v1386_v50, %v4963_v53  ;;  %v2067_v28 = vsel %vm1389_vm8, %v2059_v23, %v4807_v55  ;;  %v1403_v9 = vsel %vm1398_vm10, %v4855_v26, %v1340_v46  ;;  %v6616_v26 = vunpack.i.h.bf16 %v4889_v1 }
 0x308   :  { %3640 = vrot.lane.b32.xlu0 %v5051_v3, %s6558_s0  ;;  %v1412_v46 = vsel %vm1407_vm12, %v1403_v9, %v5009_v47  ;;  %v876_v3 = vpop.f32.mrf.mxu0  ;;  %s6619_s0 = smov 58  }
 0x309   :  { %3635 = vrot.lane.b32.xlu2 %v4730_v56, %s6609_s24  ;;  %1925 = vrot.lane.b32.xlu1 %v4469_v41, %s6603_s13  ;;  %v2127_v59 = vsel %vm1380_vm7, %v3602_v21, %v6616_v26  ;;  %v1557_v21 = vsel %vm1398_vm10, %v4961_v8, %v5035_v42  ;;  %v3607_v26 = vunpack.i.l.bf16 %v4823_v63  ;;  %v947_v63 = vpop.f32.mrf.mxu1 }
 0x30a   :  { %v5068_v58 = vpop.permute.xlu0 %1475  ;;  %v2135_v47 = vsel %vm1389_vm8, %v2127_v59, %v4715_v0 }
 0x30b   :  { %v5078_v11 = vpop.permute.xlu2 %1673  ;;  %v5080_v17 = vpop.permute.xlu1 %1649 }
 0x30c   :  { %3401 = vmatmul.msk.f32.gmra.mxu3 %vm2262_vm11, %v2153_v33  ;;  %v2221_v50 = vsel %vm1407_vm12, %v2213_v14, %v5080_v17  ;;  %v1542_v33 = vsel %vm1380_vm7, %v6611_v45, %v4874_v13  ;;  %v1014_v45 = vpop.f32.mrf.mxu2 }
 0x30d   :  { %2595 = vmatmul.f32.gmra.mxu2 %v1395_v49  ;;  %v1550_v14 = vsel %vm1389_vm8, %v1542_v33, %v5068_v58 }
 0x30f   :  { %2511 = vmatmul.f32.gmra.mxu1 %v2002_v19 }
 0x310   :  { %1971 = vrot.lane.b32.xlu0 %v4560_v31, %s3730_s15 }
 0x311   :  { %1947 = vrot.lane.b32.xlu2 %v4469_v41, %s3720_s29  ;;  %1368 = vrot.lane.b32.xlu1 %v5088_v2, %s3726_s23 }
 0x312   :  { %v5100_v22 = vpop.permute.xlu0 %1825 }
 0x313   :  { %v5104_v34 = vpop.permute.xlu2 %1651  ;;  %v5106_v19 = vpop.permute.xlu1 %1627 }
 0x314   :  { %v5117_v49 = vsel %vm1398_vm10, %v5106_v19, %v5104_v34  ;;  %3402 = vmatmul.msk.f32.gmra.mxu3 %vm2262_vm11, %v2221_v50  ;;  %v1083_v50 = vpop.f32.mrf.mxu3 }
 0x315   :  { %6612 = vst [vmem:[#allocation15_spill] sm:$0xff] %v5117_v49  ;;  %2598 = vmatmul.f32.gmra.mxu2 %v1550_v14  ;;  %v6615_v14 = vunpack.i.l.bf16 %v4896_v43  ;;  %v878_v49 = vpop.f32.mrf.mxu0 }
 0x317   :  { %2514 = vmatmul.f32.gmra.mxu1 %v2067_v28  ;;  %v1694_v37 = vsel %vm1380_vm7, %v6615_v14, %v5007_v40  ;;  %v3588_v14 = vunpack.i.h.bf16 %v4896_v43  ;;  %v6623_v43 = vld [vmem:[#allocation6_spill] sm:$0xff] }
 0x318   :  { %1287 = vrot.lane.b32.xlu0 %v4469_v41, %s6581_s14  ;;  %v1702_v57 = vsel %vm1389_vm8, %v1694_v37, %v5106_v19  ;;  %v1565_v37 = vsel %vm1407_vm12, %v1557_v21, %v5033_v35  ;;  %v1709_v35 = vsel %vm1398_vm10, %v4982_v24, %v5080_v17  ;;  %v948_v21 = vadd.f32 %v947_v63, %v878_v49 }
 0x319   :  { %3645 = vrot.lane.b32.xlu2 %v4730_v56, %s6613_s2  ;;  %1335 = vrot.lane.b32.xlu1 %v4560_v31, %s3716_s26  ;;  %v2195_v42 = vsel %vm1380_vm7, %v3607_v26, %v3588_v14  ;;  %v1717_v17 = vsel %vm1407_vm12, %v1709_v35, %v5078_v11  ;;  %v1861_v11 = vsel %vm1398_vm10, %v4945_v30, %v4920_v54 }
 0x31a   :  { %v5134_v33 = vpop.permute.xlu0 %1977  ;;  %v2203_v8 = vsel %vm1389_vm8, %v2195_v42, %v4741_v29  ;;  %v5228_v54 = vpack.i.bf16 %v4469_v41, %v4678_v16 }
 0x31b   :  { %v5136_v23 = vpop.permute.xlu2 %1366  ;;  %v3616_v28 = vpop.permute.xlu1 %3615 }
 0x31c   :  { %6614 = vst [vmem:[#allocation16_spill] sm:$0xff] %v5136_v23  ;;  %v3618_v27 = vunpack.i.h.bf16 %v3616_v28  ;;  %3403 = vmatmul.msk.f32.gmra.mxu3 %vm2262_vm11, %v1412_v46  ;;  %v1085_v46 = vpop.f32.mrf.mxu3 }
 0x31d   :  { %2601 = vmatmul.f32.gmra.mxu2 %v1702_v57 }
 0x31e   :  { %v5154_v9 = vsel %vm1380_vm7, %v3618_v27, %v3623_v62  ;;  %v1016_v62 = vpop.f32.mrf.mxu2 }
 0x31f   :  { %6617 = vst [vmem:[#allocation17_spill] sm:$0xff] %v5154_v9  ;;  %2517 = vmatmul.f32.gmra.mxu1 %v2135_v47  ;;  %v3617_v47 = vunpack.i.l.bf16 %v3616_v28  ;;  %v1084_v9 = vadd.f32 %v1083_v50, %v1014_v45  ;;  %v1086_v23 = vadd.f32 %v1085_v46, %v1016_v62  ;;  %v946_v28 = vadd.f32 %v945_v10, %v876_v3 }
 0x320   :  { %3650 = vrot.lane.b32.xlu0 %v4730_v56, %s6618_s17  ;;  %v3593_v3 = vunpack.i.h.bf16 %v4915_v18 }
 0x321   :  { %1525 = vrot.lane.b32.xlu2 %v5088_v2, %s3728_s25  ;;  %1447 = vrot.lane.b32.xlu1 %v4469_v41, %s6605_s22  ;;  %v1846_v45 = vsel %vm1380_vm7, %v3617_v47, %v3622_v51  ;;  %v1134_v42 = vsel %vm505_vm4, %v1086_v23, -inf  ;;  %v3613_v51 = vunpack.i.h.bf16 %v5011_v32  ;;  %v1869_v32 = vsel %vm1407_vm12, %v1861_v11, %v5100_v22 }
 0x322   :  { %v5167_v27 = vpop.permute.xlu0 %1341  ;;  %v2013_v22 = vsel %vm1398_vm10, %v4965_v44, %v4943_v4  ;;  %v1383_v47 = vsel %vm1380_vm7, %v4416_v25, %v4807_v55  ;;  %v2078_v25 = vsel %vm1398_vm10, %v4986_v39, %v4963_v53  ;;  %v3598_v39 = vunpack.i.h.bf16 %v4938_v36 }
 0x323   :  { %v1828_v57 = vpop.permute.xlu2 %1827  ;;  %v5169_v59 = vpop.permute.xlu1 %1499  ;;  %v1998_v23 = vsel %vm1380_vm7, %v3593_v3, %v3613_v51  ;;  %v2021_v35 = vsel %vm1407_vm12, %v2013_v22, %v5134_v33  ;;  %v2086_v33 = vsel %vm1407_vm12, %v2078_v25, %v5167_v27  ;;  %v1404_v22 = vsel %vm1398_vm10, %v4963_v53, %v5167_v27  ;;  %v6624_v27 = vld [vmem:[#allocation16_spill] sm:$0xff] }
 0x324   :  { %3404 = vmatmul.msk.f32.gmra.mxu3 %vm2262_vm11, %v1565_v37  ;;  %v1133_v37 = vsel %vm505_vm4, %v1084_v9, -inf }
 0x325   :  { %v1135_v63 = vmax.f32 %v1133_v37, %v1134_v42 }
 0x327   :  { %2520 = vmatmul.f32.gmra.mxu1 %v2203_v8 }
 0x328   :  { %1677 = vrot.lane.b32.xlu0 %v5088_v2, %s3729_s1 }
 0x329   :  { %1493 = vrot.lane.b32.xlu2 %v4560_v31, %s6579_s28  ;;  %3655 = vrot.lane.b32.xlu1 %v4730_v56, %s6619_s0  ;;  %v5202_v56 = vmax.f32 %v946_v28, %v948_v21  ;;  %s6620_s28 = smov 8  }
 0x32a   :  { %v1780_v8 = vpop.permute.xlu0 %1779 }
 0x32b   :  { %v5190_v50 = vpop.permute.xlu2 %1931  ;;  %v1804_v15 = vpop.permute.xlu1 %1803  ;;  %v1854_v26 = vsel %vm1389_vm8, %v1846_v45, %v1780_v8 }
 0x32c   :  { %v1862_v62 = vsel %vm1398_vm10, %v1780_v8, %v1804_v15  ;;  %2604 = vmatmul.f32.gmra.mxu2 %v1854_v26  ;;  %3405 = vmatmul.msk.f32.gmra.mxu3 %vm2262_vm11, %v1717_v17  ;;  %v2146_v17 = vsel %vm1398_vm10, %v4874_v13, %v5068_v58 }
 0x32d   :  { %v5200_v10 = vsel %vm1407_vm12, %v1862_v62, %v1828_v57  ;;  %v2006_v57 = vsel %vm1389_vm8, %v1998_v23, %v5190_v50  ;;  %v2154_v36 = vsel %vm1407_vm12, %v2146_v17, %v5169_v59  ;;  %v6628_v17 = vld [vmem:[#allocation3_spill] sm:$0xff] }
 0x330   :  { %1204 = vrot.lane.b32.xlu0 %v5202_v56, %s6620_s28 }
 0x331   :  { %1599 = vrot.lane.b32.xlu2 %v4469_v41, %s3710_s18  ;;  %1206 = vrot.lane.b32.xlu1 %v1135_v63, %s6620_s28  ;;  %s6622_s28 = smov 100   ;;  %v2063_v63 = vsel %vm1380_vm7, %v3598_v39, %v4607_v48  ;;  %v6627_v39 = vld [vmem:[#allocation15_spill] sm:$0xff] }
 0x332   :  { %v5214_v49 = vpop.permute.xlu0 %1523 }
 0x333   :  { %v5219_v18 = vpop.permute.xlu2 %1469  ;;  %v5221_v9 = vpop.permute.xlu1 %1675 }
 0x334   :  { %2607 = vmatmul.f32.gmra.mxu2 %v2006_v57  ;;  %3406 = vmatmul.msk.f32.gmra.mxu3 %vm2262_vm11, %v1869_v32 }
 0x338   :  { %3660 = vrot.lane.b32.xlu0 %v4766_v20, %s6596_s27  ;;  %v1400_v20 = vsel %vm1398_vm10, %v4761_v61, %v4777_v5  ;;  %v6621_v5 = vunpack.i.h.bf16 %v4889_v1  ;;  %v1554_v1 = vsel %vm1398_vm10, %v4779_v7, %v4837_v52  ;;  %v2214_v52 = vsel %vm1398_vm10, %v5007_v40, %v5106_v19 }
 0x339   :  { %1645 = vrot.lane.b32.xlu2 %v4560_v31, %s3721_s30  ;;  %3665 = vrot.lane.b32.xlu1 %v5228_v54, %s6593_s3  ;;  %v2222_v40 = vsel %vm1407_vm12, %v2214_v52, %v5104_v34  ;;  %v1691_v19 = vsel %vm1380_vm7, %v3588_v14, %v4741_v29  ;;  %v3603_v34 = vunpack.i.h.bf16 %v4922_v60  ;;  %v1706_v14 = vsel %vm1398_vm10, %v6623_v43, %v4852_v12 }
 0x33a   :  { %v5239_v46 = vpop.permute.xlu0 %1310  ;;  %v1539_v44 = vsel %vm1380_vm7, %v6621_v5, %v4715_v0  ;;  %v1413_v60 = vsel %vm1407_vm12, %v1404_v22, %v6624_v27 }
 0x33b   :  { %v5249_v28 = vpop.permute.xlu2 %1318  ;;  %v1359_v21 = vpop.permute.xlu1 %1358  ;;  %v1392_v8 = vsel %vm1389_vm8, %v1383_v47, %v5239_v46  ;;  %v1547_v26 = vsel %vm1389_vm8, %v1539_v44, %v5219_v18 }
 0x33c   :  { %v1409_v4 = vsel %vm1407_vm12, %v1400_v20, %v1359_v21  ;;  %2523 = vmatmul.f32.gmra.mxu1 %v1392_v8  ;;  %3407 = vmatmul.msk.f32.gmra.mxu3 %vm2262_vm11, %v2021_v35  ;;  %v1558_v8 = vsel %vm1398_vm10, %v5068_v58, %v5169_v59  ;;  %v6626_v59 = vld [vmem:[#allocation8_spill] sm:$0xff] }
 0x33d   :  { %3379 = vmatmul.msk.f32.gmra.mxu0 %vm2262_vm11, %v1409_v4  ;;  %v1566_v25 = vsel %vm1407_vm12, %v1558_v8, %v5214_v49  ;;  %v3608_v49 = vunpack.i.h.bf16 %v6626_v59  ;;  %v6636_v59 = vld [vmem:[#allocation4_spill] sm:$0xff] }
 0x340   :  { %1805 = vrot.lane.b32.xlu0 %v4841_v38, %s6592_s10 }
 0x341   :  { %1781 = vrot.lane.b32.xlu2 %v4781_v6, %s6599_s11  ;;  %1829 = vrot.lane.b32.xlu1 %v5088_v2, %s3727_s16 }
 0x342   :  { %v5265_v61 = vpop.permute.xlu0 %1955 }
 0x343   :  { %v5273_v45 = vpop.permute.xlu2 %3625  ;;  %v5275_v15 = vpop.permute.xlu1 %1979 }
 0x344   :  { %2526 = vmatmul.f32.gmra.mxu1 %v1547_v26  ;;  %3408 = vmatmul.msk.f32.gmra.mxu3 %vm2262_vm11, %v2086_v33  ;;  %v3627_v57 = vunpack.i.l.bf16 %v5273_v45  ;;  %v6625_v33 = vld [vmem:[#allocation17_spill] sm:$0xff] }
 0x346   :  { %v2131_v21 = vsel %vm1380_vm7, %v3603_v34, %v3627_v57 }
 0x348   :  { %1360 = vrot.lane.b32.xlu0 %v4607_v48, %s3726_s23 }
 0x349   :  { %1312 = vrot.lane.b32.xlu2 %v4560_v31, %s6622_s28  ;;  %1933 = vrot.lane.b32.xlu1 %v4781_v6, %s6603_s13 }
 0x34a   :  { %v1516_v37 = vpop.permute.xlu0 %1515 }
 0x34b   :  { %v1562_v42 = vsel %vm1407_vm12, %v1554_v1, %v1516_v37  ;;  %v5296_v62 = vpop.permute.xlu2 %1477  ;;  %v5298_v51 = vpop.permute.xlu1 %1293  ;;  %v1718_v1 = vsel %vm1407_vm12, %v6627_v39, %v5221_v9 }
 0x34c   :  { %3380 = vmatmul.msk.f32.gmra.mxu0 %vm2262_vm11, %v1562_v42  ;;  %3409 = vmatmul.msk.f32.gmra.mxu3 %vm2262_vm11, %v2154_v36  ;;  %v2071_v7 = vsel %vm1389_vm8, %v2063_v63, %v5298_v51 }
 0x34d   :  { %2610 = vmatmul.f32.gmra.mxu2 %v2071_v7 }
 0x350   :  { %1981 = vrot.lane.b32.xlu0 %v5088_v2, %s3730_s15 }
 0x351   :  { %1957 = vrot.lane.b32.xlu2 %v4841_v38, %s3720_s29  ;;  %1471 = vrot.lane.b32.xlu1 %v4560_v31, %s6589_s12 }
 0x352   :  { %v5315_v13 = vpop.permute.xlu0 %1343 }
 0x353   :  { %v5320_v3 = vsel %vm1398_vm10, %v5249_v28, %v5315_v13  ;;  %v1796_v11 = vpop.permute.xlu2 %1795  ;;  %v5322_v23 = vpop.permute.xlu1 %1621 }
 0x354   :  { %3410 = vmatmul.msk.f32.gmra.mxu3 %vm2262_vm11, %v2222_v40  ;;  %v1699_v32 = vsel %vm1389_vm8, %v1691_v19, %v5322_v23  ;;  %v1858_v37 = vsel %vm1398_vm10, %v6628_v17, %v1796_v11  ;;  %v5401_v40 = vpop.f32.mrf.mxu1  ;;  %v5411_v11 = vpop.f32.mrf.mxu0 }
 0x355   :  { %2529 = vmatmul.f32.gmra.mxu1 %v1699_v32  ;;  %6629 = vst [vmem:[#allocation6_spill] sm:$0xff] %v5401_v40  ;;  %v1387_v32 = vsel %vm1380_vm7, %v4607_v48, %v5298_v51 }
 0x356   :  { %6631 = vst [vmem:[#allocation16_spill] sm:$0xff] %v5411_v11  ;;  %v1396_v43 = vsel %vm1389_vm8, %v1387_v32, %v5249_v28 }
 0x358   :  { %1295 = vrot.lane.b32.xlu0 %v4781_v6, %s6581_s14  ;;  %s6630_s14 = smov 12   ;;  %v5459_v8 = vpop.f32.mrf.mxu3 }
 0x359   :  { %1517 = vrot.lane.b32.xlu2 %v4607_v48, %s3728_s25  ;;  %1320 = vrot.lane.b32.xlu1 %v4841_v38, %s6622_s28  ;;  %6634 = vst [vmem:[#allocation15_spill] sm:$0xff] %v5459_v8 }
 0x35a   :  { %v1668_v47 = vpop.permute.xlu0 %1667 }
 0x35b   :  { %v1714_v20 = vsel %vm1407_vm12, %v1706_v14, %v1668_v47  ;;  %v5348_v35 = vpop.permute.xlu2 %1605  ;;  %v5350_v53 = vpop.permute.xlu1 %1453  ;;  %v2014_v47 = vsel %vm1398_vm10, %v5190_v50, %v5265_v61 }
 0x35c   :  { %3381 = vmatmul.msk.f32.gmra.mxu0 %vm2262_vm11, %v1714_v20  ;;  %3411 = vmatmul.msk.f32.gmra.mxu3 %vm2262_vm11, %v1413_v60  ;;  %v2139_v12 = vsel %vm1389_vm8, %v2131_v21, %v5350_v53  ;;  %v5426_v14 = vpop.f32.mrf.mxu1  ;;  %v2022_v20 = vsel %vm1407_vm12, %v2014_v47, %v5275_v15  ;;  %v1543_v27 = vsel %vm1380_vm7, %v3627_v57, %v5350_v53  ;;  %v5451_v21 = vpop.f32.mrf.mxu0 }
 0x35d   :  { %2613 = vmatmul.f32.gmra.mxu2 %v2139_v12  ;;  %6632 = vst [vmem:[#allocation17_spill] sm:$0xff] %v5426_v14  ;;  %v1551_v57 = vsel %vm1389_vm8, %v1543_v27, %v5296_v62 }
 0x35e   :  { %6633 = vst [vmem:[#allocation8_spill] sm:$0xff] %v5451_v21 }
 0x360   :  { %1623 = vrot.lane.b32.xlu0 %v4560_v31, %s6591_s19 }
 0x361   :  { %1345 = vrot.lane.b32.xlu2 %v5088_v2, %s3716_s26  ;;  %3670 = vrot.lane.b32.xlu1 %v5228_v54, %s6604_s20 }
 0x362   :  { %v5370_v4 = vpop.permute.xlu0 %1501 }
 0x363   :  { %v5374_v5 = vpop.permute.xlu2 %3635  ;;  %v5376_v44 = vpop.permute.xlu1 %1773 }
 0x364   :  { %3412 = vmatmul.msk.f32.gmra.mxu3 %vm2262_vm11, %v1566_v25  ;;  %v1851_v26 = vsel %vm1389_vm8, %v6625_v33, %v5376_v44  ;;  %v3637_v50 = vunpack.i.l.bf16 %v5374_v5  ;;  %v6635_v25 = vld [vmem:[#allocation13_spill] sm:$0xff]  ;;  %v5467_v33 = vpop.f32.mrf.mxu1 }
 0x365   :  { %2532 = vmatmul.f32.gmra.mxu1 %v1851_v26  ;;  %v2079_v26 = vsel %vm1398_vm10, %v5298_v51, %v5249_v28  ;;  %v5483_v28 = vpop.f32.mrf.mxu0 }
 0x368   :  { %1455 = vrot.lane.b32.xlu0 %v4781_v6, %s6605_s22 }
 0x369   :  { %1669 = vrot.lane.b32.xlu2 %v4607_v48, %s3729_s1  ;;  %1479 = vrot.lane.b32.xlu1 %v4841_v38, %s6589_s12 }
 0x36a   :  { %v5388_v58 = vpop.permute.xlu0 %3630 }
 0x36b   :  { %v3632_v36 = vunpack.i.l.bf16 %v5388_v58  ;;  %v1948_v42 = vpop.permute.xlu2 %1947  ;;  %v1820_v63 = vpop.permute.xlu1 %1819 }
 0x36c   :  { %v1866_v7 = vsel %vm1407_vm12, %v1858_v37, %v1820_v63  ;;  %3413 = vmatmul.msk.f32.gmra.mxu3 %vm2262_vm11, %v1718_v1  ;;  %v2087_v1 = vsel %vm1407_vm12, %v2079_v26, %v5315_v13 }
 0x36d   :  { %3382 = vmatmul.msk.f32.gmra.mxu0 %vm2262_vm11, %v1866_v7  ;;  %v2199_v52 = vsel %vm1380_vm7, %v3608_v49, %v3632_v36  ;;  %v2010_v49 = vsel %vm1398_vm10, %v6636_v59, %v1948_v42  ;;  %v1695_v7 = vsel %vm1380_vm7, %v3632_v36, %v5348_v35  ;;  %v5497_v36 = vpop.f32.mrf.mxu1 }
 0x36e   :  { %v2207_v9 = vsel %vm1389_vm8, %v2199_v52, %v5348_v35  ;;  %v3684_v52 = vpack.i.bf16 %v4781_v6, %v4469_v41 }
 0x36f   :  { %2616 = vmatmul.f32.gmra.mxu2 %v2207_v9  ;;  %v2147_v9 = vsel %vm1398_vm10, %v5350_v53, %v5296_v62 }
 0x370   :  { %1775 = vrot.lane.b32.xlu0 %v4560_v31, %s6599_s11  ;;  %v2155_v27 = vsel %vm1407_vm12, %v2147_v9, %v5370_v4 }
 0x371   :  { %1503 = vrot.lane.b32.xlu2 %v5088_v2, %s6630_s14  ;;  %1797 = vrot.lane.b32.xlu1 %v4560_v31, %s6592_s10 }
 0x372   :  { %v5413_v19 = vpop.permute.xlu0 %1629 }
 0x373   :  { %v5418_v22 = vpop.permute.xlu2 %3645  ;;  %v5420_v34 = vpop.permute.xlu1 %1653  ;;  %v1703_v42 = vsel %vm1389_vm8, %v1695_v7, %v5413_v19 }
 0x374   :  { %3414 = vmatmul.msk.f32.gmra.mxu3 %vm2262_vm11, %v5200_v10  ;;  %v3647_v51 = vunpack.i.l.bf16 %v5418_v22 }
 0x375   :  { %v5532_v26 = vpop.f32.mrf.mxu1 }
 0x377   :  { %2619 = vmatmul.f32.gmra.mxu2 %v1396_v43  ;;  %v6639_v43 = vld [vmem:[#allocation2_spill] sm:$0xff] }
 0x378   :  { %1821 = vrot.lane.b32.xlu0 %v4607_v48, %s3727_s16  ;;  %v2060_v47 = vsel %vm1380_vm7, %v3647_v51, %v6639_v43 }
 0x379   :  { %3675 = vrot.lane.b32.xlu2 %v5228_v54, %s6607_s21  ;;  %1607 = vrot.lane.b32.xlu1 %v4781_v6, %s3710_s18 }
 0x37a   :  { %v5437_v10 = vpop.permute.xlu0 %3640 }
 0x37b   :  { %v3642_v61 = vunpack.i.l.bf16 %v5437_v10  ;;  %v5447_v60 = vpop.permute.xlu2 %1525  ;;  %v5449_v54 = vpop.permute.xlu1 %1925 }
 0x37c   :  { %3415 = vmatmul.msk.f32.gmra.mxu3 %vm2262_vm11, %v2022_v20  ;;  %v2075_v20 = vsel %vm1398_vm10, %v4807_v55, %v5239_v46  ;;  %v5523_v55 = vpop.f32.mrf.mxu0 }
 0x37d   :  { %v1995_v12 = vsel %vm1380_vm7, %v3637_v50, %v3642_v61 }
 0x37e   :  { %v2003_v15 = vsel %vm1389_vm8, %v1995_v12, %v5449_v54 }
 0x37f   :  { %2535 = vmatmul.f32.gmra.mxu1 %v2003_v15  ;;  %2622 = vmatmul.f32.gmra.mxu2 %v1551_v57  ;;  %v2215_v57 = vsel %vm1398_vm10, %v5348_v35, %v5413_v19 }
 0x380   :  { %1655 = vrot.lane.b32.xlu0 %v5088_v2, %s3721_s30 }
 0x381   :  { %1631 = vrot.lane.b32.xlu2 %v4841_v38, %s6591_s19  ;;  %3680 = vrot.lane.b32.xlu1 %v6635_v25, %s6609_s24  ;;  %s6638_s24 = smov 10  }
 0x382   :  { %v1972_v39 = vpop.permute.xlu0 %1971 }
 0x383   :  { %v2018_v17 = vsel %vm1407_vm12, %v2010_v49, %v1972_v39  ;;  %v5477_v37 = vpop.permute.xlu2 %1493  ;;  %v1369_v63 = vpop.permute.xlu1 %1368  ;;  %v2143_v49 = vsel %vm1398_vm10, %v4715_v0, %v5219_v18  ;;  %v6583_v39 = vunpack.i.h.bf16 %v5273_v45 }
 0x384   :  { %3383 = vmatmul.msk.f32.gmra.mxu0 %vm2262_vm11, %v2018_v17  ;;  %3416 = vmatmul.msk.f32.gmra.mxu3 %vm2262_vm11, %v2087_v1  ;;  %v2223_v1 = vsel %vm1407_vm12, %v2215_v57, %v5420_v34  ;;  %v2151_v7 = vsel %vm1407_vm12, %v2143_v49, %v5477_v37 }
 0x387   :  { %2625 = vmatmul.f32.gmra.mxu2 %v1703_v42  ;;  %v5488_v13 = vpop.f32.mrf.mxu3 }
 0x388   :  { %6637 = vst [vmem:[#allocation3_spill] sm:$0xff] %v5488_v13  ;;  %1949 = vrot.lane.b32.xlu0 %v4560_v31, %s3720_s29 }
 0x389   :  { %3685 = vrot.lane.b32.xlu2 %v3684_v52, %s6638_s24  ;;  %1973 = vrot.lane.b32.xlu1 %v4607_v48, %s3730_s15  ;;  %v5562_v52 = vpop.f32.mrf.mxu0  ;;  %s3735_s24 = smov 44  }
 0x38a   :  { %v5502_v32 = vpop.permute.xlu0 %1287 }
 0x38b   :  { %v5511_v50 = vpop.permute.xlu2 %1599  ;;  %v5513_v61 = vpop.permute.xlu1 %1335  ;;  %v2068_v12 = vsel %vm1389_vm8, %v2060_v47, %v5502_v32  ;;  %v2211_v47 = vsel %vm1398_vm10, %v4741_v29, %v5322_v23 }
 0x38c   :  { %v2083_v53 = vsel %vm1407_vm12, %v2075_v20, %v5513_v61  ;;  %2538 = vmatmul.f32.gmra.mxu1 %v2068_v12  ;;  %3417 = vmatmul.msk.f32.gmra.mxu3 %vm2262_vm11, %v2155_v27  ;;  %v1414_v20 = vsel %vm1407_vm12, %v5320_v3, %v1369_v63 }
 0x38d   :  { %3384 = vmatmul.msk.f32.gmra.mxu0 %vm2262_vm11, %v2083_v53  ;;  %v6582_v53 = vunpack.i.h.bf16 %v5388_v58 }
 0x38f   :  { %v5521_v15 = vpop.f32.mrf.mxu3 }
 0x390   :  { %6640 = vst [vmem:[#allocation13_spill] sm:$0xff] %v5521_v15  ;;  %3690 = vrot.lane.b32.xlu0 %v6635_v25, %s6613_s2 }
 0x391   :  { %1337 = vrot.lane.b32.xlu1 %v4607_v48, %s3716_s26 }
 0x392   :  { %v5534_v59 = vpop.permute.xlu0 %3650 }
 0x393   :  { %v3652_v35 = vunpack.i.l.bf16 %v5534_v59  ;;  %v5543_v17 = vpop.permute.xlu2 %1645  ;;  %v5545_v25 = vpop.permute.xlu1 %1447 }
 0x394   :  { %3418 = vmatmul.msk.f32.gmra.mxu3 %vm2262_vm11, %v2223_v1  ;;  %v2219_v57 = vsel %vm1407_vm12, %v2211_v47, %v5543_v17  ;;  %v5576_v1 = vpop.f32.mrf.mxu1 }
 0x395   :  { %3385 = vmatmul.msk.f32.gmra.mxu0 %vm2262_vm11, %v2151_v7  ;;  %v2128_v0 = vsel %vm1380_vm7, %v3652_v35, %v6583_v39  ;;  %v1559_v35 = vsel %vm1398_vm10, %v5296_v62, %v5370_v4  ;;  %v1384_v62 = vsel %vm1380_vm7, %v6639_v43, %v5502_v32 }
 0x396   :  { %v2136_v51 = vsel %vm1389_vm8, %v2128_v0, %v5545_v25  ;;  %v1567_v0 = vsel %vm1407_vm12, %v1559_v35, %v5447_v60  ;;  %v6643_v60 = vld [vmem:[#allocation14_spill] sm:$0xff] }
 0x397   :  { %2541 = vmatmul.f32.gmra.mxu1 %v2136_v51  ;;  %v5556_v42 = vpop.f32.mrf.mxu3 }
 0x398   :  { %6641 = vst [vmem:[#allocation4_spill] sm:$0xff] %v5556_v42  ;;  %2096 = vrot.lane.b32.xlu0 %v6639_v43, %s6618_s17 }
 0x399   :  { %1495 = vrot.lane.b32.xlu1 %v4607_v48, %s6630_s14 }
 0x39a   :  { %v1678_v9 = vpop.permute.xlu0 %1677 }
 0x39b   :  { %v1782_v27 = vpop.permute.xlu2 %1781  ;;  %v5569_v12 = vpop.permute.xlu1 %3655 }
 0x39c   :  { %v3657_v49 = vunpack.i.l.bf16 %v5569_v12  ;;  %3419 = vmatmul.msk.f32.gmra.mxu3 %vm2262_vm11, %v1414_v20  ;;  %v5597_v20 = vpop.f32.mrf.mxu0  ;;  %v5607_v4 = vpop.f32.mrf.mxu1 }
 0x39d   :  { %3386 = vmatmul.msk.f32.gmra.mxu0 %vm2262_vm11, %v2219_v57 }
 0x39e   :  { %v2196_v29 = vsel %vm1380_vm7, %v3657_v49, %v6582_v53  ;;  %v5601_v49 = vpop.f32.mrf.mxu2 }
 0x39f   :  { %v5582_v3 = vpop.f32.mrf.mxu3  ;;  %v2204_v63 = vsel %vm1389_vm8, %v2196_v29, %v5511_v50 }
 0x3a0   :  { %6642 = vst [vmem:[#allocation2_spill] sm:$0xff] %v5582_v3  ;;  %2544 = vmatmul.f32.gmra.mxu1 %v2204_v63  ;;  %2164 = vrot.lane.b32.xlu0 %v6639_v43, %s6619_s0 }
 0x3a1   :  { %1647 = vrot.lane.b32.xlu1 %v4607_v48, %s3721_s30 }
 0x3a2   :  { %v1205_v7 = vpop.permute.xlu0 %1204 }
 0x3a3   :  { %v5595_v51 = vpop.permute.xlu2 %1312  ;;  %v1207_v47 = vpop.permute.xlu1 %1206 }
 0x3a4   :  { %v1220_v57 = vsel %vm1208_vm6, %v1205_v7, %v1207_v47  ;;  %3420 = vmatmul.msk.f32.gmra.mxu3 %vm2262_vm11, %v1567_v0  ;;  %v1393_v53 = vsel %vm1389_vm8, %v1384_v62, %v5595_v51  ;;  %v5633_v62 = vpop.f32.mrf.mxu0  ;;  %vm3117_vm6 = vcmask 31744  }
 0x3a5   :  { %v1244_v29 = vmax.f32 %v5202_v56, %v1220_v57  ;;  %v1711_v56 = vsel %vm1398_vm10, %v5413_v19, %v5420_v34 }
 0x3a6   :  { %v1719_v0 = vsel %vm1407_vm12, %v1711_v56, %v1678_v9  ;;  %v5636_v34 = vpop.f32.mrf.mxu2 }
 0x3a7   :  { %v1260_v63 = vadd.f32 %v6643_v60, %v1244_v29  ;;  %v5610_v35 = vpop.f32.mrf.mxu3 }
 0x3a8   :  { %6644 = vst [vmem:[#allocation14_spill] sm:$0xff] %v5610_v35  ;;  %2547 = vmatmul.f32.gmra.mxu1 %v1393_v53  ;;  %1759 = vrot.lane.b32.xlu0 %v4781_v6, %s6593_s3 }
 0x3a9   :  { %v5616_v7 = vmax.f32 %v1260_v63, 0.0  ;;  %1783 = vrot.lane.b32.xlu1 %v4841_v38, %s6599_s11  ;;  %v5643_v63 = vpop.f32.mrf.mxu1 }
 0x3aa   :  { %v5623_v43 = vpop.permute.xlu0 %3660 }
 0x3ab   :  { %v3662_v47 = vunpack.i.l.bf16 %v5623_v43  ;;  %v1958_v57 = vpop.permute.xlu2 %1957  ;;  %v5627_v53 = vpop.permute.xlu1 %3665  ;;  %1370 = vrot.lane.b32.xlu2 %v5616_v7, %s3726_s23 }
 0x3ac   :  { %v3667_v29 = vunpack.i.l.bf16 %v5627_v53  ;;  %3421 = vmatmul.msk.f32.gmra.mxu3 %vm2262_vm11, %v1719_v0  ;;  %v5657_v11 = vpop.f32.mrf.mxu0 }
 0x3ae   :  { %v1847_v19 = vsel %vm1380_vm7, %v3662_v47, %v3667_v29 }
 0x3af   :  { %v5638_v60 = vpop.f32.mrf.mxu3  ;;  %v1855_v9 = vsel %vm1389_vm8, %v1847_v19, %v1782_v27  ;;  %v3643_v19 = vunpack.i.h.bf16 %v5437_v10 }
 0x3b0   :  { %6645 = vst [vmem:[#allocation18_spill] sm:$0xff] %v5638_v60  ;;  %1831 = vrot.lane.b32.xlu0 %v5616_v7, %s3727_s16  ;;  %2628 = vmatmul.f32.gmra.mxu2 %v1855_v9 }
 0x3b1   :  { %1362 = vrot.lane.b32.xlu1 %v4678_v16, %s3726_s23  ;;  %v2500_v10 = vpop.f32.mrf.mxu1 }
 0x3b2   :  { %v1806_v56 = vpop.permute.xlu0 %1805 }
 0x3b3   :  { %v1863_v0 = vsel %vm1398_vm10, %v1782_v27, %v1806_v56  ;;  %v1830_v39 = vpop.permute.xlu1 %1829  ;;  %1527 = vrot.lane.b32.xlu2 %v5616_v7, %s3728_s25  ;;  %v1518_v47 = vpop.permute.xlu2 %1517  ;;  %v3638_v27 = vunpack.i.h.bf16 %v5374_v5 }
 0x3b4   :  { %v1871_v29 = vsel %vm1407_vm12, %v1863_v0, %v1830_v39  ;;  %v5660_v56 = vpop.f32.mrf.mxu2  ;;  %v1401_v39 = vsel %vm1398_vm10, %v5239_v46, %v5513_v61  ;;  %v1555_v61 = vsel %vm1398_vm10, %v5219_v18, %v5477_v37  ;;  %v5700_v18 = vld [vmem:[%s6519_s4] ss:$0 sm:$0xff] }
 0x3b5   :  { %3422 = vmatmul.msk.f32.gmra.mxu3 %vm2262_vm11, %v1871_v29  ;;  %6647 = vst [vmem:[#allocation20_spill] sm:$0xff] %v5660_v56  ;;  %v1999_v40 = vsel %vm1380_vm7, %v3638_v27, %v3643_v19  ;;  %v2501_v37 = vadd.f32 %v5700_v18, %v2500_v10 }
 0x3b7   :  { %v5653_v9 = vpop.f32.mrf.mxu3 }
 0x3b8   :  { %6646 = vst [vmem:[#allocation19_spill] sm:$0xff] %v5653_v9  ;;  %1959 = vrot.lane.b32.xlu0 %v5088_v2, %s3720_s29  ;;  %s6648_s29 = smov 50  }
 0x3b9   :  { %1983 = vrot.lane.b32.xlu1 %v5616_v7, %s3730_s15 }
 0x3ba   :  { %v1361_v0 = vpop.permute.xlu0 %1360  ;;  %v2709_v46 = vpop.f32.mrf.mxu0 }
 0x3bb   :  { %v1410_v29 = vsel %vm1407_vm12, %v1401_v39, %v1361_v0  ;;  %v1934_v21 = vpop.permute.xlu1 %1933  ;;  %1679 = vrot.lane.b32.xlu2 %v5616_v7, %s3729_s1  ;;  %v5673_v14 = vpop.permute.xlu2 %1345  ;;  %v6650_v39 = vunpack.i.h.bf16 %v5273_v45 }
 0x3bc   :  { %3387 = vmatmul.msk.f32.gmra.mxu0 %vm2262_vm11, %v1410_v29  ;;  %v2007_v5 = vsel %vm1389_vm8, %v1999_v40, %v1934_v21  ;;  %v2015_v19 = vsel %vm1398_vm10, %v1934_v21, %v1958_v57  ;;  %v5685_v40 = vpop.f32.mrf.mxu2  ;;  %v1563_v29 = vsel %vm1407_vm12, %v1555_v61, %v1518_v47  ;;  %v2503_v21 = vpop.f32.mrf.mxu1  ;;  %v3648_v57 = vunpack.i.h.bf16 %v5418_v22 }
 0x3bd   :  { %2631 = vmatmul.f32.gmra.mxu2 %v2007_v5  ;;  %6649 = vst [vmem:[#allocation21_spill] sm:$0xff] %v5685_v40  ;;  %v1540_v0 = vsel %vm1380_vm7, %v6650_v39, %v5545_v25  ;;  %v2504_v61 = vadd.f32 %v5700_v18, %v2503_v21 }
 0x3be   :  { %v2064_v22 = vsel %vm1380_vm7, %v3648_v57, %v4678_v16 }
 0x3bf   :  { %v5675_v9 = vpop.f32.mrf.mxu3 }
 0x3c0   :  { %2049 = vrot.lane.b32.xlu0 %v4841_v38, %s6648_s29 }
 0x3c1   :  { %2052 = vrot.lane.b32.xlu1 %v5088_v2, %s6622_s28 }
 0x3c2   :  { %v1982_v27 = vpop.permute.xlu0 %1981 }
 0x3c3   :  { %v2023_v5 = vsel %vm1407_vm12, %v2015_v19, %v1982_v27  ;;  %v5693_v60 = vpop.permute.xlu1 %1471  ;;  %1735 = vrot.lane.b32.xlu2 %v4678_v16, %s6596_s27  ;;  %v2710_v19 = vadd.f32 %v2709_v46, %v2501_v37  ;;  %v1670_v27 = vpop.permute.xlu2 %1669 }
 0x3c4   :  { %3388 = vmatmul.msk.f32.gmra.mxu0 %vm2262_vm11, %v1563_v29  ;;  %3423 = vmatmul.msk.f32.gmra.mxu3 %vm2262_vm11, %v2023_v5  ;;  %v1548_v45 = vsel %vm1389_vm8, %v1540_v0, %v5693_v60  ;;  %v1707_v0 = vsel %vm1398_vm10, %v5322_v23, %v5543_v17  ;;  %v2596_v37 = vpop.f32.mrf.mxu2  ;;  %v2506_v57 = vpop.f32.mrf.mxu1 }
 0x3c5   :  { %2550 = vmatmul.f32.gmra.mxu1 %v1548_v45  ;;  %v1715_v46 = vsel %vm1407_vm12, %v1707_v0, %v1670_v27  ;;  %v5730_v21 = vsel %vm2877_vm13, %v2710_v19, -inf  ;;  %v6654_v27 = vunpack.i.h.bf16 %v5388_v58  ;;  %v3653_v58 = vunpack.i.h.bf16 %v5534_v59 }
 0x3c6   :  { %6651 = vst [vmem:[#allocation22_spill] sm:$0xff] %v5730_v21  ;;  %v2597_v40 = vadd.f32 %v5700_v18, %v2596_v37  ;;  %v2507_v8 = vadd.f32 %v5700_v18, %v2506_v57 }
 0x3c7   :  { %v5708_v47 = vpop.f32.mrf.mxu3 }
 0x3c8   :  { %1671 = vrot.lane.b32.xlu0 %v4678_v16, %s3729_s1 }
 0x3c9   :  { %v2712_v39 = vpop.f32.mrf.mxu0  ;;  %2104 = vrot.lane.b32.xlu1 %v4678_v16, %s6618_s17 }
 0x3ca   :  { %v2713_v10 = vadd.f32 %v2712_v39, %v2504_v61  ;;  %v5718_v29 = vpop.permute.xlu0 %1295  ;;  %v1692_v39 = vsel %vm1380_vm7, %v6654_v27, %v5511_v50 }
 0x3cb   :  { %v5723_v5 = vpop.permute.xlu1 %1320  ;;  %1807 = vrot.lane.b32.xlu2 %v5088_v2, %s6592_s10  ;;  %v2072_v45 = vsel %vm1389_vm8, %v2064_v22, %v5718_v29 }
 0x3cc   :  { %v5733_v23 = vsel %vm2877_vm13, %v2713_v10, -inf  ;;  %v2080_v17 = vsel %vm1398_vm10, %v5718_v29, %v5723_v5  ;;  %2634 = vmatmul.f32.gmra.mxu2 %v2072_v45  ;;  %3389 = vmatmul.msk.f32.gmra.mxu0 %vm2262_vm11, %v1715_v46  ;;  %v5756_v10 = vpop.permute.xlu2 %1503 }
 0x3cd   :  { %6652 = vst [vmem:[#allocation23_spill] sm:$0xff] %v5733_v23  ;;  %v2088_v61 = vsel %vm1407_vm12, %v2080_v17, %v5673_v14  ;;  %v2599_v17 = vpop.f32.mrf.mxu2 }
 0x3ce   :  { %3424 = vmatmul.msk.f32.gmra.mxu3 %vm2262_vm11, %v2088_v61 }
 0x3cf   :  { %v5744_v19 = vpop.f32.mrf.mxu3 }
 0x3d0   :  { %6653 = vst [vmem:[#allocation24_spill] sm:$0xff] %v5744_v19  ;;  %2117 = vrot.lane.b32.xlu0 %v4841_v38, %s6605_s22 }
 0x3d1   :  { %2120 = vrot.lane.b32.xlu1 %v5088_v2, %s6589_s12 }
 0x3d2   :  { %v5754_v0 = vpop.permute.xlu0 %1623 }
 0x3d3   :  { %v5758_v22 = vpop.permute.xlu1 %3670  ;;  %1935 = vrot.lane.b32.xlu2 %v4841_v38, %s6603_s13  ;;  %v1700_v46 = vsel %vm1389_vm8, %v1692_v39, %v5754_v0 }
 0x3d4   :  { %2553 = vmatmul.f32.gmra.mxu1 %v1700_v46  ;;  %v6586_v45 = vunpack.i.l.bf16 %v5758_v22  ;;  %v5786_v23 = vpop.permute.xlu2 %3675 }
 0x3d5   :  { %v3677_v13 = vunpack.i.l.bf16 %v5786_v23 }
 0x3d6   :  { %v2132_v39 = vsel %vm1380_vm7, %v3653_v58, %v6586_v45  ;;  %v3663_v58 = vunpack.i.h.bf16 %v5623_v43  ;;  %v3668_v45 = vunpack.i.h.bf16 %v5627_v53  ;;  %v2486_v43 = vadd.f32 %v5700_v18, %v5497_v36 }
 0x3d7   :  { %v5765_v61 = vpop.f32.mrf.mxu3  ;;  %v2600_v36 = vadd.f32 %v5700_v18, %v2599_v17 }
 0x3d8   :  { %6655 = vst [vmem:[#allocation25_spill] sm:$0xff] %v5765_v61  ;;  %1753 = vrot.lane.b32.xlu0 %v4560_v31, %s6593_s3  ;;  %v1844_v56 = vsel %vm1380_vm7, %v3663_v58, %v3668_v45  ;;  %v2695_v3 = vadd.f32 %v5523_v55, %v2486_v43  ;;  %v2509_v58 = vpop.f32.mrf.mxu1 }
 0x3d9   :  { %2123 = vrot.lane.b32.xlu1 %v5616_v7, %s6630_s14  ;;  %v2510_v55 = vadd.f32 %v5700_v18, %v2509_v58 }
 0x3da   :  { %v5772_v27 = vpop.permute.xlu0 %1455 }
 0x3db   :  { %v5777_v46 = vpop.permute.xlu1 %1479  ;;  %1519 = vrot.lane.b32.xlu2 %v4678_v16, %s3728_s25  ;;  %v2140_v59 = vsel %vm1389_vm8, %v2132_v39, %v5772_v27  ;;  %v2602_v39 = vpop.f32.mrf.mxu2  ;;  %s6665_s25 = smov 112  }
 0x3dc   :  { %v2148_v31 = vsel %vm1398_vm10, %v5772_v27, %v5777_v46  ;;  %2637 = vmatmul.f32.gmra.mxu2 %v2140_v59  ;;  %v2715_v59 = vpop.f32.mrf.mxu0  ;;  %v5814_v42 = vpop.permute.xlu2 %1631 }
 0x3dd   :  { %v2156_v21 = vsel %vm1407_vm12, %v2148_v31, %v5756_v10  ;;  %v2716_v17 = vadd.f32 %v2715_v59, %v2507_v8 }
 0x3de   :  { %3425 = vmatmul.msk.f32.gmra.mxu3 %vm2262_vm11, %v2156_v21  ;;  %v2483_v21 = vadd.f32 %v5700_v18, %v5467_v33  ;;  %v2882_v33 = vsel %vm2877_vm13, %v2695_v3, -inf }
 0x3df   :  { %v2805_v19 = vpop.f32.mrf.mxu3 }
 0x3e0   :  { %1823 = vrot.lane.b32.xlu0 %v4678_v16, %s3727_s16  ;;  %v2692_v45 = vadd.f32 %v5483_v28, %v2483_v21  ;;  %v2806_v35 = vadd.f32 %v2805_v19, %v2597_v40  ;;  %v3658_v28 = vunpack.i.h.bf16 %v5569_v12  ;;  %v2603_v21 = vadd.f32 %v5700_v18, %v2602_v39 }
 0x3e1   :  { %2172 = vrot.lane.b32.xlu1 %v4678_v16, %s6619_s0  ;;  %s3734_s0 = smov 4  }
 0x3e2   :  { %v5797_v61 = vpop.permute.xlu0 %1775  ;;  %v2881_v40 = vsel %vm2877_vm13, %v2692_v45, -inf  ;;  %v5825_v57 = vsel %vm2877_vm13, %v2806_v35, -inf  ;;  %v2200_v35 = vsel %vm1380_vm7, %v3658_v28, %v3677_v13 }
 0x3e3   :  { %v1798_v31 = vpop.permute.xlu1 %1797  ;;  %2055 = vrot.lane.b32.xlu2 %v5616_v7, %s3716_s26  ;;  %v1852_v53 = vsel %vm1389_vm8, %v1844_v56, %v5797_v61  ;;  %v2605_v37 = vpop.f32.mrf.mxu2 }
 0x3e4   :  { %2556 = vmatmul.f32.gmra.mxu1 %v1852_v53  ;;  %v1859_v19 = vsel %vm1398_vm10, %v5376_v44, %v1798_v31  ;;  %v2883_v44 = vmax.f32 %v2881_v40, %v2882_v33  ;;  %v2893_v31 = vsel %vm2877_vm13, %v2716_v17, -inf  ;;  %v1388_v33 = vsel %vm1380_vm7, %v4678_v16, %v5718_v29  ;;  %v5850_v40 = vpop.permute.xlu2 %3685 }
 0x3e5   :  { %v3687_v16 = vunpack.i.l.bf16 %v5850_v40 }
 0x3e7   :  { %v2808_v56 = vpop.f32.mrf.mxu3 }
 0x3e8   :  { %v2809_v15 = vadd.f32 %v2808_v56, %v2600_v36  ;;  %2185 = vrot.lane.b32.xlu0 %v4841_v38, %s3710_s18  ;;  %v2977_v36 = vsel %vm2877_vm13, %v2883_v44, -inf  ;;  %v2512_v56 = vpop.f32.mrf.mxu1  ;;  %v2606_v44 = vadd.f32 %v5700_v18, %v2605_v37  ;;  %s3732_s18 = smov 92  }
 0x3e9   :  { %2188 = vrot.lane.b32.xlu1 %v5088_v2, %s6591_s19 }
 0x3ea   :  { %v5830_v38 = vsel %vm2877_vm13, %v2809_v15, -inf  ;;  %v2718_v3 = vpop.f32.mrf.mxu0  ;;  %v1822_v43 = vpop.permute.xlu0 %1821 }
 0x3eb   :  { %v2940_v12 = vmax.f32 %v5825_v57, %v5830_v38  ;;  %v2719_v8 = vadd.f32 %v2718_v3, %v2510_v55  ;;  %v1867_v59 = vsel %vm1407_vm12, %v1859_v19, %v1822_v43  ;;  %v1608_v2 = vpop.permute.xlu1 %1607  ;;  %2114 = vrot.lane.b32.xlu2 %v4781_v6, %s6604_s20 }
 0x3ec   :  { %3390 = vmatmul.msk.f32.gmra.mxu0 %vm2262_vm11, %v1867_v59  ;;  %v2208_v15 = vsel %vm1389_vm8, %v2200_v35, %v1608_v2  ;;  %v2216_v19 = vsel %vm1398_vm10, %v1608_v2, %v5814_v42  ;;  %v5862_v59 = vpop.f32.mrf.mxu2  ;;  %v1397_v35 = vsel %vm1389_vm8, %v1388_v33, %v5723_v5 }
 0x3ed   :  { %v2894_v53 = vsel %vm2877_vm13, %v2719_v8, -inf  ;;  %2640 = vmatmul.f32.gmra.mxu2 %v2208_v15 }
 0x3ee   :  { %v2895_v45 = vmax.f32 %v2893_v31, %v2894_v53  ;;  %v6656_v53 = vld [vmem:[#allocation10_spill] sm:$0xff] }
 0x3ef   :  { %v2811_v58 = vpop.f32.mrf.mxu3 }
 0x3f0   :  { %v2978_v55 = vsel %vm2877_vm13, %v2895_v45, -inf  ;;  %v2812_v28 = vadd.f32 %v2811_v58, %v2603_v21  ;;  %v6657_v58 = vunpack.i.l.bf16 %v5758_v22 }
 0x3f1   :  { %v2979_v17 = vmax.f32 %v2977_v36, %v2978_v55  ;;  %v2515_v55 = vpop.f32.mrf.mxu1 }
 0x3f2   :  { %v5854_v3 = vpop.permute.xlu0 %1655  ;;  %v1544_v36 = vsel %vm1380_vm7, %v6657_v58, %v5772_v27  ;;  %v5879_v33 = vsel %vm2877_vm13, %v2812_v28, -inf }
 0x3f3   :  { %v3023_v39 = vmax.f32 %v2979_v17, 0.0  ;;  %v2224_v43 = vsel %vm1407_vm12, %v2216_v19, %v5854_v3  ;;  %v5858_v8 = vpop.permute.xlu1 %3680  ;;  %1729 = vrot.lane.b32.xlu2 %v4469_v41, %s6596_s27  ;;  %v1552_v28 = vsel %vm1389_vm8, %v1544_v36, %v5777_v46 }
 0x3f4   :  { %v3682_v29 = vunpack.i.l.bf16 %v5858_v8  ;;  %3426 = vmatmul.msk.f32.gmra.mxu3 %vm2262_vm11, %v2224_v43 }
 0x3f5   :  { %3039 = vrot.lane.b32.xlu0 %v3023_v39, %s6593_s3  ;;  %2643 = vmatmul.f32.gmra.mxu2 %v1397_v35  ;;  %v2492_v35 = vadd.f32 %v5700_v18, %v5576_v1 }
 0x3f6   :  { %v1996_v15 = vsel %vm1380_vm7, %v3682_v29, %v3687_v16  ;;  %v5890_v16 = vpop.f32.mrf.mxu2 }
 0x3f7   :  { %v2814_v31 = vpop.f32.mrf.mxu3  ;;  %v2004_v21 = vsel %vm1389_vm8, %v1996_v15, %v6656_v53  ;;  %v2489_v15 = vadd.f32 %v5700_v18, %v5532_v26 }
 0x3f8   :  { %v2815_v45 = vadd.f32 %v2814_v31, %v2606_v44  ;;  %2559 = vmatmul.f32.gmra.mxu1 %v2004_v21  ;;  %v2076_v31 = vsel %vm1398_vm10, %v5502_v32, %v5595_v51  ;;  %v1406_v32 = vsel %vm1398_vm10, %v5723_v5, %v5673_v14  ;;  %v2516_v5 = vadd.f32 %v5700_v18, %v2515_v55 }
 0x3f9   :  { %v5915_v1 = vpop.f32.mrf.mxu1 }
 0x3fa   :  { %v5882_v17 = vsel %vm2877_vm13, %v2815_v45, -inf  ;;  %v1950_v37 = vpop.permute.xlu0 %1949  ;;  %v2701_v45 = vadd.f32 %v5597_v20, %v2492_v35  ;;  %v2513_v20 = vadd.f32 %v5700_v18, %v2512_v56 }
 0x3fb   :  { %v2943_v19 = vmax.f32 %v5879_v33, %v5882_v17  ;;  %v2011_v39 = vsel %vm1398_vm10, %v5449_v54, %v1950_v37  ;;  %v1974_v43 = vpop.permute.xlu1 %1973  ;;  %1799 = vrot.lane.b32.xlu2 %v4607_v48, %s6592_s10  ;;  %v1696_v54 = vsel %vm1380_vm7, %v3677_v13, %v1608_v2 }
 0x3fc   :  { %v2019_v27 = vsel %vm1407_vm12, %v2011_v39, %v1974_v43  ;;  %v1704_v26 = vsel %vm1389_vm8, %v1696_v54, %v5814_v42  ;;  %v6658_v39 = vld [vmem:[#allocation11_spill] sm:$0xff]  ;;  %v2885_v14 = vsel %vm2877_vm13, %v2701_v45, -inf  ;;  %v3673_v54 = vunpack.i.h.bf16 %v5758_v22 }
 0x3fd   :  { %2646 = vmatmul.f32.gmra.mxu2 %v1552_v28  ;;  %3391 = vmatmul.msk.f32.gmra.mxu0 %vm2262_vm11, %v2019_v27  ;;  %v2698_v27 = vadd.f32 %v5562_v52, %v2489_v15  ;;  %v2144_v52 = vsel %vm1398_vm10, %v5545_v25, %v5693_v60  ;;  %v1560_v25 = vsel %vm1398_vm10, %v5777_v46, %v5756_v10 }
 0x3fe   :  { %v2614_v13 = vpop.f32.mrf.mxu2  ;;  %v2498_v10 = vadd.f32 %v5700_v18, %v5643_v63 }
 0x3ff   :  { %v5896_v29 = vpop.f32.mrf.mxu3 }
 0x400   :  { %v2707_v63 = vadd.f32 %v5657_v11, %v2498_v10 }
 0x401   :  { %v2721_v48 = vpop.f32.mrf.mxu0 }
 0x402   :  { %v5903_v44 = vpop.permute.xlu0 %3690  ;;  %v2722_v35 = vadd.f32 %v2721_v48, %v2513_v20  ;;  %v6659_v20 = vld [vmem:[#allocation5_spill] sm:$0xff] }
 0x403   :  { %v3692_v53 = vunpack.i.l.bf16 %v5903_v44  ;;  %v5911_v21 = vpop.permute.xlu1 %1337  ;;  %2182 = vrot.lane.b32.xlu2 %v4781_v6, %s6607_s21 }
 0x404   :  { %v2084_v2 = vsel %vm1407_vm12, %v2076_v31, %v5911_v21 }
 0x405   :  { %v1371_v58 = vpop.permute.xlu2 %1370  ;;  %2649 = vmatmul.f32.gmra.mxu2 %v1704_v26  ;;  %3392 = vmatmul.msk.f32.gmra.mxu0 %vm2262_vm11, %v2084_v2  ;;  %v2061_v36 = vsel %vm1380_vm7, %v3692_v53, %v4469_v41  ;;  %v2884_v53 = vsel %vm2877_vm13, %v2698_v27, -inf }
 0x406   :  { %v1415_v37 = vsel %vm1407_vm12, %v1406_v32, %v1371_v58  ;;  %v2069_v43 = vsel %vm1389_vm8, %v2061_v36, %v6658_v39  ;;  %v2886_v26 = vmax.f32 %v2884_v53, %v2885_v14  ;;  %v2617_v45 = vpop.f32.mrf.mxu2  ;;  %v2896_v32 = vsel %vm2877_vm13, %v2722_v35, -inf }
 0x407   :  { %2562 = vmatmul.f32.gmra.mxu1 %v2069_v43  ;;  %v5933_v28 = vpop.f32.mrf.mxu3  ;;  %3427 = vmatmul.msk.f32.gmra.mxu3 %vm2262_vm11, %v1415_v37  ;;  %v2615_v37 = vadd.f32 %v5700_v18, %v2614_v13  ;;  %v2495_v13 = vadd.f32 %v5700_v18, %v5607_v4  ;;  %v2618_v11 = vadd.f32 %v5700_v18, %v2617_v45 }
 0x408   :  { %v2980_v46 = vsel %vm2877_vm13, %v2886_v26, -inf  ;;  %v2588_v45 = vadd.f32 %v5700_v18, %v5636_v34 }
 0x40a   :  { %v2724_v31 = vpop.f32.mrf.mxu0  ;;  %v2097_v15 = vpop.permute.xlu0 %2096 }
 0x40b   :  { %v2725_v56 = vadd.f32 %v2724_v31, %v2516_v5  ;;  %v5943_v2 = vpop.permute.xlu1 %1495  ;;  %2191 = vrot.lane.b32.xlu2 %v5616_v7, %s3721_s30  ;;  %v2129_v55 = vsel %vm1380_vm7, %v2097_v15, %v3673_v54  ;;  %v2521_v7 = vpop.f32.mrf.mxu1  ;;  %v2212_v15 = vsel %vm1398_vm10, %v5511_v50, %v5754_v0 }
 0x40c   :  { %v2152_v48 = vsel %vm1407_vm12, %v2144_v52, %v5943_v2  ;;  %v2137_v14 = vsel %vm1389_vm8, %v2129_v55, %v6659_v20  ;;  %v3678_v52 = vunpack.i.h.bf16 %v5786_v23 }
 0x40d   :  { %v2897_v58 = vsel %vm2877_vm13, %v2725_v56, -inf  ;;  %v1528_v36 = vpop.permute.xlu2 %1527  ;;  %3393 = vmatmul.msk.f32.gmra.mxu0 %vm2262_vm11, %v2152_v48 }
 0x40e   :  { %v2898_v43 = vmax.f32 %v2896_v32, %v2897_v58  ;;  %v1568_v27 = vsel %vm1407_vm12, %v1560_v25, %v1528_v36  ;;  %v1712_v32 = vsel %vm1398_vm10, %v5814_v42, %v5854_v3  ;;  %v2704_v58 = vadd.f32 %v5633_v62, %v2495_v13 }
 0x40f   :  { %2565 = vmatmul.f32.gmra.mxu1 %v2137_v14  ;;  %v2823_v5 = vpop.f32.mrf.mxu3  ;;  %3428 = vmatmul.msk.f32.gmra.mxu3 %vm2262_vm11, %v1568_v27  ;;  %v6660_v27 = vld [vmem:[#allocation7_spill] sm:$0xff]  ;;  %v2519_v42 = vadd.f32 %v5700_v18, %v5915_v1  ;;  %v2612_v3 = vadd.f32 %v5700_v18, %v5890_v16  ;;  %v2888_v62 = vsel %vm2877_vm13, %v2707_v63, -inf  ;;  %v2609_v1 = vadd.f32 %v5700_v18, %v5862_v59 }
 0x410   :  { %v2981_v35 = vsel %vm2877_vm13, %v2898_v43, -inf  ;;  %v2824_v31 = vadd.f32 %v2823_v5, %v2615_v37  ;;  %v2620_v37 = vpop.f32.mrf.mxu2  ;;  %v2887_v13 = vsel %vm2877_vm13, %v2704_v58, -inf  ;;  %v6661_v58 = vld [vmem:[#allocation9_spill] sm:$0xff] }
 0x411   :  { %v2982_v53 = vmax.f32 %v2980_v46, %v2981_v35  ;;  %v1385_v46 = vsel %vm1380_vm7, %v4469_v41, %v6658_v39  ;;  %v2522_v35 = vadd.f32 %v5700_v18, %v2521_v7  ;;  %v2821_v16 = vadd.f32 %v5933_v28, %v2612_v3 }
 0x412   :  { %v2727_v56 = vpop.f32.mrf.mxu0  ;;  %v2165_v48 = vpop.permute.xlu0 %2164  ;;  %v6012_v34 = vsel %vm2877_vm13, %v2824_v31, -inf  ;;  %v2797_v39 = vadd.f32 %v5708_v47, %v2588_v45  ;;  %v2818_v7 = vadd.f32 %v5896_v29, %v2609_v1  ;;  %v2889_v63 = vmax.f32 %v2887_v13, %v2888_v62 }
 0x413   :  { %v3024_v55 = vmax.f32 %v2982_v53, 0.0  ;;  %v5973_v25 = vpop.permute.xlu1 %1647  ;;  %v2197_v26 = vsel %vm1380_vm7, %v2165_v48, %v3678_v52  ;;  %v5987_v36 = vpop.f32.mrf.mxu1  ;;  %v2728_v53 = vadd.f32 %v2727_v56, %v2519_v42  ;;  %v2945_v31 = vsel %vm2877_vm13, %v2821_v16, -inf }
 0x414   :  { %v2220_v4 = vsel %vm1407_vm12, %v2212_v15, %v5973_v25  ;;  %v2205_v14 = vsel %vm1389_vm8, %v2197_v26, %v6660_v27  ;;  %v2585_v15 = vadd.f32 %v5700_v18, %v5601_v49  ;;  %v2621_v47 = vadd.f32 %v5700_v18, %v2620_v37 }
 0x415   :  { %3043 = vrot.lane.b32.xlu0 %v3024_v55, %s6605_s22  ;;  %v1680_v50 = vpop.permute.xlu2 %1679  ;;  %3394 = vmatmul.msk.f32.gmra.mxu0 %vm2262_vm11, %v2220_v4  ;;  %v2899_v26 = vsel %vm2877_vm13, %v2728_v53, -inf  ;;  %v2983_v37 = vsel %vm2877_vm13, %v2889_v63, -inf  ;;  %v1402_v16 = vsel %vm1398_vm10, %v5595_v51, %v5911_v21  ;;  %v6662_v63 = vld [vmem:[#allocation12_spill] sm:$0xff] }
 0x416   :  { %v1720_v43 = vsel %vm1407_vm12, %v1712_v32, %v1680_v50  ;;  %v2794_v49 = vadd.f32 %v5675_v9, %v2585_v15 }
 0x417   :  { %2568 = vmatmul.f32.gmra.mxu1 %v2205_v14  ;;  %v2826_v5 = vpop.f32.mrf.mxu3  ;;  %3429 = vmatmul.msk.f32.gmra.mxu3 %vm2262_vm11, %v1720_v43  ;;  %v2933_v43 = vsel %vm2877_vm13, %v2797_v39, -inf  ;;  %v2944_v14 = vsel %vm2877_vm13, %v2818_v7, -inf }
 0x418   :  { %v2827_v10 = vadd.f32 %v2826_v5, %v2618_v11  ;;  %v1394_v11 = vsel %vm1389_vm8, %v1385_v46, %v6661_v58  ;;  %v2623_v5 = vpop.f32.mrf.mxu2  ;;  %v2946_v62 = vmax.f32 %v2944_v14, %v2945_v31  ;;  %v2932_v46 = vsel %vm2877_vm13, %v2794_v49, -inf }
 0x419   :  { %v2934_v1 = vmax.f32 %v2932_v46, %v2933_v43  ;;  %v2624_v51 = vadd.f32 %v5700_v18, %v2623_v5 }
 0x41a   :  { %v6015_v55 = vsel %vm2877_vm13, %v2827_v10, -inf  ;;  %v2730_v41 = vpop.f32.mrf.mxu0  ;;  %v1760_v56 = vpop.permute.xlu0 %1759  ;;  %v3005_v39 = vsel %vm2877_vm13, %v2946_v62, -inf }
 0x41b   :  { %v2949_v59 = vmax.f32 %v6012_v34, %v6015_v55  ;;  %v2731_v28 = vadd.f32 %v2730_v41, %v2522_v35  ;;  %v1784_v48 = vpop.permute.xlu1 %1783  ;;  %v6032_v3 = vpop.f32.mrf.mxu1  ;;  %v1541_v41 = vsel %vm1380_vm7, %v3673_v54, %v6659_v20 }
 0x41c   :  { %v1549_v22 = vsel %vm1389_vm8, %v1541_v41, %v6662_v63 }
 0x41d   :  { %v2900_v4 = vsel %vm2877_vm13, %v2731_v28, -inf  ;;  %v1736_v32 = vpop.permute.xlu2 %1735  ;;  %v3008_v38 = vsel %vm2877_vm13, %v2949_v59, -inf }
 0x41e   :  { %v2901_v50 = vmax.f32 %v2899_v26, %v2900_v4  ;;  %v1848_v29 = vsel %vm1380_vm7, %v1736_v32, %v1760_v56  ;;  %v3004_v56 = vsel %vm2877_vm13, %v2934_v1, -inf  ;;  %v3683_v4 = vunpack.i.h.bf16 %v5858_v8 }
 0x41f   :  { %2571 = vmatmul.f32.gmra.mxu1 %v1394_v11  ;;  %v2829_v9 = vpop.f32.mrf.mxu3  ;;  %v1856_v42 = vsel %vm1389_vm8, %v1848_v29, %v1784_v48  ;;  %v3006_v49 = vmax.f32 %v3004_v56, %v3005_v39  ;;  %v1693_v8 = vsel %vm1380_vm7, %v3678_v52, %v6660_v27 }
 0x420   :  { %v2984_v45 = vsel %vm2877_vm13, %v2901_v50, -inf  ;;  %v2830_v10 = vadd.f32 %v2829_v9, %v2621_v47  ;;  %2652 = vmatmul.f32.gmra.mxu2 %v1856_v42  ;;  %v2626_v32 = vpop.f32.mrf.mxu2  ;;  %v3688_v50 = vunpack.i.h.bf16 %v5850_v40  ;;  %v1701_v5 = vsel %vm1389_vm8, %v1693_v8, %v4982_v24 }
 0x421   :  { %v2985_v35 = vmax.f32 %v2983_v37, %v2984_v45  ;;  %v3032_v29 = vmax.f32 %v3006_v49, 0.0  ;;  %v2627_v42 = vadd.f32 %v5700_v18, %v2626_v32  ;;  %v3693_v45 = vunpack.i.h.bf16 %v5903_v44 }
 0x422   :  { %v1832_v13 = vpop.permute.xlu0 %1831  ;;  %v6059_v47 = vsel %vm2877_vm13, %v2830_v10, -inf  ;;  %v2000_v9 = vsel %vm1380_vm7, %v3683_v4, %v3688_v50  ;;  %v1556_v24 = vsel %vm1398_vm10, %v5693_v60, %v5943_v2  ;;  %v2525_v44 = vadd.f32 %v5700_v18, %v5987_v36 }
 0x423   :  { %v3025_v53 = vmax.f32 %v2985_v35, 0.0  ;;  %v1363_v15 = vpop.permute.xlu1 %1362  ;;  %v6054_v31 = vpop.f32.mrf.mxu1  ;;  %v1708_v36 = vsel %vm1398_vm10, %v5754_v0, %v5973_v25 }
 0x424   :  { %v1411_v7 = vsel %vm1407_vm12, %v1402_v16, %v1363_v15  ;;  %v2065_v16 = vsel %vm1380_vm7, %v3693_v45, %v4781_v6 }
 0x425   :  { %3047 = vrot.lane.b32.xlu2 %v3025_v53, %s6603_s13  ;;  %v1808_v28 = vpop.permute.xlu2 %1807  ;;  %3395 = vmatmul.msk.f32.gmra.mxu0 %vm2262_vm11, %v1411_v7 }
 0x426   :  { %v1864_v21 = vsel %vm1398_vm10, %v1784_v48, %v1808_v28 }
 0x427   :  { %2574 = vmatmul.f32.gmra.mxu1 %v1549_v22  ;;  %v2832_v54 = vpop.f32.mrf.mxu3  ;;  %v1872_v20 = vsel %vm1407_vm12, %v1864_v21, %v1832_v13 }
 0x428   :  { %v2833_v26 = vadd.f32 %v2832_v54, %v2624_v51  ;;  %3430 = vmatmul.msk.f32.gmra.mxu3 %vm2262_vm11, %v1872_v20  ;;  %v2528_v20 = vadd.f32 %v5700_v18, %v6032_v3 }
 0x42a   :  { %v6062_v48 = vsel %vm2877_vm13, %v2833_v26, -inf  ;;  %v1960_v11 = vpop.permute.xlu0 %1959 }
 0x42b   :  { %v2952_v58 = vmax.f32 %v6059_v47, %v6062_v48  ;;  %v1984_v43 = vpop.permute.xlu1 %1983  ;;  %v6079_v52 = vpop.f32.mrf.mxu1  ;;  %v6275_v48 = vld [vmem:[%s6519_s4] ss:$0 sm:$0xff] }
 0x42d   :  { %3075 = vrot.lane.b32.xlu2 %v3032_v29, %s3726_s23  ;;  %v1936_v14 = vpop.permute.xlu2 %1935  ;;  %s3733_s23 = smov 24  }
 0x42e   :  { %v2016_v40 = vsel %vm1398_vm10, %v1936_v14, %v1960_v11  ;;  %v2008_v62 = vsel %vm1389_vm8, %v2000_v9, %v1936_v14 }
 0x42f   :  { %2577 = vmatmul.f32.gmra.mxu1 %v1701_v5  ;;  %2655 = vmatmul.f32.gmra.mxu2 %v2008_v62  ;;  %v2835_v37 = vpop.f32.mrf.mxu3  ;;  %v2024_v23 = vsel %vm1407_vm12, %v2016_v40, %v1984_v43  ;;  %v2531_v40 = vadd.f32 %v5700_v18, %v6054_v31 }
 0x430   :  { %v2836_v27 = vadd.f32 %v2835_v37, %v2627_v42  ;;  %3431 = vmatmul.msk.f32.gmra.mxu3 %vm2262_vm11, %v2024_v23 }
 0x432   :  { %v2050_v10 = vpop.permute.xlu0 %2049  ;;  %v6097_v6 = vsel %vm2877_vm13, %v2836_v27, -inf }
 0x433   :  { %v2053_v46 = vpop.permute.xlu1 %2052  ;;  %v2629_v35 = vpop.f32.mrf.mxu2  ;;  %v2073_v13 = vsel %vm1389_vm8, %v2065_v16, %v2050_v10 }
 0x434   :  { %v2630_v15 = vadd.f32 %v5700_v18, %v2629_v35  ;;  %v6094_v41 = vpop.f32.mrf.mxu1  ;;  %v2081_v63 = vsel %vm1398_vm10, %v2050_v10, %v2053_v46 }
 0x435   :  { %v1520_v1 = vpop.permute.xlu2 %1519 }
 0x436   :  { %v1564_v53 = vsel %vm1407_vm12, %v1556_v24, %v1520_v1 }
 0x437   :  { %2658 = vmatmul.f32.gmra.mxu2 %v2073_v13  ;;  %3396 = vmatmul.msk.f32.gmra.mxu0 %vm2262_vm11, %v1564_v53 }
 0x438   :  { %v2838_v39 = vpop.f32.mrf.mxu3 }
 0x439   :  { %v2839_v60 = vadd.f32 %v2838_v39, %v2630_v15  ;;  %v2733_v2 = vpop.f32.mrf.mxu0 }
 0x43a   :  { %v2734_v7 = vadd.f32 %v2733_v2, %v2525_v44  ;;  %v1672_v56 = vpop.permute.xlu0 %1671 }
 0x43b   :  { %v6100_v28 = vsel %vm2877_vm13, %v2839_v60, -inf  ;;  %v2105_v51 = vpop.permute.xlu1 %2104  ;;  %v1716_v49 = vsel %vm1407_vm12, %v1708_v36, %v1672_v56 }
 0x43c   :  { %v2955_v21 = vmax.f32 %v6097_v6, %v6100_v28  ;;  %v6114_v26 = vpop.f32.mrf.mxu1  ;;  %v6117_v29 = vsel %vm2877_vm13, %v2734_v7, -inf  ;;  %v3143_v6 = vld [vmem:[%s6520_s5 + $0xa0] sm:$0xff]  ;;  %v3126_v28 = vld [vmem:[%s6520_s5 + $0x18] sm:$0xff] }
 0x43d   :  { %v2056_v22 = vpop.permute.xlu2 %2055 }
 0x43e   :  { %v2089_v54 = vsel %vm1407_vm12, %v2081_v63, %v2056_v22  ;;  %v3138_v22 = vld [vmem:[%s6520_s5 + $0x78] sm:$0xff] }
 0x43f   :  { %3397 = vmatmul.msk.f32.gmra.mxu0 %vm2262_vm11, %v1716_v49  ;;  %3432 = vmatmul.msk.f32.gmra.mxu3 %vm2262_vm11, %v2089_v54  ;;  %v3154_v49 = vld [vmem:[%s6520_s5 + $0xf8] sm:$0xff] }
 0x440   :  { %v2632_v32 = vpop.f32.mrf.mxu2  ;;  %3171 = vmatpush.msra.mxu0 %v3138_v22  ;;  %3191 = vmatpush.msra.mxu2 %v3154_v49 }
 0x441   :  { %v2736_v4 = vpop.f32.mrf.mxu0  ;;  %v2633_v14 = vadd.f32 %v5700_v18, %v2632_v32 }
 0x442   :  { %v2737_v50 = vadd.f32 %v2736_v4, %v2528_v20  ;;  %v2118_v0 = vpop.permute.xlu0 %2117 }
 0x443   :  { %v2121_v25 = vpop.permute.xlu1 %2120 }
 0x444   :  { %v6120_v11 = vsel %vm2877_vm13, %v2737_v50, -inf  ;;  %v6129_v5 = vpop.f32.mrf.mxu1  ;;  %v2149_v27 = vsel %vm1398_vm10, %v2118_v0, %v2121_v25 }
 0x445   :  { %v2904_v43 = vmax.f32 %v6117_v29, %v6120_v11  ;;  %v2115_v8 = vpop.permute.xlu2 %2114  ;;  %v3147_v29 = vld [vmem:[%s6520_s5 + $0xc0] sm:$0xff] }
 0x446   :  { %v2133_v3 = vsel %vm1380_vm7, %v2105_v51, %v2115_v8 }
 0x447   :  { %v2841_v9 = vpop.f32.mrf.mxu3  ;;  %v2141_v42 = vsel %vm1389_vm8, %v2133_v3, %v2118_v0 }
 0x448   :  { %v2842_v62 = vadd.f32 %v2841_v9, %v2633_v14  ;;  %2661 = vmatmul.f32.gmra.mxu2 %v2141_v42  ;;  %v2534_v42 = vadd.f32 %v5700_v18, %v6079_v52 }
 0x449   :  { %v2739_v37 = vpop.f32.mrf.mxu0 }
 0x44a   :  { %v2740_v23 = vadd.f32 %v2739_v37, %v2531_v40  ;;  %v1754_v45 = vpop.permute.xlu0 %1753  ;;  %v6141_v44 = vsel %vm2877_vm13, %v2842_v62, -inf }
 0x44b   :  { %v2124_v10 = vpop.permute.xlu1 %2123 }
 0x44c   :  { %v2157_v46 = vsel %vm1407_vm12, %v2149_v27, %v2124_v10  ;;  %v6138_v13 = vpop.f32.mrf.mxu1  ;;  %v6171_v37 = vsel %vm2877_vm13, %v2740_v23, -inf  ;;  %v3137_v10 = vld [vmem:[%s6520_s5 + $0x70] sm:$0xff] }
 0x44d   :  { %v1730_v35 = vpop.permute.xlu2 %1729  ;;  %3433 = vmatmul.msk.f32.gmra.mxu3 %vm2262_vm11, %v2157_v46  ;;  %v3153_v46 = vld [vmem:[%s6520_s5 + $0xf0] sm:$0xff]  ;;  %3172 = vmatpush.msra.mxu0 %v3137_v10 }
 0x44e   :  { %v1845_v24 = vsel %vm1380_vm7, %v1730_v35, %v1754_v45  ;;  %3192 = vmatpush.msra.mxu2 %v3153_v46 }
 0x44f   :  { %v2635_v1 = vpop.f32.mrf.mxu2  ;;  %v1853_v31 = vsel %vm1389_vm8, %v1845_v24, %v4945_v30 }
 0x450   :  { %v2636_v16 = vadd.f32 %v5700_v18, %v2635_v1  ;;  %2580 = vmatmul.f32.gmra.mxu1 %v1853_v31 }
 0x451   :  { %v2844_v53 = vpop.f32.mrf.mxu3 }
 0x452   :  { %v2845_v15 = vadd.f32 %v2844_v53, %v2636_v16  ;;  %v1824_v60 = vpop.permute.xlu0 %1823 }
 0x453   :  { %v2173_v51 = vpop.permute.xlu1 %2172 }
 0x454   :  { %v6144_v39 = vsel %vm2877_vm13, %v2845_v15, -inf  ;;  %v6152_v36 = vpop.f32.mrf.mxu1 }
 0x455   :  { %v2958_v2 = vmax.f32 %v6141_v44, %v6144_v39  ;;  %v1800_v7 = vpop.permute.xlu2 %1799 }
 0x456   :  { %v1860_v30 = vsel %vm1398_vm10, %v5797_v61, %v1800_v7 }
 0x457   :  { %v1868_v56 = vsel %vm1407_vm12, %v1860_v30, %v1824_v60  ;;  %v3136_v30 = vld [vmem:[%s6520_s5 + $0x68] sm:$0xff] }
 0x458   :  { %3398 = vmatmul.msk.f32.gmra.mxu0 %vm2262_vm11, %v1868_v56  ;;  %v3152_v56 = vld [vmem:[%s6520_s5 + $0xe8] sm:$0xff] }
 0x459   :  { %3173 = vmatpush.msra.mxu0 %v3136_v30  ;;  %3193 = vmatpush.msra.mxu2 %v3152_v56  ;;  %v6663_v30 = vld [vmem:[#allocation13_spill] sm:$0xff] }
 0x45a   :  { %v2186_v54 = vpop.permute.xlu0 %2185 }
 0x45b   :  { %v2189_v0 = vpop.permute.xlu1 %2188 }
 0x45c   :  { %v6163_v8 = vpop.f32.mrf.mxu1  ;;  %v2217_v14 = vsel %vm1398_vm10, %v2186_v54, %v2189_v0  ;;  %vm3119_vm10 = vcmask 195584  }
 0x45d   :  { %v2183_v63 = vpop.permute.xlu2 %2182 }
 0x45e   :  { %v2201_v20 = vsel %vm1380_vm7, %v2173_v51, %v2183_v63  ;;  %v2537_v51 = vadd.f32 %v5700_v18, %v6094_v41  ;;  %v2540_v63 = vadd.f32 %v5700_v18, %v6114_v26  ;;  %v3151_v41 = vld [vmem:[%s6520_s5 + $0xe0] sm:$0xff] }
 0x45f   :  { %v2638_v61 = vpop.f32.mrf.mxu2  ;;  %v2209_v4 = vsel %vm1389_vm8, %v2201_v20, %v2186_v54  ;;  %3194 = vmatpush.msra.mxu2 %v3151_v41 }
 0x460   :  { %v2639_v32 = vadd.f32 %v5700_v18, %v2638_v61  ;;  %2664 = vmatmul.f32.gmra.mxu2 %v2209_v4 }
 0x461   :  { %v2847_v50 = vpop.f32.mrf.mxu3 }
 0x462   :  { %v2848_v25 = vadd.f32 %v2847_v50, %v2639_v32  ;;  %v3135_v32 = vld [vmem:[%s6520_s5 + $0x60] sm:$0xff] }
 0x463   :  { %3174 = vmatpush.msra.mxu0 %v3135_v32  ;;  %v6664_v32 = vld [vmem:[#allocation4_spill] sm:$0xff] }
 0x464   :  { %v6173_v27 = vpop.f32.mrf.mxu1  ;;  %v6190_v16 = vsel %vm2877_vm13, %v2848_v25, -inf }
 0x465   :  { %v2192_v3 = vpop.permute.xlu2 %2191  ;;  %v2555_v34 = vadd.f32 %v6275_v48, %v6173_v27 }
 0x466   :  { %v2225_v9 = vsel %vm1407_vm12, %v2217_v14, %v2192_v3  ;;  %v2543_v3 = vadd.f32 %v5700_v18, %v6129_v5  ;;  %v3134_v5 = vld [vmem:[%s6520_s5 + $0x58] sm:$0xff] }
 0x467   :  { %3434 = vmatmul.msk.f32.gmra.mxu3 %vm2262_vm11, %v2225_v9  ;;  %3175 = vmatpush.msra.mxu0 %v3134_v5  ;;  %vm3121_vm11 = vcmask 359424  }
 0x469   :  { %v2742_v40 = vpop.f32.mrf.mxu0 }
 0x46a   :  { %v2743_v62 = vadd.f32 %v2742_v40, %v2534_v42  ;;  %v2546_v40 = vadd.f32 %v5700_v18, %v6138_v13  ;;  %v3150_v13 = vld [vmem:[%s6520_s5 + $0xd8] sm:$0xff] }
 0x46b   :  { %3195 = vmatpush.msra.mxu2 %v3150_v13 }
 0x46c   :  { %v6176_v45 = vsel %vm2877_vm13, %v2743_v62, -inf  ;;  %v6186_v35 = vpop.f32.mrf.mxu1 }
 0x46d   :  { %v2907_v52 = vmax.f32 %v6171_v37, %v6176_v45  ;;  %v3013_v37 = vsel %vm2877_vm13, %v2955_v21, -inf  ;;  %v3128_v45 = vld [vmem:[%s6520_s5 + $0x28] sm:$0xff]  ;;  %v3142_v21 = vld [vmem:[%s6520_s5 + $0x98] sm:$0xff] }
 0x46f   :  { %v2989_v44 = vsel %vm2877_vm13, %v2907_v52, -inf  ;;  %v3144_v52 = vld [vmem:[%s6520_s5 + $0xa8] sm:$0xff] }
 0x470   :  { %v2641_v23 = vpop.f32.mrf.mxu2 }
 0x471   :  { %v2642_v24 = vadd.f32 %v5700_v18, %v2641_v23 }
 0x475   :  { %v6197_v7 = vpop.f32.mrf.mxu1 }
 0x477   :  { %v2850_v1 = vpop.f32.mrf.mxu3 }
 0x478   :  { %v2851_v31 = vadd.f32 %v2850_v1, %v2642_v24  ;;  %v2644_v26 = vpop.f32.mrf.mxu2 }
 0x479   :  { %v2645_v1 = vadd.f32 %v5700_v18, %v2644_v26 }
 0x47a   :  { %v6193_v53 = vsel %vm2877_vm13, %v2851_v31, -inf  ;;  %v2745_v15 = vpop.f32.mrf.mxu0 }
 0x47b   :  { %v2961_v60 = vmax.f32 %v6190_v16, %v6193_v53  ;;  %v2746_v22 = vadd.f32 %v2745_v15, %v2537_v51  ;;  %v3123_v16 = vld [vmem:[%s6520_s5] sm:$0xff] }
 0x47c   :  { %v3139_v53 = vld [vmem:[%s6520_s5 + $0x80] sm:$0xff] }
 0x47d   :  { %v6212_v61 = vsel %vm2877_vm13, %v2746_v22, -inf }
 0x480   :  { %v2647_v9 = vpop.f32.mrf.mxu2 }
 0x481   :  { %v2648_v23 = vadd.f32 %v5700_v18, %v2647_v9 }
 0x482   :  { %v2748_v49 = vpop.f32.mrf.mxu0 }
 0x483   :  { %v2749_v54 = vadd.f32 %v2748_v49, %v2540_v63 }
 0x484   :  { %v6209_v20 = vpop.f32.mrf.mxu1 }
 0x485   :  { %v6215_v4 = vsel %vm2877_vm13, %v2749_v54, -inf }
 0x486   :  { %v2910_v50 = vmax.f32 %v6212_v61, %v6215_v4  ;;  %v6671_v61 = vld [vmem:[#allocation20_spill] sm:$0xff] }
 0x487   :  { %v2591_v4 = vadd.f32 %v6275_v48, %v6671_v61  ;;  %v3002_v61 = vsel %vm2877_vm13, %v2943_v19, -inf }
 0x488   :  { %v6262_v5 = vpop.f32.mrf.mxu2 }
 0x489   :  { %v2651_v27 = vadd.f32 %v6275_v48, %v6262_v5  ;;  %v3016_v5 = vsel %vm2877_vm13, %v2958_v2, -inf }
 0x48a   :  { %v2751_v0 = vpop.f32.mrf.mxu0  ;;  %v2853_v25 = vpop.f32.mrf.mxu3 }
 0x48b   :  { %v2752_v42 = vadd.f32 %v2751_v0, %v2543_v3  ;;  %v2854_v54 = vadd.f32 %v2853_v25, %v2645_v1  ;;  %v3133_v25 = vld [vmem:[%s6520_s5 + $0x50] sm:$0xff] }
 0x48c   :  { %v2566_v14 = vpop.f32.mrf.mxu1  ;;  %3176 = vmatpush.msra.mxu0 %v3133_v25 }
 0x48d   :  { %v2567_v62 = vadd.f32 %v5700_v18, %v2566_v14  ;;  %v2911_v31 = vsel %vm2877_vm13, %v2752_v42, -inf  ;;  %v2962_v9 = vsel %vm2877_vm13, %v2854_v54, -inf }
 0x48f   :  { %v2776_v56 = vadd.f32 %v6663_v30, %v2567_v62  ;;  %v3132_v30 = vld [vmem:[%s6520_s5 + $0x48] sm:$0xff] }
 0x490   :  { %3177 = vmatpush.msra.mxu0 %v3132_v30 }
 0x491   :  { %v2923_v26 = vsel %vm2877_vm13, %v2776_v56, -inf  ;;  %v3148_v56 = vld [vmem:[%s6520_s5 + $0xc8] sm:$0xff] }
 0x492   :  { %v2754_v10 = vpop.f32.mrf.mxu0  ;;  %v2856_v46 = vpop.f32.mrf.mxu3 }
 0x493   :  { %v2755_v24 = vadd.f32 %v2754_v10, %v2546_v40  ;;  %v2857_v63 = vadd.f32 %v2856_v46, %v2648_v23  ;;  %v3149_v46 = vld [vmem:[%s6520_s5 + $0xd0] sm:$0xff] }
 0x494   :  { %v2569_v15 = vpop.f32.mrf.mxu1  ;;  %3196 = vmatpush.msra.mxu2 %v3149_v46 }
 0x495   :  { %v2912_v51 = vsel %vm2877_vm13, %v2755_v24, -inf  ;;  %v2570_v22 = vadd.f32 %v5700_v18, %v2569_v15  ;;  %v2963_v0 = vsel %vm2877_vm13, %v2857_v63, -inf  ;;  %v3010_v24 = vsel %vm2877_vm13, %v2952_v58, -inf }
 0x496   :  { %v2913_v49 = vmax.f32 %v2911_v31, %v2912_v51  ;;  %v2964_v40 = vmax.f32 %v2962_v9, %v2963_v0  ;;  %3197 = vmatpush.msra.mxu2 %v3148_v56  ;;  %v2564_v58 = vadd.f32 %v6275_v48, %v6209_v20  ;;  %v2549_v51 = vadd.f32 %v6275_v48, %v6152_v36 }
 0x497   :  { %v2779_v41 = vadd.f32 %v6664_v32, %v2570_v22  ;;  %v2561_v63 = vadd.f32 %v6275_v48, %v6197_v7  ;;  %v2552_v22 = vadd.f32 %v6275_v48, %v6163_v8 }
 0x498   :  { %v2995_v42 = vsel %vm2877_vm13, %v2913_v49, -inf  ;;  %v3011_v23 = vsel %vm2877_vm13, %v2964_v40, -inf  ;;  %v6666_v49 = vld [vmem:[#allocation3_spill] sm:$0xff]  ;;  %3198 = vmatpush.msra.mxu2 %v3147_v29 }
 0x499   :  { %v2924_v14 = vsel %vm2877_vm13, %v2779_v41, -inf  ;;  %v3012_v1 = vmax.f32 %v3010_v24, %v3011_v23  ;;  %v2773_v54 = vadd.f32 %v6666_v49, %v2564_v58  ;;  %v6668_v23 = vld [vmem:[#allocation14_spill] sm:$0xff] }
 0x49a   :  { %v2925_v3 = vmax.f32 %v2923_v26, %v2924_v14  ;;  %v6270_v47 = vpop.f32.mrf.mxu3  ;;  %v6667_v14 = vld [vmem:[#allocation15_spill] sm:$0xff] }
 0x49b   :  { %v3034_v31 = vmax.f32 %v3012_v1, 0.0  ;;  %v2921_v36 = vsel %vm2877_vm13, %v2773_v54, -inf  ;;  %v6670_v54 = vld [vmem:[#allocation21_spill] sm:$0xff] }
 0x49c   :  { %v2996_v18 = vsel %vm2877_vm13, %v2925_v3, -inf  ;;  %v2572_v15 = vpop.f32.mrf.mxu1  ;;  %v2770_v3 = vadd.f32 %v6667_v14, %v2561_v63 }
 0x49d   :  { %v2997_v62 = vmax.f32 %v2995_v42, %v2996_v18 }
 0x49e   :  { %v2920_v18 = vsel %vm2877_vm13, %v2770_v3, -inf }
 0x49f   :  { %v3029_v10 = vmax.f32 %v2997_v62, 0.0  ;;  %v2573_v62 = vadd.f32 %v6275_v48, %v2572_v15  ;;  %v2922_v25 = vmax.f32 %v2920_v18, %v2921_v36  ;;  %v3131_v15 = vld [vmem:[%s6520_s5 + $0x40] sm:$0xff] }
 0x4a0   :  { %3178 = vmatpush.msra.mxu0 %v3131_v15 }
 0x4a1   :  { %3063 = vrot.lane.b32.xlu2 %v3029_v10, %s6630_s14  ;;  %v2986_v10 = vsel %vm2877_vm13, %v2904_v43, -inf  ;;  %v2993_v58 = vsel %vm2877_vm13, %v2922_v25, -inf  ;;  %v2992_v43 = vsel %vm2877_vm13, %v2910_v50, -inf  ;;  %v6672_v50 = vld [vmem:[#allocation25_spill] sm:$0xff] }
 0x4a2   :  { %v2757_v13 = vpop.f32.mrf.mxu0 }
 0x4a3   :  { %v2758_v32 = vadd.f32 %v2757_v13, %v2549_v51  ;;  %v6286_v41 = vpop.f32.mrf.mxu2  ;;  %v6669_v13 = vld [vmem:[#allocation2_spill] sm:$0xff] }
 0x4a4   :  { %v2575_v26 = vpop.f32.mrf.mxu1  ;;  %v2782_v30 = vadd.f32 %v6669_v13, %v2573_v62 }
 0x4a5   :  { %v2914_v42 = vsel %vm2877_vm13, %v2758_v32, -inf  ;;  %v2576_v7 = vadd.f32 %v6275_v48, %v2575_v26  ;;  %v2594_v32 = vadd.f32 %v6275_v48, %v6670_v54  ;;  %v3130_v26 = vld [vmem:[%s6520_s5 + $0x38] sm:$0xff] }
 0x4a6   :  { %v2926_v63 = vsel %vm2877_vm13, %v2782_v30, -inf  ;;  %3179 = vmatpush.msra.mxu0 %v3130_v26  ;;  %v2654_v26 = vadd.f32 %v6275_v48, %v6286_v41  ;;  %v3145_v41 = vld [vmem:[%s6520_s5 + $0xb0] sm:$0xff] }
 0x4a7   :  { %v2785_v24 = vadd.f32 %v6668_v23, %v2576_v7  ;;  %v2803_v14 = vadd.f32 %v6672_v50, %v2594_v32  ;;  %v6673_v7 = vld [vmem:[#allocation24_spill] sm:$0xff]  ;;  %v2558_v32 = vadd.f32 %v6275_v48, %v6186_v35 }
 0x4a8   :  { %v3129_v35 = vld [vmem:[%s6520_s5 + $0x30] sm:$0xff] }
 0x4a9   :  { %3083 = vrot.lane.b32.xlu2 %v3034_v31, %s6665_s25  ;;  %v2927_v11 = vsel %vm2877_vm13, %v2785_v24, -inf  ;;  %v2936_v62 = vsel %vm2877_vm13, %v2803_v14, -inf  ;;  %3180 = vmatpush.msra.mxu0 %v3129_v35  ;;  %v3040_v35 = vpop.permute.xlu0 %3039 }
 0x4aa   :  { %v2928_v49 = vmax.f32 %v2926_v63, %v2927_v11 }
 0x4ab   :  { %v6289_v20 = vpop.f32.mrf.mxu3  ;;  %3181 = vmatpush.msra.mxu0 %v3128_v45 }
 0x4ac   :  { %v2578_v3 = vpop.f32.mrf.mxu1  ;;  %v2998_v36 = vsel %vm2877_vm13, %v2928_v49, -inf }
 0x4ad   :  { %v2579_v23 = vadd.f32 %v6275_v48, %v2578_v3  ;;  %v2863_v3 = vadd.f32 %v6289_v20, %v2654_v26  ;;  %v3160_v26 = vld [vmem:[%s6520_s5 + $0x128] sm:$0xff] }
 0x4b2   :  { %v2656_v31 = vpop.f32.mrf.mxu2 }
 0x4b3   :  { %v2865_v51 = vpop.f32.mrf.mxu3 }
 0x4b4   :  { %v2760_v0 = vpop.f32.mrf.mxu0 }
 0x4b5   :  { %v2761_v9 = vadd.f32 %v2760_v0, %v2552_v22  ;;  %v2994_v22 = vmax.f32 %v2992_v43, %v2993_v58  ;;  %v3146_v0 = vld [vmem:[%s6520_s5 + $0xb8] sm:$0xff]  ;;  %v6675_v43 = vld [vmem:[#allocation19_spill] sm:$0xff] }
 0x4b6   :  { %3199 = vmatpush.msra.mxu2 %v3146_v0 }
 0x4b7   :  { %v2915_v8 = vsel %vm2877_vm13, %v2761_v9, -inf  ;;  %v3028_v9 = vmax.f32 %v2994_v22, 0.0 }
 0x4b8   :  { %v2916_v40 = vmax.f32 %v2914_v42, %v2915_v8  ;;  %v2800_v8 = vadd.f32 %v6673_v7, %v2591_v4  ;;  %3200 = vmatpush.msra.mxu2 %v3145_v41  ;;  %v6677_v41 = vld [vmem:[#allocation6_spill] sm:$0xff] }
 0x4ba   :  { %v2987_v46 = vsel %vm2877_vm13, %v2916_v40, -inf  ;;  %v2659_v42 = vpop.f32.mrf.mxu2  ;;  %v2999_v40 = vsel %vm2877_vm13, %v2940_v12, -inf  ;;  %v2935_v24 = vsel %vm2877_vm13, %v2800_v8, -inf  ;;  %v6674_v12 = vld [vmem:[#allocation18_spill] sm:$0xff]  ;;  %3201 = vmatpush.msra.mxu2 %v3144_v52 }
 0x4bb   :  { %v2988_v1 = vmax.f32 %v2986_v10, %v2987_v46  ;;  %v2657_v10 = vadd.f32 %v6275_v48, %v2656_v31  ;;  %v2660_v25 = vadd.f32 %v6275_v48, %v2659_v42  ;;  %v3000_v46 = vmax.f32 %v2998_v36, %v2999_v40 }
 0x4bc   :  { %v2937_v13 = vmax.f32 %v2935_v24, %v2936_v62  ;;  %v2788_v31 = vadd.f32 %v6674_v12, %v2579_v23  ;;  %v2966_v40 = vsel %vm2877_vm13, %v2863_v3, -inf  ;;  %v3127_v24 = vld [vmem:[%s6520_s5 + $0x20] sm:$0xff]  ;;  %3202 = vmatpush.msra.mxu2 %v3143_v6  ;;  %v2477_v3 = vadd.f32 %v6275_v48, %v6677_v41 }
 0x4bd   :  { %v3026_v56 = vmax.f32 %v2988_v1, 0.0  ;;  %v2866_v30 = vadd.f32 %v2865_v51, %v2657_v10  ;;  %v3030_v57 = vmax.f32 %v3000_v46, 0.0  ;;  %3182 = vmatpush.msra.mxu0 %v3127_v24 }
 0x4be   :  { %v3007_v11 = vsel %vm2877_vm13, %v2937_v13, -inf  ;;  %v2929_v55 = vsel %vm2877_vm13, %v2788_v31, -inf  ;;  %3203 = vmatpush.msra.mxu2 %v3142_v21 }
 0x4bf   :  { %3051 = vrot.lane.b32.xlu1 %v3026_v56, %s6591_s19  ;;  %v2763_v56 = vpop.f32.mrf.mxu0  ;;  %v3009_v63 = vmax.f32 %v3007_v11, %v3008_v38  ;;  %v2968_v22 = vsel %vm2877_vm13, %v2866_v30, -inf  ;;  %3183 = vmatpush.msra.mxu0 %v3126_v28 }
 0x4c0   :  { %v2764_v0 = vadd.f32 %v2763_v56, %v2555_v34  ;;  %v3125_v56 = vld [vmem:[%s6520_s5 + $0x10] sm:$0xff] }
 0x4c1   :  { %v3033_v4 = vmax.f32 %v3009_v63, 0.0  ;;  %3184 = vmatpush.msra.mxu0 %v3125_v56 }
 0x4c2   :  { %v2868_v18 = vpop.f32.mrf.mxu3  ;;  %v2917_v36 = vsel %vm2877_vm13, %v2764_v0, -inf  ;;  %v3159_v0 = vld [vmem:[%s6520_s5 + $0x120] sm:$0xff] }
 0x4c3   :  { %v2869_v1 = vadd.f32 %v2868_v18, %v2660_v25 }
 0x4c5   :  { %v2969_v29 = vsel %vm2877_vm13, %v2869_v1, -inf }
 0x4c6   :  { %v2970_v59 = vmax.f32 %v2968_v22, %v2969_v29 }
 0x4c7   :  { %3059 = vrot.lane.b32.xlu1 %v3028_v9, %s6592_s10  ;;  %v2860_v9 = vadd.f32 %v6270_v47, %v2651_v27 }
 0x4c8   :  { %v3017_v33 = vsel %vm2877_vm13, %v2970_v59, -inf  ;;  %v3140_v59 = vld [vmem:[%s6520_s5 + $0x88] sm:$0xff] }
 0x4c9   :  { %v3018_v7 = vmax.f32 %v3016_v5, %v3017_v33  ;;  %v2965_v2 = vsel %vm2877_vm13, %v2860_v9, -inf  ;;  %v6678_v33 = vld [vmem:[#allocation8_spill] sm:$0xff]  ;;  %v3156_v5 = vld [vmem:[%s6520_s5 + $0x108] sm:$0xff] }
 0x4ca   :  { %v2967_v18 = vmax.f32 %v2965_v2, %v2966_v40  ;;  %v6679_v9 = vld [vmem:[#allocation16_spill] sm:$0xff]  ;;  %v6681_v2 = vld [vmem:[#allocation23_spill] sm:$0xff] }
 0x4cb   :  { %v3036_v62 = vmax.f32 %v3018_v7, 0.0  ;;  %v2662_v10 = vpop.f32.mrf.mxu2 }
 0x4cc   :  { %v3014_v46 = vsel %vm2877_vm13, %v2967_v18, -inf  ;;  %v2663_v30 = vadd.f32 %v6275_v48, %v2662_v10 }
 0x4cd   :  { %v2581_v58 = vpop.f32.mrf.mxu1  ;;  %v3015_v1 = vmax.f32 %v3013_v37, %v3014_v46 }
 0x4ce   :  { %v2582_v15 = vadd.f32 %v6275_v48, %v2581_v58 }
 0x4cf   :  { %3067 = vrot.lane.b32.xlu1 %v3030_v57, %s3730_s15  ;;  %v3035_v58 = vmax.f32 %v3015_v1, 0.0  ;;  %v3141_v57 = vld [vmem:[%s6520_s5 + $0x90] sm:$0xff] }
 0x4d0   :  { %v2791_v51 = vadd.f32 %v6675_v43, %v2582_v15  ;;  %v2871_v23 = vpop.f32.mrf.mxu3  ;;  %3204 = vmatpush.msra.mxu2 %v3141_v57 }
 0x4d1   :  { %v2872_v38 = vadd.f32 %v2871_v23, %v2663_v30 }
 0x4d2   :  { %v2930_v49 = vsel %vm2877_vm13, %v2791_v51, -inf  ;;  %v3019_v51 = vsel %vm2877_vm13, %v2961_v60, -inf  ;;  %3205 = vmatpush.msra.mxu2 %v3140_v59  ;;  %v3233_v59 = vld [vmem:[%s6523_s7 + $0x8] sm:$0xff] }
 0x4d3   :  { %v2931_v54 = vmax.f32 %v2929_v55, %v2930_v49  ;;  %v2971_v29 = vsel %vm2877_vm13, %v2872_v38, -inf  ;;  %v3124_v55 = vld [vmem:[%s6520_s5 + $0x8] sm:$0xff]  ;;  %v3162_v49 = vld [vmem:[%s6520_s5 + $0x138] sm:$0xff] }
 0x4d4   :  { %3185 = vmatpush.msra.mxu0 %v3124_v55  ;;  %3206 = vmatpush.msra.mxu2 %v3139_v53  ;;  %v3234_v55 = vld [vmem:[%s6523_s7 + $0x10] sm:$0xff]  ;;  %v3696_v53 = vld [vmem:[%s6521_s6] ss:$0 sm:$0xff] }
 0x4d5   :  { %v3001_v50 = vsel %vm2877_vm13, %v2931_v54, -inf  ;;  %v2766_v14 = vpop.f32.mrf.mxu0  ;;  %v3161_v54 = vld [vmem:[%s6520_s5 + $0x130] sm:$0xff] }
 0x4d6   :  { %v2767_v17 = vadd.f32 %v2766_v14, %v2558_v32  ;;  %v3003_v19 = vmax.f32 %v3001_v50, %v3002_v61  ;;  %3186 = vmatpush.msra.mxu0 %v3123_v16  ;;  %v3048_v32 = vpop.permute.xlu2 %3047  ;;  %v3158_v61 = vld [vmem:[%s6520_s5 + $0x118] sm:$0xff]  ;;  %v3232_v16 = vld [vmem:[%s6523_s7] sm:$0xff] }
 0x4d7   :  { %3079 = vrot.lane.b32.xlu1 %v3033_v4, %s3732_s18  ;;  %v3157_v4 = vld [vmem:[%s6520_s5 + $0x110] sm:$0xff]  ;;  %v6676_v50 = vld [vmem:[#allocation17_spill] sm:$0xff] }
 0x4d8   :  { %v2918_v42 = vsel %vm2877_vm13, %v2767_v17, -inf  ;;  %v3031_v20 = vmax.f32 %v3003_v19, 0.0  ;;  %3219 = vmatpush.msrb.mxu0 %v3162_v49  ;;  %v2480_v14 = vadd.f32 %v6275_v48, %v6676_v50 }
 0x4d9   :  { %v2919_v8 = vmax.f32 %v2917_v36, %v2918_v42  ;;  %v2686_v36 = vadd.f32 %v6679_v9, %v2477_v3  ;;  %v3155_v42 = vld [vmem:[%s6520_s5 + $0x100] sm:$0xff] }
 0x4da   :  { %3071 = vrot.lane.b32.xlu0 %v3031_v20, %s3729_s1  ;;  %3220 = vmatpush.msrb.mxu0 %v3161_v54  ;;  %v2689_v17 = vadd.f32 %v6678_v33, %v2480_v14 }
 0x4db   :  { %v2990_v39 = vsel %vm2877_vm13, %v2919_v8, -inf  ;;  %v2878_v7 = vsel %vm2877_vm13, %v2686_v36, -inf  ;;  %v3044_v8 = vpop.permute.xlu0 %3043 }
 0x4dc   :  { %v2991_v47 = vmax.f32 %v2989_v44, %v2990_v39  ;;  %3221 = vmatpush.msrb.mxu0 %v3160_v26  ;;  %v2879_v20 = vsel %vm2877_vm13, %v2689_v17, -inf  ;;  %v6680_v39 = vld [vmem:[#allocation22_spill] sm:$0xff] }
 0x4de   :  { %v3027_v25 = vmax.f32 %v2991_v47, 0.0  ;;  %3222 = vmatpush.msrb.mxu0 %v3159_v0  ;;  %v3076_v19 = vpop.permute.xlu2 %3075  ;;  %v6682_v47 = vmax.f32 %v6680_v39, %v6681_v2 }
 0x4df   :  { %3091 = vrot.lane.b32.xlu1 %v3036_v62, %s3733_s23 }
 0x4e0   :  { %3223 = vmatpush.msrb.mxu0 %v3158_v61  ;;  %v2975_v18 = vsel %vm2877_vm13, %v6682_v47, -inf }
 0x4e2   :  { %3055 = vrot.lane.b32.xlu0 %v3027_v25, %s6622_s28  ;;  %3224 = vmatpush.msrb.mxu0 %v3157_v4  ;;  %v3697_v4 = vld [vmem:[%s6522_s8] ss:$0 sm:$0xff] }
 0x4e3   :  { %v2665_v13 = vpop.f32.mrf.mxu2 }
 0x4e4   :  { %v2666_v12 = vadd.f32 %v6275_v48, %v2665_v13  ;;  %3225 = vmatpush.msrb.mxu0 %v3156_v5  ;;  %v2880_v48 = vmax.f32 %v2878_v7, %v2879_v20 }
 0x4e6   :  { %3226 = vmatpush.msrb.mxu0 %v3155_v42  ;;  %v2974_v62 = vsel %vm2877_vm13, %v2880_v48, -inf }
 0x4e7   :  { %v2976_v10 = vmax.f32 %v2974_v62, %v2975_v18 }
 0x4e9   :  { %v3022_v37 = vmax.f32 %v2976_v10, 0.0 }
 0x4ea   :  { %v2874_v31 = vpop.f32.mrf.mxu3  ;;  %3087 = vrot.lane.b32.xlu0 %v3035_v58, %s3734_s0 }
 0x4eb   :  { %v2875_v15 = vadd.f32 %v2874_v31, %v2666_v12  ;;  %v3098_v1 = vsel %vm2877_vm13, %v3022_v37, %v3040_v35 }
 0x4ec   :  { %v3100_v21 = vsel %vm3099_vm1, %v3098_v1, %v3044_v8 }
 0x4ed   :  { %v2972_v11 = vsel %vm2877_vm13, %v2875_v15, -inf  ;;  %v3102_v30 = vsel %vm3101_vm2, %v3100_v21, %v3048_v32 }
 0x4ee   :  { %v2973_v43 = vmax.f32 %v2971_v29, %v2972_v11 }
 0x4f0   :  { %v3020_v63 = vsel %vm2877_vm13, %v2973_v43, -inf }
 0x4f1   :  { %v3021_v22 = vmax.f32 %v3019_v51, %v3020_v63  ;;  %v3238_v51 = vld [vmem:[%s6523_s7 + $0x30] sm:$0x3]  ;;  %v3237_v63 = vld [vmem:[%s6523_s7 + $0x28] sm:$0xff] }
 0x4f2   :  { %3436 = vmatpush.msk.msrb.mxu2 %vm2455_vm9, %v3238_v51 }
 0x4f3   :  { %v3037_v34 = vmax.f32 %v3021_v22, 0.0  ;;  %v3236_v22 = vld [vmem:[%s6523_s7 + $0x20] sm:$0xff] }
 0x4f4   :  { %3259 = vmatpush.msrb.mxu2 %v3237_v63 }
 0x4f5   :  { %3095 = vrot.lane.b32.xlu2 %v3037_v34, %s3735_s24  ;;  %v3235_v34 = vld [vmem:[%s6523_s7 + $0x18] sm:$0xff] }
 0x4f6   :  { %3260 = vmatpush.msrb.mxu2 %v3236_v22 }
 0x4f8   :  { %3261 = vmatpush.msrb.mxu2 %v3235_v34 }
 0x4fa   :  { %3262 = vmatpush.msrb.mxu2 %v3234_v55 }
 0x4fb   :  { %v3064_v44 = vpop.permute.xlu2 %3063 }
 0x4fc   :  { %3263 = vmatpush.msrb.mxu2 %v3233_v59 }
 0x4fe   :  { %3264 = vmatpush.msrb.mxu2 %v3232_v16 }
 0x503   :  { %v3084_v6 = vpop.permute.xlu2 %3083 }
 0x531   :  { %v3052_v60 = vpop.permute.xlu1 %3051 }
 0x532   :  { %v3104_v56 = vsel %vm3103_vm3, %v3102_v30, %v3052_v60 }
 0x539   :  { %v3060_v27 = vpop.permute.xlu1 %3059 }
 0x53a   :  { %v3108_v25 = vsel %vm768_vm5, %v3060_v27, %v3064_v44  ;;  %vm3106_vm5 = vcmask 982016  }
 0x541   :  { %v3068_v40 = vpop.permute.xlu1 %3067 }
 0x542   :  { %v3110_v46 = vsel %vm3109_vm14, %v3108_v25, %v3068_v40 }
 0x549   :  { %v3080_v52 = vpop.permute.xlu1 %3079 }
 0x54c   :  { %v3072_v23 = vpop.permute.xlu0 %3071 }
 0x54d   :  { %v3112_v45 = vsel %vm3111_vm15, %v3110_v46, %v3072_v23 }
 0x54e   :  { %v3113_v24 = vsel %vm1407_vm12, %v3112_v45, %v3076_v19  ;;  %vm3167_vm12 = vcmask 523264  }
 0x54f   :  { %v3115_v28 = vsel %vm3114_vm0, %v3113_v24, %v3080_v52  ;;  %v3096_v29 = vpop.permute.xlu2 %3095 }
 0x550   :  { %v3116_v13 = vsel %vm505_vm4, %v3115_v28, %v3084_v6 }
 0x551   :  { %3207 = vmatmul.f32.vlgmr.msra.gmra.mxu2 %v3116_v13  ;;  %v3092_v31 = vpop.permute.xlu1 %3091 }
 0x554   :  { %v3056_v58 = vpop.permute.xlu0 %3055 }
 0x555   :  { %v3105_v57 = vsel %vm1389_vm8, %v3104_v56, %v3056_v58 }
 0x556   :  { %v3107_v38 = vsel %vm3106_vm5, %v3105_v57, %v3060_v27 }
 0x557   :  { %3187 = vmatmul.f32.vlgmr.msra.gmra.mxu0 %v3107_v38 }
 0x55c   :  { %v3088_v12 = vpop.permute.xlu0 %3087 }
 0x55d   :  { %v3118_v15 = vsel %vm3117_vm6, %v3084_v6, %v3088_v12 }
 0x55e   :  { %v3120_v11 = vsel %vm3119_vm10, %v3118_v15, %v3092_v31 }
 0x55f   :  { %v3122_v43 = vsel %vm3121_vm11, %v3120_v11, %v3096_v29 }
 0x560   :  { %3435 = vmatmul.msk.f32.vlgmr.msrb.gmra.mxu0 %vm3167_vm12, %v3122_v43 }
 0x5d4   :  { %v3188_v60 = vpop.f32.mrf.mxu0  ;;  %v3208_v54 = vpop.f32.mrf.mxu2 }
 0x5d5   :  { %v3189_v49 = vadd.f32 %v3696_v53, %v3188_v60 }
 0x5d7   :  { %v3209_v32 = vadd.f32 %v3208_v54, %v3189_v49 }
 0x5dd   :  { %v3228_v26 = vpop.f32.mrf.mxu0 }
 0x5de   :  { %v3229_v0 = vadd.f32 %v3228_v26, %v3209_v32 }
 0x5e0   :  { %v3231_v61 = vmax.f32 %v3229_v0, 0.0 }
 0x5e2   :  { %3437 = vmatmul.msk.f32.vlgmr.msrb.gmra.mxu2 %vm1380_vm7, %v3231_v61 }
 0x665   :  { %v3266_v27 = vpop.f32.mrf.mxu2 }
 0x666   :  { %v3267_v50 = vadd.f32 %v3697_v4, %v3266_v27 }
 0x668   :  { %3269 = vst [vmem:[%s6524_s9] sm:$0xff] %v3267_v50 }

</bundles_post_ra>
